<compile_context>
chip_gen: v7x
topology: tpu7x:2x2x1
jax: 0.10.0
libtpu: 0.0.40
codegen_flags: <defaults>
</compile_context>

<pallas_src>
import numpy as np
import jax
import jax.numpy as jnp
from jax.experimental import pallas as pl
from jax.experimental.pallas import tpu as pltpu


# Row layout of the packed small-parameter block (f32, 128 lanes wide).
ROW_W1 = 0            # rows 0..2 : conv1 taps, lanes 0:24
ROW_S1, ROW_T1 = 3, 4  # BN1 scale/shift, lanes 0:24
ROW_S2, ROW_T2 = 5, 6  # BN2 scale/shift, lanes 0:48
ROW_S3, ROW_T3 = 7, 8  # BN3 scale/shift, lanes 0:128
ROW_S4, ROW_T4 = 9, 10  # BN4 scale/shift, lanes 0:2
ROW_W3F = 11           # rows 11 .. 11+NT-1 : W3 filetype rows, lanes 0:128


# --------------------------------------------------------------------------
# Pallas kernel: whole forward pass for one batch block
#   conv1 -> bn -> relu -> pool -> conv2 -> bn -> relu -> pool ->
#   linear(+filetype) -> bn -> relu -> linear -> bn -> softmax
# --------------------------------------------------------------------------
def char_cnn_kernel(x_ref, ft_ref, p_ref, w2_ref, w3c_ref, w4_ref,
                    out_ref, xpad_ref, pad2_ref):
    F, BB, _ = x_ref.shape                # x block: (F, BLOCK_B, 1)
    NT = ft_ref.shape[1]
    Fh, L4 = F // 2, F // 4
    FBB, FhBB = F * BB, Fh * BB
    bf16 = jnp.bfloat16

    def prow(r, n):                        # (1, n) f32 slice of packed params
        return p_ref[r:r + 1, 0:n]

    # ------------- layer1: Conv1d(1->24,k=3,p=1) + BN + ReLU + MaxPool(2) --
    # Lane-broadcast x to 24 lanes ONCE at store time; halo blocks zeroed.
    xpad_ref[0:BB, :] = jnp.zeros((BB, 24), jnp.float32)
    xpad_ref[BB:BB + FBB, :] = jnp.broadcast_to(
        x_ref[...], (F, BB, 24)).reshape(FBB, 24)
    xpad_ref[BB + FBB:2 * BB + FBB, :] = jnp.zeros((BB, 24), jnp.float32)

    # 3 taps = 24-lane FMAs on static, 8-row-aligned slices.
    y1 = (xpad_ref[0:FBB, :] * prow(ROW_W1 + 0, 24)
          + xpad_ref[BB:BB + FBB, :] * prow(ROW_W1 + 1, 24)
          + xpad_ref[2 * BB:2 * BB + FBB, :] * prow(ROW_W1 + 2, 24))
    y1 = jnp.maximum(y1 * prow(ROW_S1, 24) + prow(ROW_T1, 24), 0.0)
    y1 = y1.reshape(Fh, 2 * BB, 24)
    # Pool result written straight into conv2's padded scratch (write-through).
    pad2_ref[0:BB, :] = jnp.zeros((BB, 24), jnp.float32)
    pad2_ref[BB:BB + FhBB, :] = jnp.maximum(
        y1[:, :BB, :], y1[:, BB:, :]).reshape(FhBB, 24)
    pad2_ref[BB + FhBB:2 * BB + FhBB, :] = jnp.zeros((BB, 24), jnp.float32)

    # ------------- layer2: Conv1d(24->48,k=3,p=1) + BN + ReLU + MaxPool(2) -
    # Tap windows are static 8-row-aligned slices; bf16 operands, f32 acc.
    y2 = jnp.dot(pad2_ref[0:FhBB, :].astype(bf16), w2_ref[0],
                 preferred_element_type=jnp.float32)
    y2 = y2 + jnp.dot(pad2_ref[BB:BB + FhBB, :].astype(bf16), w2_ref[1],
                      preferred_element_type=jnp.float32)
    y2 = y2 + jnp.dot(pad2_ref[2 * BB:2 * BB + FhBB, :].astype(bf16), w2_ref[2],
                      preferred_element_type=jnp.float32)
    y2 = jnp.maximum(y2 * prow(ROW_S2, 48) + prow(ROW_T2, 48), 0.0)
    y2 = y2.reshape(L4, 2 * BB, 48)
    p2 = jnp.maximum(y2[:, :BB, :], y2[:, BB:, :])          # (L4, BB, 48)

    # ------------- layer3: Linear(L4*48 + NT -> 128) + BN + ReLU ------------
    # Accumulate over L4 sublane-aligned blocks + filetype rows: no lane concat.
    w3f = p_ref[ROW_W3F:ROW_W3F + NT, :].astype(bf16)       # (NT, 128)
    h = jnp.dot(ft_ref[...].astype(bf16), w3f,
                preferred_element_type=jnp.float32)          # (BB, 128)
    for l in range(L4):
        h = h + jnp.dot(p2[l].astype(bf16), w3c_ref[l],
                        preferred_element_type=jnp.float32)
    h = jnp.maximum(h * prow(ROW_S3, 128) + prow(ROW_T3, 128), 0.0)

    # ------------- layer4: Linear(128 -> 2) + BN + Softmax(dim=1) -----------
    z = jnp.dot(h.astype(bf16), w4_ref[...],
                preferred_element_type=jnp.float32)
    z = z * prow(ROW_S4, 2) + prow(ROW_T4, 2)
    z = z - jnp.max(z, axis=-1, keepdims=True)
    e = jnp.exp(z)
    out_ref[...] = e / jnp.sum(e, axis=-1, keepdims=True)   # exact reciprocal


# --------------------------------------------------------------------------
# One-time parameter prep (off the hot path): BN(eval)+bias folding, weight
# transposes, bf16 casts for MXU operands, packing of the small tensors.
# --------------------------------------------------------------------------
def prepare_params(params, feature_size, filetype_nums):
    p = params
    L4 = feature_size // 4
    NT = filetype_nums

    s1 = p['s1']; t1 = p['bc1'] * p['s1'] + p['h1']
    s2 = p['s2']; t2 = p['bc2'] * p['s2'] + p['h2']
    s3 = p['s3']; t3 = p['b3'] * p['s3'] + p['h3']
    s4 = p['s4']; t4 = p['b4'] * p['s4'] + p['h4']

    # conv1 weight (24,1,3) -> (3,24)         [tap, co]
    w1 = jnp.transpose(p['W1'][:, 0, :], (1, 0))
    # conv2 weight (48,24,3) -> (3,24,48)     [tap, ci, co], bf16 for the MXU
    w2 = jnp.transpose(p['W2'], (2, 1, 0)).astype(jnp.bfloat16)
    # linear3 conv part: torch flatten order is c*L4 + l -> (L4, 48, 128), bf16
    w3c = jnp.transpose(p['W3'][:, :48 * L4].reshape(128, 48, L4),
                        (2, 1, 0)).astype(jnp.bfloat16)
    # linear3 filetype rows (NT, 128) kept f32, packed with the small params
    w3f = jnp.transpose(p['W3'][:, 48 * L4:], (1, 0))
    # linear4 weight (2,128) -> (128,2), bf16
    w4 = jnp.transpose(p['W4'], (1, 0)).astype(jnp.bfloat16)

    n_rows = ROW_W3F + NT
    n_rows_pad = -(-n_rows // 8) * 8
    P = jnp.zeros((n_rows_pad, 128), jnp.float32)

    def put(buf, r, v):
        v = jnp.asarray(v, jnp.float32)
        v = v.reshape(1, -1) if v.ndim == 1 else v.reshape(-1, v.shape[-1])
        return buf.at[r:r + v.shape[0], :v.shape[1]].set(v)

    P = put(P, ROW_W1, w1)
    P = put(P, ROW_S1, s1); P = put(P, ROW_T1, t1)
    P = put(P, ROW_S2, s2); P = put(P, ROW_T2, t2)
    P = put(P, ROW_S3, s3); P = put(P, ROW_T3, t3)
    P = put(P, ROW_S4, s4); P = put(P, ROW_T4, t4)
    P = put(P, ROW_W3F, w3f)
    return dict(P=P, w2=w2, w3c=w3c, w4=w4)


# --------------------------------------------------------------------------
# Forward wrapper: tiny x re-layout + one gridded pallas_call
# --------------------------------------------------------------------------
def char_cnn_forward(x, filetype, prepped, *, block_b=None):
    B, F = x.shape
    NT = filetype.shape[1]
    assert F % 4 == 0, "feature_size must be divisible by 4"
    if block_b is None:
        block_b = B
    assert block_b % 8 == 0 and B % block_b == 0, \
        "batch must be a multiple of block_b, block_b a multiple of 8"
    Fh, L4 = F // 2, F // 4
    n_blocks = B // block_b

    # time-major 3-D layout so the batch axis can be gridded by BlockSpec
    x_t = jnp.transpose(x, (1, 0)).astype(jnp.float32)[:, :, None]   # (F,B,1)
    ft = filetype.astype(jnp.float32)

    P, w2, w3c, w4 = prepped['P'], prepped['w2'], prepped['w3c'], prepped['w4']

    grid_spec = pltpu.PrefetchScalarGridSpec(
        num_scalar_prefetch=0,
        grid=(n_blocks,),
        in_specs=[
            pl.BlockSpec((F, block_b, 1), lambda i: (0, i, 0)),   # x block
            pl.BlockSpec((block_b, NT), lambda i: (i, 0)),        # filetype
            pl.BlockSpec(P.shape, lambda i: (0, 0)),              # packed params
            pl.BlockSpec(w2.shape, lambda i: (0, 0, 0)),          # conv2 weight
            pl.BlockSpec(w3c.shape, lambda i: (0, 0, 0)),         # linear3 weight
            pl.BlockSpec(w4.shape, lambda i: (0, 0)),             # linear4 weight
        ],
        out_specs=pl.BlockSpec((block_b, 2), lambda i: (i, 0)),
        scratch_shapes=[
            pltpu.VMEM(((F + 2) * block_b, 24), jnp.float32),     # padded conv1 in
            pltpu.VMEM(((Fh + 2) * block_b, 24), jnp.float32),    # padded conv2 in
        ],
    )
    return pl.pallas_call(
        char_cnn_kernel,
        out_shape=jax.ShapeDtypeStruct((B, 2), jnp.float32),
        grid_spec=grid_spec,
        compiler_params=pltpu.CompilerParams(
            dimension_semantics=("parallel",)),
    )(x_t, ft, P, w2, w3c, w4)


# --------------------------------------------------------------------------
# Deterministic parameter init (synthetic; mirrors module __init__ shapes)
# --------------------------------------------------------------------------
def init_params(key, filetype_nums, feature_size):
    ks = jax.random.split(key, 12)
    in3 = feature_size // 4 * 48 + filetype_nums

    def bn(k, n):
        k1, k2, k3, k4 = jax.random.split(k, 4)
        gamma = 1.0 + 0.1 * jax.random.normal(k1, (n,))
        beta = 0.1 * jax.random.normal(k2, (n,))
        mean = 0.1 * jax.random.normal(k3, (n,))
        var = 1.0 + 0.1 * jax.random.uniform(k4, (n,))
        scale = gamma / jnp.sqrt(var + 1e-5)
        shift = beta - mean * scale
        return scale, shift

    s1, h1 = bn(ks[8], 24)
    s2, h2 = bn(ks[9], 48)
    s3, h3 = bn(ks[10], 128)
    s4, h4 = bn(ks[11], 2)
    return dict(
        W1=0.3 * jax.random.normal(ks[0], (24, 1, 3)),
        bc1=0.1 * jax.random.normal(ks[1], (24,)),
        W2=jax.random.normal(ks[2], (48, 24, 3)) / np.sqrt(24 * 3),
        bc2=0.1 * jax.random.normal(ks[3], (48,)),
        W3=jax.random.normal(ks[4], (128, in3)) / np.sqrt(in3),
        b3=0.1 * jax.random.normal(ks[5], (128,)),
        W4=jax.random.normal(ks[6], (2, 128)) / np.sqrt(128),
        b4=0.1 * jax.random.normal(ks[7], (2,)),
        s1=s1, h1=h1, s2=s2, h2=h2, s3=s3, h3=h3, s4=s4, h4=h4,
    )


# --------------------------------------------------------------------------
# Pure-JAX reference (PyTorch NCW semantics, eval mode) for verification
# --------------------------------------------------------------------------
def reference_forward(x, ft, p):
    B, F = x.shape
    Fh, L4 = F // 2, F // 4
    xp = jnp.pad(x, ((0, 0), (1, 1)))
    taps1 = jnp.stack([xp[:, k:k + F] for k in range(3)], axis=-1)      # (B,F,3)
    y1 = jnp.einsum('bfk,ck->bcf', taps1, p['W1'][:, 0, :]) + p['bc1'][None, :, None]
    y1 = jnp.maximum(y1 * p['s1'][None, :, None] + p['h1'][None, :, None], 0)
    y1 = jnp.max(y1.reshape(B, 24, Fh, 2), axis=-1)
    y1p = jnp.pad(y1, ((0, 0), (0, 0), (1, 1)))
    taps2 = jnp.stack([y1p[:, :, k:k + Fh] for k in range(3)], axis=-1)  # (B,24,Fh,3)
    y2 = jnp.einsum('bifk,oik->bof', taps2, p['W2']) + p['bc2'][None, :, None]
    y2 = jnp.maximum(y2 * p['s2'][None, :, None] + p['h2'][None, :, None], 0)
    y2 = jnp.max(y2.reshape(B, 48, L4, 2), axis=-1)
    flat = y2.reshape(B, 48 * L4)
    z = jnp.concatenate([flat, ft], axis=1)
    h = z @ p['W3'].T + p['b3']
    h = jnp.maximum(h * p['s3'] + p['h3'], 0)
    o = (h @ p['W4'].T + p['b4']) * p['s4'] + p['h4']
    return jax.nn.softmax(o, axis=1)


if __name__ == "__main__":
    B = 32                # total batch
    BLOCK_B = 16          # rows per grid step (multiple of 8) -> 2 grid steps
    FEATURE_SIZE = 32     # must be divisible by 4
    FILETYPE_NUMS = 4

    key = jax.random.PRNGKey(0)
    kx, kf, kp = jax.random.split(key, 3)
    x = jax.random.normal(kx, (B, FEATURE_SIZE), dtype=jnp.float32)
    ft_idx = jax.random.randint(kf, (B,), 0, FILETYPE_NUMS)
    filetype = jax.nn.one_hot(ft_idx, FILETYPE_NUMS, dtype=jnp.float32)

    params = init_params(kp, FILETYPE_NUMS, FEATURE_SIZE)
    prepped = prepare_params(params, FEATURE_SIZE, FILETYPE_NUMS)   # one-time prep

    @jax.jit
    def fwd(xx, ff, pp):
        return char_cnn_forward(xx, ff, pp, block_b=BLOCK_B)

    out = jax.block_until_ready(fwd(x, filetype, prepped))
    ref = jax.block_until_ready(reference_forward(x, filetype, params))
    assert out.shape == (B, 2)
    # bf16 MXU operands introduce ~1e-3-level error; 5e-3 is still a meaningful
    # check for class probabilities in [0, 1].
    np.testing.assert_allclose(np.asarray(out), np.asarray(ref),
                               rtol=5e-3, atol=5e-3)
    print("KERNEL_OK")
</pallas_src>

<mosaic_0001>
module attributes {stable_mosaic.version = 11 : i64} {
  func.func @char_cnn_kernel(%arg0: i32, %arg1: memref<32x16x1xf32, #tpu.memory_space<vmem>>, %arg2: memref<16x4xf32, #tpu.memory_space<vmem>>, %arg3: memref<16x128xf32, #tpu.memory_space<vmem>>, %arg4: memref<3x24x48xbf16, #tpu.memory_space<vmem>>, %arg5: memref<8x48x128xbf16, #tpu.memory_space<vmem>>, %arg6: memref<128x2xbf16, #tpu.memory_space<vmem>>, %arg7: memref<16x2xf32, #tpu.memory_space<vmem>>, %arg8: memref<544x24xf32, #tpu.memory_space<vmem>>, %arg9: memref<288x24xf32, #tpu.memory_space<vmem>>) attributes {dimension_semantics = [#tpu.dimension_semantics<parallel>], iteration_bounds = array<i64: 2>, scalar_prefetch = 0 : i64, scratch_operands = 2 : i64, tpu.core_type = #tpu.core_type<tc>, window_params = [{transform_indices = @transform_0, window_bounds = array<i64: 32, 16, 1>}, {transform_indices = @transform_1, window_bounds = array<i64: 16, 4>}, {pipeline_mode = #tpu.pipeline_mode<synchronous>, transform_indices = @transform_2, window_bounds = array<i64: 16, 128>}, {pipeline_mode = #tpu.pipeline_mode<synchronous>, transform_indices = @transform_3, window_bounds = array<i64: 3, 24, 48>}, {pipeline_mode = #tpu.pipeline_mode<synchronous>, transform_indices = @transform_4, window_bounds = array<i64: 8, 48, 128>}, {pipeline_mode = #tpu.pipeline_mode<synchronous>, transform_indices = @transform_5, window_bounds = array<i64: 128, 2>}, {transform_indices = @transform_6, window_bounds = array<i64: 16, 2>}]} {
    %cst = arith.constant 0.000000e+00 : f32
    %0 = vector.broadcast %cst : f32 to vector<16x24xf32>
    %c0 = arith.constant 0 : index
    %c0_0 = arith.constant 0 : index
    %1 = vector.load %arg8[%c0, %c0_0] : memref<544x24xf32, #tpu.memory_space<vmem>>, vector<16x24xf32>
    tpu.vector_store %arg8[%c0, %c0_0], %0 {strides = array<i32>} : memref<544x24xf32, #tpu.memory_space<vmem>>, vector<16x24xf32>,
    %c0_1 = arith.constant 0 : index
    %c0_2 = arith.constant 0 : index
    %c0_3 = arith.constant 0 : index
    %2 = vector.load %arg1[%c0_1, %c0_2, %c0_3] : memref<32x16x1xf32, #tpu.memory_space<vmem>>, vector<32x16x1xf32>
    %3 = vector.shape_cast %2 : vector<32x16x1xf32> to vector<32x16x1xf32>
    %4 = vector.broadcast %3 : vector<32x16x1xf32> to vector<32x16x24xf32>
    %5 = vector.shape_cast %4 : vector<32x16x24xf32> to vector<512x24xf32>
    %c16 = arith.constant 16 : index
    %c0_4 = arith.constant 0 : index
    %6 = vector.load %arg8[%c16, %c0_4] : memref<544x24xf32, #tpu.memory_space<vmem>>, vector<512x24xf32>
    tpu.vector_store %arg8[%c16, %c0_4], %5 {strides = array<i32>} : memref<544x24xf32, #tpu.memory_space<vmem>>, vector<512x24xf32>,
    %cst_5 = arith.constant 0.000000e+00 : f32
    %7 = vector.broadcast %cst_5 : f32 to vector<16x24xf32>
    %c528 = arith.constant 528 : index
    %c0_6 = arith.constant 0 : index
    %8 = vector.load %arg8[%c528, %c0_6] : memref<544x24xf32, #tpu.memory_space<vmem>>, vector<16x24xf32>
    tpu.vector_store %arg8[%c528, %c0_6], %7 {strides = array<i32>} : memref<544x24xf32, #tpu.memory_space<vmem>>, vector<16x24xf32>,
    %c0_7 = arith.constant 0 : index
    %c0_8 = arith.constant 0 : index
    %9 = vector.load %arg8[%c0_7, %c0_8] : memref<544x24xf32, #tpu.memory_space<vmem>>, vector<512x24xf32>
    %c0_9 = arith.constant 0 : index
    %c0_10 = arith.constant 0 : index
    %10 = vector.load %arg3[%c0_9, %c0_10] : memref<16x128xf32, #tpu.memory_space<vmem>>, vector<1x24xf32>
    %11 = vector.broadcast %10 : vector<1x24xf32> to vector<512x24xf32>
    %12 = arith.mulf %9, %11 : vector<512x24xf32>
    %c16_11 = arith.constant 16 : index
    %c0_12 = arith.constant 0 : index
    %13 = vector.load %arg8[%c16_11, %c0_12] : memref<544x24xf32, #tpu.memory_space<vmem>>, vector<512x24xf32>
    %c1 = arith.constant 1 : index
    %c0_13 = arith.constant 0 : index
    %14 = vector.load %arg3[%c1, %c0_13] : memref<16x128xf32, #tpu.memory_space<vmem>>, vector<1x24xf32>
    %15 = vector.broadcast %14 : vector<1x24xf32> to vector<512x24xf32>
    %16 = arith.mulf %13, %15 : vector<512x24xf32>
    %17 = arith.addf %12, %16 : vector<512x24xf32>
    %c32 = arith.constant 32 : index
    %c0_14 = arith.constant 0 : index
    %18 = vector.load %arg8[%c32, %c0_14] : memref<544x24xf32, #tpu.memory_space<vmem>>, vector<512x24xf32>
    %c2 = arith.constant 2 : index
    %c0_15 = arith.constant 0 : index
    %19 = vector.load %arg3[%c2, %c0_15] : memref<16x128xf32, #tpu.memory_space<vmem>>, vector<1x24xf32>
    %20 = vector.broadcast %19 : vector<1x24xf32> to vector<512x24xf32>
    %21 = arith.mulf %18, %20 : vector<512x24xf32>
    %22 = arith.addf %17, %21 : vector<512x24xf32>
    %c3 = arith.constant 3 : index
    %c0_16 = arith.constant 0 : index
    %23 = vector.load %arg3[%c3, %c0_16] : memref<16x128xf32, #tpu.memory_space<vmem>>, vector<1x24xf32>
    %24 = vector.broadcast %23 : vector<1x24xf32> to vector<512x24xf32>
    %25 = arith.mulf %22, %24 : vector<512x24xf32>
    %c4 = arith.constant 4 : index
    %c0_17 = arith.constant 0 : index
    %26 = vector.load %arg3[%c4, %c0_17] : memref<16x128xf32, #tpu.memory_space<vmem>>, vector<1x24xf32>
    %27 = vector.broadcast %26 : vector<1x24xf32> to vector<512x24xf32>
    %28 = arith.addf %25, %27 : vector<512x24xf32>
    %cst_18 = arith.constant 0.000000e+00 : f32
    %29 = vector.broadcast %cst_18 : f32 to vector<512x24xf32>
    %30 = arith.maximumf %28, %29 : vector<512x24xf32>
    %31 = vector.shape_cast %30 : vector<512x24xf32> to vector<16x32x24xf32>
    %cst_19 = arith.constant 0.000000e+00 : f32
    %32 = vector.broadcast %cst_19 : f32 to vector<16x24xf32>
    %c0_20 = arith.constant 0 : index
    %c0_21 = arith.constant 0 : index
    %33 = vector.load %arg9[%c0_20, %c0_21] : memref<288x24xf32, #tpu.memory_space<vmem>>, vector<16x24xf32>
    tpu.vector_store %arg9[%c0_20, %c0_21], %32 {strides = array<i32>} : memref<288x24xf32, #tpu.memory_space<vmem>>, vector<16x24xf32>,
    %34 = vector.extract_strided_slice %31 {offsets = [0, 0, 0], sizes = [16, 16, 24], strides = [1, 1, 1]} : vector<16x32x24xf32> to vector<16x16x24xf32>
    %35 = vector.extract_strided_slice %31 {offsets = [0, 16, 0], sizes = [16, 16, 24], strides = [1, 1, 1]} : vector<16x32x24xf32> to vector<16x16x24xf32>
    %36 = arith.maximumf %34, %35 : vector<16x16x24xf32>
    %37 = vector.shape_cast %36 : vector<16x16x24xf32> to vector<256x24xf32>
    %c16_22 = arith.constant 16 : index
    %c0_23 = arith.constant 0 : index
    %38 = vector.load %arg9[%c16_22, %c0_23] : memref<288x24xf32, #tpu.memory_space<vmem>>, vector<256x24xf32>
    tpu.vector_store %arg9[%c16_22, %c0_23], %37 {strides = array<i32>} : memref<288x24xf32, #tpu.memory_space<vmem>>, vector<256x24xf32>,
    %cst_24 = arith.constant 0.000000e+00 : f32
    %39 = vector.broadcast %cst_24 : f32 to vector<16x24xf32>
    %c272 = arith.constant 272 : index
    %c0_25 = arith.constant 0 : index
    %40 = vector.load %arg9[%c272, %c0_25] : memref<288x24xf32, #tpu.memory_space<vmem>>, vector<16x24xf32>
    tpu.vector_store %arg9[%c272, %c0_25], %39 {strides = array<i32>} : memref<288x24xf32, #tpu.memory_space<vmem>>, vector<16x24xf32>,
    %c0_26 = arith.constant 0 : index
    %c0_27 = arith.constant 0 : index
    %41 = vector.load %arg9[%c0_26, %c0_27] : memref<288x24xf32, #tpu.memory_space<vmem>>, vector<256x24xf32>
    %42 = arith.truncf %41 : vector<256x24xf32> to vector<256x24xbf16>
    %c0_28 = arith.constant 0 : index
    %c0_29 = arith.constant 0 : index
    %c0_30 = arith.constant 0 : index
    %43 = vector.load %arg4[%c0_28, %c0_29, %c0_30] : memref<3x24x48xbf16, #tpu.memory_space<vmem>>, vector<1x24x48xbf16>
    %44 = vector.shape_cast %43 : vector<1x24x48xbf16> to vector<24x48xbf16>
    %cst_31 = arith.constant dense<0.000000e+00> : vector<256x48xf32>
    %45 = tpu.matmul %42, %44, %cst_31 {dimension_numbers = #tpu.dot_dimension_numbers<[1], [0], [0], [1], [0, 0, 1, 1], [], []>} : vector<256x24xbf16>, vector<24x48xbf16>, vector<256x48xf32> -> vector<256x48xf32>
    %c16_32 = arith.constant 16 : index
    %c0_33 = arith.constant 0 : index
    %46 = vector.load %arg9[%c16_32, %c0_33] : memref<288x24xf32, #tpu.memory_space<vmem>>, vector<256x24xf32>
    %47 = arith.truncf %46 : vector<256x24xf32> to vector<256x24xbf16>
    %c1_34 = arith.constant 1 : index
    %c0_35 = arith.constant 0 : index
    %c0_36 = arith.constant 0 : index
    %48 = vector.load %arg4[%c1_34, %c0_35, %c0_36] : memref<3x24x48xbf16, #tpu.memory_space<vmem>>, vector<1x24x48xbf16>
    %49 = vector.shape_cast %48 : vector<1x24x48xbf16> to vector<24x48xbf16>
    %cst_37 = arith.constant dense<0.000000e+00> : vector<256x48xf32>
    %50 = tpu.matmul %47, %49, %cst_37 {dimension_numbers = #tpu.dot_dimension_numbers<[1], [0], [0], [1], [0, 0, 1, 1], [], []>} : vector<256x24xbf16>, vector<24x48xbf16>, vector<256x48xf32> -> vector<256x48xf32>
    %51 = arith.addf %45, %50 : vector<256x48xf32>
    %c32_38 = arith.constant 32 : index
    %c0_39 = arith.constant 0 : index
    %52 = vector.load %arg9[%c32_38, %c0_39] : memref<288x24xf32, #tpu.memory_space<vmem>>, vector<256x24xf32>
    %53 = arith.truncf %52 : vector<256x24xf32> to vector<256x24xbf16>
    %c2_40 = arith.constant 2 : index
    %c0_41 = arith.constant 0 : index
    %c0_42 = arith.constant 0 : index
    %54 = vector.load %arg4[%c2_40, %c0_41, %c0_42] : memref<3x24x48xbf16, #tpu.memory_space<vmem>>, vector<1x24x48xbf16>
    %55 = vector.shape_cast %54 : vector<1x24x48xbf16> to vector<24x48xbf16>
    %cst_43 = arith.constant dense<0.000000e+00> : vector<256x48xf32>
    %56 = tpu.matmul %53, %55, %cst_43 {dimension_numbers = #tpu.dot_dimension_numbers<[1], [0], [0], [1], [0, 0, 1, 1], [], []>} : vector<256x24xbf16>, vector<24x48xbf16>, vector<256x48xf32> -> vector<256x48xf32>
    %57 = arith.addf %51, %56 : vector<256x48xf32>
    %c5 = arith.constant 5 : index
    %c0_44 = arith.constant 0 : index
    %58 = vector.load %arg3[%c5, %c0_44] : memref<16x128xf32, #tpu.memory_space<vmem>>, vector<1x48xf32>
    %59 = vector.broadcast %58 : vector<1x48xf32> to vector<256x48xf32>
    %60 = arith.mulf %57, %59 : vector<256x48xf32>
    %c6 = arith.constant 6 : index
    %c0_45 = arith.constant 0 : index
    %61 = vector.load %arg3[%c6, %c0_45] : memref<16x128xf32, #tpu.memory_space<vmem>>, vector<1x48xf32>
    %62 = vector.broadcast %61 : vector<1x48xf32> to vector<256x48xf32>
    %63 = arith.addf %60, %62 : vector<256x48xf32>
    %cst_46 = arith.constant 0.000000e+00 : f32
    %64 = vector.broadcast %cst_46 : f32 to vector<256x48xf32>
    %65 = arith.maximumf %63, %64 : vector<256x48xf32>
    %66 = vector.shape_cast %65 : vector<256x48xf32> to vector<8x32x48xf32>
    %67 = vector.extract_strided_slice %66 {offsets = [0, 0, 0], sizes = [8, 16, 48], strides = [1, 1, 1]} : vector<8x32x48xf32> to vector<8x16x48xf32>
    %68 = vector.extract_strided_slice %66 {offsets = [0, 16, 0], sizes = [8, 16, 48], strides = [1, 1, 1]} : vector<8x32x48xf32> to vector<8x16x48xf32>
    %69 = arith.maximumf %67, %68 : vector<8x16x48xf32>
    %c11 = arith.constant 11 : index
    %c0_47 = arith.constant 0 : index
    %70 = vector.load %arg3[%c11, %c0_47] : memref<16x128xf32, #tpu.memory_space<vmem>>, vector<4x128xf32>
    %71 = arith.truncf %70 : vector<4x128xf32> to vector<4x128xbf16>
    %c0_48 = arith.constant 0 : index
    %c0_49 = arith.constant 0 : index
    %72 = vector.load %arg2[%c0_48, %c0_49] : memref<16x4xf32, #tpu.memory_space<vmem>>, vector<16x4xf32>
    %73 = arith.truncf %72 : vector<16x4xf32> to vector<16x4xbf16>
    %cst_50 = arith.constant dense<0.000000e+00> : vector<16x128xf32>
    %74 = tpu.matmul %73, %71, %cst_50 {dimension_numbers = #tpu.dot_dimension_numbers<[1], [0], [0], [1], [0, 0, 1, 1], [], []>} : vector<16x4xbf16>, vector<4x128xbf16>, vector<16x128xf32> -> vector<16x128xf32>
    %75 = vector.extract_strided_slice %69 {offsets = [0, 0, 0], sizes = [1, 16, 48], strides = [1, 1, 1]} : vector<8x16x48xf32> to vector<1x16x48xf32>
    %76 = vector.shape_cast %75 : vector<1x16x48xf32> to vector<16x48xf32>
    %77 = arith.truncf %76 : vector<16x48xf32> to vector<16x48xbf16>
    %c0_51 = arith.constant 0 : index
    %c0_52 = arith.constant 0 : index
    %c0_53 = arith.constant 0 : index
    %78 = vector.load %arg5[%c0_51, %c0_52, %c0_53] : memref<8x48x128xbf16, #tpu.memory_space<vmem>>, vector<1x48x128xbf16>
    %79 = vector.shape_cast %78 : vector<1x48x128xbf16> to vector<48x128xbf16>
    %cst_54 = arith.constant dense<0.000000e+00> : vector<16x128xf32>
    %80 = tpu.matmul %77, %79, %cst_54 {dimension_numbers = #tpu.dot_dimension_numbers<[1], [0], [0], [1], [0, 0, 1, 1], [], []>} : vector<16x48xbf16>, vector<48x128xbf16>, vector<16x128xf32> -> vector<16x128xf32>
    %81 = arith.addf %74, %80 : vector<16x128xf32>
    %82 = vector.extract_strided_slice %69 {offsets = [1, 0, 0], sizes = [1, 16, 48], strides = [1, 1, 1]} : vector<8x16x48xf32> to vector<1x16x48xf32>
    %83 = vector.shape_cast %82 : vector<1x16x48xf32> to vector<16x48xf32>
    %84 = arith.truncf %83 : vector<16x48xf32> to vector<16x48xbf16>
    %c1_55 = arith.constant 1 : index
    %c0_56 = arith.constant 0 : index
    %c0_57 = arith.constant 0 : index
    %85 = vector.load %arg5[%c1_55, %c0_56, %c0_57] : memref<8x48x128xbf16, #tpu.memory_space<vmem>>, vector<1x48x128xbf16>
    %86 = vector.shape_cast %85 : vector<1x48x128xbf16> to vector<48x128xbf16>
    %cst_58 = arith.constant dense<0.000000e+00> : vector<16x128xf32>
    %87 = tpu.matmul %84, %86, %cst_58 {dimension_numbers = #tpu.dot_dimension_numbers<[1], [0], [0], [1], [0, 0, 1, 1], [], []>} : vector<16x48xbf16>, vector<48x128xbf16>, vector<16x128xf32> -> vector<16x128xf32>
    %88 = arith.addf %81, %87 : vector<16x128xf32>
    %89 = vector.extract_strided_slice %69 {offsets = [2, 0, 0], sizes = [1, 16, 48], strides = [1, 1, 1]} : vector<8x16x48xf32> to vector<1x16x48xf32>
    %90 = vector.shape_cast %89 : vector<1x16x48xf32> to vector<16x48xf32>
    %91 = arith.truncf %90 : vector<16x48xf32> to vector<16x48xbf16>
    %c2_59 = arith.constant 2 : index
    %c0_60 = arith.constant 0 : index
    %c0_61 = arith.constant 0 : index
    %92 = vector.load %arg5[%c2_59, %c0_60, %c0_61] : memref<8x48x128xbf16, #tpu.memory_space<vmem>>, vector<1x48x128xbf16>
    %93 = vector.shape_cast %92 : vector<1x48x128xbf16> to vector<48x128xbf16>
    %cst_62 = arith.constant dense<0.000000e+00> : vector<16x128xf32>
    %94 = tpu.matmul %91, %93, %cst_62 {dimension_numbers = #tpu.dot_dimension_numbers<[1], [0], [0], [1], [0, 0, 1, 1], [], []>} : vector<16x48xbf16>, vector<48x128xbf16>, vector<16x128xf32> -> vector<16x128xf32>
    %95 = arith.addf %88, %94 : vector<16x128xf32>
    %96 = vector.extract_strided_slice %69 {offsets = [3, 0, 0], sizes = [1, 16, 48], strides = [1, 1, 1]} : vector<8x16x48xf32> to vector<1x16x48xf32>
    %97 = vector.shape_cast %96 : vector<1x16x48xf32> to vector<16x48xf32>
    %98 = arith.truncf %97 : vector<16x48xf32> to vector<16x48xbf16>
    %c3_63 = arith.constant 3 : index
    %c0_64 = arith.constant 0 : index
    %c0_65 = arith.constant 0 : index
    %99 = vector.load %arg5[%c3_63, %c0_64, %c0_65] : memref<8x48x128xbf16, #tpu.memory_space<vmem>>, vector<1x48x128xbf16>
    %100 = vector.shape_cast %99 : vector<1x48x128xbf16> to vector<48x128xbf16>
    %cst_66 = arith.constant dense<0.000000e+00> : vector<16x128xf32>
    %101 = tpu.matmul %98, %100, %cst_66 {dimension_numbers = #tpu.dot_dimension_numbers<[1], [0], [0], [1], [0, 0, 1, 1], [], []>} : vector<16x48xbf16>, vector<48x128xbf16>, vector<16x128xf32> -> vector<16x128xf32>
    %102 = arith.addf %95, %101 : vector<16x128xf32>
    %103 = vector.extract_strided_slice %69 {offsets = [4, 0, 0], sizes = [1, 16, 48], strides = [1, 1, 1]} : vector<8x16x48xf32> to vector<1x16x48xf32>
    %104 = vector.shape_cast %103 : vector<1x16x48xf32> to vector<16x48xf32>
    %105 = arith.truncf %104 : vector<16x48xf32> to vector<16x48xbf16>
    %c4_67 = arith.constant 4 : index
    %c0_68 = arith.constant 0 : index
    %c0_69 = arith.constant 0 : index
    %106 = vector.load %arg5[%c4_67, %c0_68, %c0_69] : memref<8x48x128xbf16, #tpu.memory_space<vmem>>, vector<1x48x128xbf16>
    %107 = vector.shape_cast %106 : vector<1x48x128xbf16> to vector<48x128xbf16>
    %cst_70 = arith.constant dense<0.000000e+00> : vector<16x128xf32>
    %108 = tpu.matmul %105, %107, %cst_70 {dimension_numbers = #tpu.dot_dimension_numbers<[1], [0], [0], [1], [0, 0, 1, 1], [], []>} : vector<16x48xbf16>, vector<48x128xbf16>, vector<16x128xf32> -> vector<16x128xf32>
    %109 = arith.addf %102, %108 : vector<16x128xf32>
    %110 = vector.extract_strided_slice %69 {offsets = [5, 0, 0], sizes = [1, 16, 48], strides = [1, 1, 1]} : vector<8x16x48xf32> to vector<1x16x48xf32>
    %111 = vector.shape_cast %110 : vector<1x16x48xf32> to vector<16x48xf32>
    %112 = arith.truncf %111 : vector<16x48xf32> to vector<16x48xbf16>
    %c5_71 = arith.constant 5 : index
    %c0_72 = arith.constant 0 : index
    %c0_73 = arith.constant 0 : index
    %113 = vector.load %arg5[%c5_71, %c0_72, %c0_73] : memref<8x48x128xbf16, #tpu.memory_space<vmem>>, vector<1x48x128xbf16>
    %114 = vector.shape_cast %113 : vector<1x48x128xbf16> to vector<48x128xbf16>
    %cst_74 = arith.constant dense<0.000000e+00> : vector<16x128xf32>
    %115 = tpu.matmul %112, %114, %cst_74 {dimension_numbers = #tpu.dot_dimension_numbers<[1], [0], [0], [1], [0, 0, 1, 1], [], []>} : vector<16x48xbf16>, vector<48x128xbf16>, vector<16x128xf32> -> vector<16x128xf32>
    %116 = arith.addf %109, %115 : vector<16x128xf32>
    %117 = vector.extract_strided_slice %69 {offsets = [6, 0, 0], sizes = [1, 16, 48], strides = [1, 1, 1]} : vector<8x16x48xf32> to vector<1x16x48xf32>
    %118 = vector.shape_cast %117 : vector<1x16x48xf32> to vector<16x48xf32>
    %119 = arith.truncf %118 : vector<16x48xf32> to vector<16x48xbf16>
    %c6_75 = arith.constant 6 : index
    %c0_76 = arith.constant 0 : index
    %c0_77 = arith.constant 0 : index
    %120 = vector.load %arg5[%c6_75, %c0_76, %c0_77] : memref<8x48x128xbf16, #tpu.memory_space<vmem>>, vector<1x48x128xbf16>
    %121 = vector.shape_cast %120 : vector<1x48x128xbf16> to vector<48x128xbf16>
    %cst_78 = arith.constant dense<0.000000e+00> : vector<16x128xf32>
    %122 = tpu.matmul %119, %121, %cst_78 {dimension_numbers = #tpu.dot_dimension_numbers<[1], [0], [0], [1], [0, 0, 1, 1], [], []>} : vector<16x48xbf16>, vector<48x128xbf16>, vector<16x128xf32> -> vector<16x128xf32>
    %123 = arith.addf %116, %122 : vector<16x128xf32>
    %124 = vector.extract_strided_slice %69 {offsets = [7, 0, 0], sizes = [1, 16, 48], strides = [1, 1, 1]} : vector<8x16x48xf32> to vector<1x16x48xf32>
    %125 = vector.shape_cast %124 : vector<1x16x48xf32> to vector<16x48xf32>
    %126 = arith.truncf %125 : vector<16x48xf32> to vector<16x48xbf16>
    %c7 = arith.constant 7 : index
    %c0_79 = arith.constant 0 : index
    %c0_80 = arith.constant 0 : index
    %127 = vector.load %arg5[%c7, %c0_79, %c0_80] : memref<8x48x128xbf16, #tpu.memory_space<vmem>>, vector<1x48x128xbf16>
    %128 = vector.shape_cast %127 : vector<1x48x128xbf16> to vector<48x128xbf16>
    %cst_81 = arith.constant dense<0.000000e+00> : vector<16x128xf32>
    %129 = tpu.matmul %126, %128, %cst_81 {dimension_numbers = #tpu.dot_dimension_numbers<[1], [0], [0], [1], [0, 0, 1, 1], [], []>} : vector<16x48xbf16>, vector<48x128xbf16>, vector<16x128xf32> -> vector<16x128xf32>
    %130 = arith.addf %123, %129 : vector<16x128xf32>
    %c7_82 = arith.constant 7 : index
    %c0_83 = arith.constant 0 : index
    %131 = vector.load %arg3[%c7_82, %c0_83] : memref<16x128xf32, #tpu.memory_space<vmem>>, vector<1x128xf32>
    %132 = vector.broadcast %131 : vector<1x128xf32> to vector<16x128xf32>
    %133 = arith.mulf %130, %132 : vector<16x128xf32>
    %c8 = arith.constant 8 : index
    %c0_84 = arith.constant 0 : index
    %134 = vector.load %arg3[%c8, %c0_84] : memref<16x128xf32, #tpu.memory_space<vmem>>, vector<1x128xf32>
    %135 = vector.broadcast %134 : vector<1x128xf32> to vector<16x128xf32>
    %136 = arith.addf %133, %135 : vector<16x128xf32>
    %cst_85 = arith.constant 0.000000e+00 : f32
    %137 = vector.broadcast %cst_85 : f32 to vector<16x128xf32>
    %138 = arith.maximumf %136, %137 : vector<16x128xf32>
    %139 = arith.truncf %138 : vector<16x128xf32> to vector<16x128xbf16>
    %c0_86 = arith.constant 0 : index
    %c0_87 = arith.constant 0 : index
    %140 = vector.load %arg6[%c0_86, %c0_87] : memref<128x2xbf16, #tpu.memory_space<vmem>>, vector<128x2xbf16>
    %cst_88 = arith.constant dense<0.000000e+00> : vector<16x2xf32>
    %141 = tpu.matmul %139, %140, %cst_88 {dimension_numbers = #tpu.dot_dimension_numbers<[1], [0], [0], [1], [0, 0, 1, 1], [], []>} : vector<16x128xbf16>, vector<128x2xbf16>, vector<16x2xf32> -> vector<16x2xf32>
    %c9 = arith.constant 9 : index
    %c0_89 = arith.constant 0 : index
    %142 = vector.load %arg3[%c9, %c0_89] : memref<16x128xf32, #tpu.memory_space<vmem>>, vector<1x2xf32>
    %143 = vector.broadcast %142 : vector<1x2xf32> to vector<16x2xf32>
    %144 = arith.mulf %141, %143 : vector<16x2xf32>
    %c10 = arith.constant 10 : index
    %c0_90 = arith.constant 0 : index
    %145 = vector.load %arg3[%c10, %c0_90] : memref<16x128xf32, #tpu.memory_space<vmem>>, vector<1x2xf32>
    %146 = vector.broadcast %145 : vector<1x2xf32> to vector<16x2xf32>
    %147 = arith.addf %144, %146 : vector<16x2xf32>
    %cst_91 = arith.constant dense<0xFF800000> : vector<16xf32>
    %148 = vector.multi_reduction <maximumf>, %147, %cst_91 [1] : vector<16x2xf32> to vector<16xf32>
    %149 = vector.shape_cast %148 : vector<16xf32> to vector<16x1xf32>
    %150 = vector.broadcast %149 : vector<16x1xf32> to vector<16x2xf32>
    %151 = arith.subf %147, %150 : vector<16x2xf32>
    %152 = math.exp %151 : vector<16x2xf32>
    %cst_92 = arith.constant dense<0.000000e+00> : vector<16xf32>
    %153 = vector.multi_reduction <add>, %152, %cst_92 [1] : vector<16x2xf32> to vector<16xf32>
    %154 = vector.shape_cast %153 : vector<16xf32> to vector<16x1xf32>
    %155 = vector.broadcast %154 : vector<16x1xf32> to vector<16x2xf32>
    %156 = arith.divf %152, %155 : vector<16x2xf32>
    %c0_93 = arith.constant 0 : index
    %c0_94 = arith.constant 0 : index
    %157 = vector.load %arg7[%c0_93, %c0_94] : memref<16x2xf32, #tpu.memory_space<vmem>>, vector<16x2xf32>
    tpu.vector_store %arg7[%c0_93, %c0_94], %156 {strides = array<i32>} : memref<16x2xf32, #tpu.memory_space<vmem>>, vector<16x2xf32>,
    return
  }
  func.func @transform_0(%arg0: i32) -> (i32, i32, i32) {
    %c0_i32 = arith.constant 0 : i32
    %c0_i32_0 = arith.constant 0 : i32
    %c0_i32_1 = arith.constant 0 : i32
    return %c0_i32, %arg0, %c0_i32_0 : i32, i32, i32
  }
  func.func @transform_1(%arg0: i32) -> (i32, i32) {
    %c0_i32 = arith.constant 0 : i32
    %c0_i32_0 = arith.constant 0 : i32
    return %arg0, %c0_i32 : i32, i32
  }
  func.func @transform_2(%arg0: i32) -> (i32, i32) {
    %c0_i32 = arith.constant 0 : i32
    %c0_i32_0 = arith.constant 0 : i32
    %c0_i32_1 = arith.constant 0 : i32
    return %c0_i32, %c0_i32_0 : i32, i32
  }
  func.func @transform_3(%arg0: i32) -> (i32, i32, i32) {
    %c0_i32 = arith.constant 0 : i32
    %c0_i32_0 = arith.constant 0 : i32
    %c0_i32_1 = arith.constant 0 : i32
    %c0_i32_2 = arith.constant 0 : i32
    return %c0_i32, %c0_i32_0, %c0_i32_1 : i32, i32, i32
  }
  func.func @transform_4(%arg0: i32) -> (i32, i32, i32) {
    %c0_i32 = arith.constant 0 : i32
    %c0_i32_0 = arith.constant 0 : i32
    %c0_i32_1 = arith.constant 0 : i32
    %c0_i32_2 = arith.constant 0 : i32
    return %c0_i32, %c0_i32_0, %c0_i32_1 : i32, i32, i32
  }
  func.func @transform_5(%arg0: i32) -> (i32, i32) {
    %c0_i32 = arith.constant 0 : i32
    %c0_i32_0 = arith.constant 0 : i32
    %c0_i32_1 = arith.constant 0 : i32
    return %c0_i32, %c0_i32_0 : i32, i32
  }
  func.func @transform_6(%arg0: i32) -> (i32, i32) {
    %c0_i32 = arith.constant 0 : i32
    %c0_i32_0 = arith.constant 0 : i32
    return %arg0, %c0_i32 : i32, i32
  }
}

</mosaic_0001>

<bundles_post_ra>
// kernel: fwd.1
= control target key start
LH: loop header
LB: loop body
LE: loop exit
PB: predicated region body
PF: predicated region fallthrough
CT: control target
= control target key end

     0   :  { %s4163_s21 = smov 0   ;;  %s4165_s22 = smov 0   ;;  %s5648_s0 = inlined_call_operand.vmem [shape: f32[32,32,1], index: 0, kind: input, shape index: {}]   ;;  %s5649_s1 = inlined_call_operand.vmem [shape: f32[32,4], index: 1, kind: input, shape index: {}]   ;;  %s5650_s2 = inlined_call_operand.vmem [shape: f32[16,128], index: 2, kind: input, shape index: {}]   ;;  %s5651_s3 = inlined_call_operand.vmem [shape: bf16[3,24,48], index: 3, kind: input, shape index: {}]   ;;  %s5652_s4 = inlined_call_operand.vmem [shape: bf16[8,48,128], index: 4, kind: input, shape index: {}]   ;;  %s5653_s5 = inlined_call_operand.vmem [shape: bf16[128,2], index: 5, kind: input, shape index: {}]   ;;  %s5654_s6 = inlined_call_operand.vmem [shape: f32[32,2], index: 6, kind: output, shape index: {}]  }
   0x1   :  { %s4167_s23 = smov 0  }
   0x2 LB: > { %s3436_s24 = sadd.s32 4294967295, %s4123_s23   ;;  %s4180_s25 = sadd.s32 1, %s4123_s23   ;;  %s4123_s23 = sphi %s4167_s23, %s5664_s23   ;;  %s4119_s22 = sphi %s4165_s22, %s5663_s22   ;;  %s4115_s21 = sphi %s4163_s21, %s5662_s21  }
   0x3   : > { %s20_s26 = ssub.s32 %s4123_s23, %s4180_s25  ;;  %s23_s27 = sadd.s32 1, %s4119_s22 }
   0x4   : > { %p21_p0 = scmp.eq.s32.totalorder %s20_s26, 0  ;;  %p30_p1 = scmp.ne.s32.totalorder %s4119_s22, %s4115_s21 }
   0x5   : > { %p31_p2 = scmp.eq.s32.totalorder %s4123_s23, 0  ;;  %p3439_p4 = scmp.ge.s32.totalorder %s4123_s23, 2 }
   0x6   : > { %s4189_s28 = scalar_select %p21_p0, %s4119_s22, %s23_s27  }
   0x7   : > { %p32_p3 = por %p31_p2, %p30_p1  ;;  %204 = sbr.rel (%p3439_p4) target bundleno = 50 (0x32), region = 32 }
   0xe   : > { %207 = sbr.rel (!%p32_p3) target bundleno = 50 (0x32), region = 36  ;;  %s209_s29 = sand.u32 (%p32_p3), 1, %s4119_s22  }
   0xf   : > { %s3605_s30 = sshll.u32 (%p32_p3), %s4123_s23, 4  ;;  %s3440_s7 = sshll.u32 (%p32_p3), %s209_s29, 9 }
  0x10   : > { %s4197_s10 = scalar_lea.vmem (%p32_p3), %s5648_s0, %s3605_s30  ;;  %s4202_s11 = scalar_lea.vmem (%p32_p3), [#allocation4], %s3440_s7 }
  0x11   : > { %v368_v0 = vld [vmem:[%s4197_s10] sm:$0xff] (%p32_p3)  ;;  %v370_v1 = vld [vmem:[%s4197_s10 + $0x8] sm:$0xff] (%p32_p3) }
  0x12   : > { %v372_v2 = vld [vmem:[%s4197_s10 + $0x20] sm:$0xff] (%p32_p3)  ;;  %369 = vst [vmem:[%s4202_s11] sm:$0xff] (%p32_p3), %v368_v0  ;;  %371 = vst [vmem:[%s4202_s11 + $0x8] sm:$0xff] (%p32_p3), %v370_v1  ;;  %v374_v3 = vld [vmem:[%s4197_s10 + $0x28] sm:$0xff] (%p32_p3) }
  0x13   : > { %373 = vst [vmem:[%s4202_s11 + $0x10] sm:$0xff] (%p32_p3), %v372_v2  ;;  %v376_v4 = vld [vmem:[%s4197_s10 + $0x40] sm:$0xff] (%p32_p3)  ;;  %v378_v5 = vld [vmem:[%s4197_s10 + $0x48] sm:$0xff] (%p32_p3)  ;;  %375 = vst [vmem:[%s4202_s11 + $0x18] sm:$0xff] (%p32_p3), %v374_v3 }
  0x14   : > { %377 = vst [vmem:[%s4202_s11 + $0x20] sm:$0xff] (%p32_p3), %v376_v4  ;;  %379 = vst [vmem:[%s4202_s11 + $0x28] sm:$0xff] (%p32_p3), %v378_v5  ;;  %v380_v6 = vld [vmem:[%s4197_s10 + $0x60] sm:$0xff] (%p32_p3)  ;;  %v382_v7 = vld [vmem:[%s4197_s10 + $0x68] sm:$0xff] (%p32_p3) }
  0x15   : > { %v384_v8 = vld [vmem:[%s4197_s10 + $0x80] sm:$0xff]  ;;  %381 = vst [vmem:[%s4202_s11 + $0x30] sm:$0xff] %v380_v6  ;;  %383 = vst [vmem:[%s4202_s11 + $0x38] sm:$0xff] %v382_v7  ;;  %v386_v9 = vld [vmem:[%s4197_s10 + $0x88] sm:$0xff] }
  0x16   : > { %385 = vst [vmem:[%s4202_s11 + $0x40] sm:$0xff] %v384_v8  ;;  %v388_v10 = vld [vmem:[%s4197_s10 + $0xa0] sm:$0xff]  ;;  %v390_v11 = vld [vmem:[%s4197_s10 + $0xa8] sm:$0xff]  ;;  %387 = vst [vmem:[%s4202_s11 + $0x48] sm:$0xff] %v386_v9 }
  0x17   : > { %389 = vst [vmem:[%s4202_s11 + $0x50] sm:$0xff] %v388_v10  ;;  %391 = vst [vmem:[%s4202_s11 + $0x58] sm:$0xff] %v390_v11  ;;  %v392_v12 = vld [vmem:[%s4197_s10 + $0xc0] sm:$0xff]  ;;  %v394_v13 = vld [vmem:[%s4197_s10 + $0xc8] sm:$0xff] }
  0x18   : > { %v396_v14 = vld [vmem:[%s4197_s10 + $0xe0] sm:$0xff]  ;;  %393 = vst [vmem:[%s4202_s11 + $0x60] sm:$0xff] %v392_v12  ;;  %395 = vst [vmem:[%s4202_s11 + $0x68] sm:$0xff] %v394_v13  ;;  %v398_v15 = vld [vmem:[%s4197_s10 + $0xe8] sm:$0xff] }
  0x19   : > { %397 = vst [vmem:[%s4202_s11 + $0x70] sm:$0xff] %v396_v14  ;;  %v400_v16 = vld [vmem:[%s4197_s10 + $0x100] sm:$0xff]  ;;  %v402_v17 = vld [vmem:[%s4197_s10 + $0x108] sm:$0xff]  ;;  %399 = vst [vmem:[%s4202_s11 + $0x78] sm:$0xff] %v398_v15 }
  0x1a   : > { %401 = vst [vmem:[%s4202_s11 + $0x80] sm:$0xff] %v400_v16  ;;  %403 = vst [vmem:[%s4202_s11 + $0x88] sm:$0xff] %v402_v17  ;;  %v404_v18 = vld [vmem:[%s4197_s10 + $0x120] sm:$0xff]  ;;  %v406_v19 = vld [vmem:[%s4197_s10 + $0x128] sm:$0xff] }
  0x1b   : > { %v408_v20 = vld [vmem:[%s4197_s10 + $0x140] sm:$0xff]  ;;  %405 = vst [vmem:[%s4202_s11 + $0x90] sm:$0xff] %v404_v18  ;;  %407 = vst [vmem:[%s4202_s11 + $0x98] sm:$0xff] %v406_v19  ;;  %v410_v21 = vld [vmem:[%s4197_s10 + $0x148] sm:$0xff] }
  0x1c   : > { %409 = vst [vmem:[%s4202_s11 + $0xa0] sm:$0xff] %v408_v20  ;;  %v412_v22 = vld [vmem:[%s4197_s10 + $0x160] sm:$0xff]  ;;  %v414_v23 = vld [vmem:[%s4197_s10 + $0x168] sm:$0xff]  ;;  %411 = vst [vmem:[%s4202_s11 + $0xa8] sm:$0xff] %v410_v21 }
  0x1d   : > { %413 = vst [vmem:[%s4202_s11 + $0xb0] sm:$0xff] %v412_v22  ;;  %415 = vst [vmem:[%s4202_s11 + $0xb8] sm:$0xff] %v414_v23  ;;  %v416_v24 = vld [vmem:[%s4197_s10 + $0x180] sm:$0xff]  ;;  %v418_v25 = vld [vmem:[%s4197_s10 + $0x188] sm:$0xff] }
  0x1e   : > { %v420_v26 = vld [vmem:[%s4197_s10 + $0x1a0] sm:$0xff]  ;;  %417 = vst [vmem:[%s4202_s11 + $0xc0] sm:$0xff] %v416_v24  ;;  %419 = vst [vmem:[%s4202_s11 + $0xc8] sm:$0xff] %v418_v25  ;;  %v422_v27 = vld [vmem:[%s4197_s10 + $0x1a8] sm:$0xff] }
  0x1f   : > { %421 = vst [vmem:[%s4202_s11 + $0xd0] sm:$0xff] %v420_v26  ;;  %v424_v28 = vld [vmem:[%s4197_s10 + $0x1c0] sm:$0xff]  ;;  %v426_v29 = vld [vmem:[%s4197_s10 + $0x1c8] sm:$0xff]  ;;  %423 = vst [vmem:[%s4202_s11 + $0xd8] sm:$0xff] %v422_v27 }
  0x20   : > { %425 = vst [vmem:[%s4202_s11 + $0xe0] sm:$0xff] %v424_v28  ;;  %427 = vst [vmem:[%s4202_s11 + $0xe8] sm:$0xff] %v426_v29  ;;  %v428_v30 = vld [vmem:[%s4197_s10 + $0x1e0] sm:$0xff]  ;;  %v430_v31 = vld [vmem:[%s4197_s10 + $0x1e8] sm:$0xff] }
  0x21   : > { %v432_v32 = vld [vmem:[%s4197_s10 + $0x200] sm:$0xff]  ;;  %429 = vst [vmem:[%s4202_s11 + $0xf0] sm:$0xff] %v428_v30  ;;  %431 = vst [vmem:[%s4202_s11 + $0xf8] sm:$0xff] %v430_v31  ;;  %v434_v33 = vld [vmem:[%s4197_s10 + $0x208] sm:$0xff] }
  0x22   : > { %433 = vst [vmem:[%s4202_s11 + $0x100] sm:$0xff] %v432_v32  ;;  %v436_v34 = vld [vmem:[%s4197_s10 + $0x220] sm:$0xff]  ;;  %v438_v35 = vld [vmem:[%s4197_s10 + $0x228] sm:$0xff]  ;;  %435 = vst [vmem:[%s4202_s11 + $0x108] sm:$0xff] %v434_v33 }
  0x23   : > { %437 = vst [vmem:[%s4202_s11 + $0x110] sm:$0xff] %v436_v34  ;;  %439 = vst [vmem:[%s4202_s11 + $0x118] sm:$0xff] %v438_v35  ;;  %v440_v36 = vld [vmem:[%s4197_s10 + $0x240] sm:$0xff]  ;;  %v442_v37 = vld [vmem:[%s4197_s10 + $0x248] sm:$0xff] }
  0x24   : > { %v444_v38 = vld [vmem:[%s4197_s10 + $0x260] sm:$0xff]  ;;  %441 = vst [vmem:[%s4202_s11 + $0x120] sm:$0xff] %v440_v36  ;;  %443 = vst [vmem:[%s4202_s11 + $0x128] sm:$0xff] %v442_v37  ;;  %v446_v39 = vld [vmem:[%s4197_s10 + $0x268] sm:$0xff] }
  0x25   : > { %445 = vst [vmem:[%s4202_s11 + $0x130] sm:$0xff] %v444_v38  ;;  %v448_v40 = vld [vmem:[%s4197_s10 + $0x280] sm:$0xff]  ;;  %v450_v41 = vld [vmem:[%s4197_s10 + $0x288] sm:$0xff]  ;;  %447 = vst [vmem:[%s4202_s11 + $0x138] sm:$0xff] %v446_v39 }
  0x26   : > { %449 = vst [vmem:[%s4202_s11 + $0x140] sm:$0xff] %v448_v40  ;;  %451 = vst [vmem:[%s4202_s11 + $0x148] sm:$0xff] %v450_v41  ;;  %v452_v42 = vld [vmem:[%s4197_s10 + $0x2a0] sm:$0xff]  ;;  %v454_v43 = vld [vmem:[%s4197_s10 + $0x2a8] sm:$0xff] }
  0x27   : > { %v456_v44 = vld [vmem:[%s4197_s10 + $0x2c0] sm:$0xff]  ;;  %453 = vst [vmem:[%s4202_s11 + $0x150] sm:$0xff] %v452_v42  ;;  %455 = vst [vmem:[%s4202_s11 + $0x158] sm:$0xff] %v454_v43  ;;  %v458_v45 = vld [vmem:[%s4197_s10 + $0x2c8] sm:$0xff] }
  0x28   : > { %457 = vst [vmem:[%s4202_s11 + $0x160] sm:$0xff] %v456_v44  ;;  %v460_v46 = vld [vmem:[%s4197_s10 + $0x2e0] sm:$0xff]  ;;  %v462_v47 = vld [vmem:[%s4197_s10 + $0x2e8] sm:$0xff]  ;;  %459 = vst [vmem:[%s4202_s11 + $0x168] sm:$0xff] %v458_v45 }
  0x29   : > { %461 = vst [vmem:[%s4202_s11 + $0x170] sm:$0xff] %v460_v46  ;;  %463 = vst [vmem:[%s4202_s11 + $0x178] sm:$0xff] %v462_v47  ;;  %v464_v48 = vld [vmem:[%s4197_s10 + $0x300] sm:$0xff]  ;;  %v466_v49 = vld [vmem:[%s4197_s10 + $0x308] sm:$0xff] }
  0x2a   : > { %v468_v50 = vld [vmem:[%s4197_s10 + $0x320] sm:$0xff]  ;;  %465 = vst [vmem:[%s4202_s11 + $0x180] sm:$0xff] %v464_v48  ;;  %467 = vst [vmem:[%s4202_s11 + $0x188] sm:$0xff] %v466_v49  ;;  %v470_v51 = vld [vmem:[%s4197_s10 + $0x328] sm:$0xff] }
  0x2b   : > { %469 = vst [vmem:[%s4202_s11 + $0x190] sm:$0xff] %v468_v50  ;;  %v472_v52 = vld [vmem:[%s4197_s10 + $0x340] sm:$0xff]  ;;  %v474_v53 = vld [vmem:[%s4197_s10 + $0x348] sm:$0xff]  ;;  %471 = vst [vmem:[%s4202_s11 + $0x198] sm:$0xff] %v470_v51 }
  0x2c   : > { %473 = vst [vmem:[%s4202_s11 + $0x1a0] sm:$0xff] %v472_v52  ;;  %475 = vst [vmem:[%s4202_s11 + $0x1a8] sm:$0xff] %v474_v53  ;;  %v476_v54 = vld [vmem:[%s4197_s10 + $0x360] sm:$0xff]  ;;  %v478_v55 = vld [vmem:[%s4197_s10 + $0x368] sm:$0xff] }
  0x2d   : > { %v480_v56 = vld [vmem:[%s4197_s10 + $0x380] sm:$0xff]  ;;  %477 = vst [vmem:[%s4202_s11 + $0x1b0] sm:$0xff] %v476_v54  ;;  %479 = vst [vmem:[%s4202_s11 + $0x1b8] sm:$0xff] %v478_v55  ;;  %v482_v57 = vld [vmem:[%s4197_s10 + $0x388] sm:$0xff] }
  0x2e   : > { %481 = vst [vmem:[%s4202_s11 + $0x1c0] sm:$0xff] %v480_v56  ;;  %v484_v58 = vld [vmem:[%s4197_s10 + $0x3a0] sm:$0xff]  ;;  %v486_v59 = vld [vmem:[%s4197_s10 + $0x3a8] sm:$0xff]  ;;  %483 = vst [vmem:[%s4202_s11 + $0x1c8] sm:$0xff] %v482_v57 }
  0x2f   : > { %485 = vst [vmem:[%s4202_s11 + $0x1d0] sm:$0xff] %v484_v58  ;;  %487 = vst [vmem:[%s4202_s11 + $0x1d8] sm:$0xff] %v486_v59  ;;  %v488_v60 = vld [vmem:[%s4197_s10 + $0x3c0] sm:$0xff]  ;;  %v490_v61 = vld [vmem:[%s4197_s10 + $0x3c8] sm:$0xff] }
  0x30   : > { %v492_v62 = vld [vmem:[%s4197_s10 + $0x3e0] sm:$0xff]  ;;  %489 = vst [vmem:[%s4202_s11 + $0x1e0] sm:$0xff] %v488_v60  ;;  %491 = vst [vmem:[%s4202_s11 + $0x1e8] sm:$0xff] %v490_v61  ;;  %v494_v63 = vld [vmem:[%s4197_s10 + $0x3e8] sm:$0xff] }
  0x31   : > { %493 = vst [vmem:[%s4202_s11 + $0x1f0] sm:$0xff] %v492_v62  ;;  %495 = vst [vmem:[%s4202_s11 + $0x1f8] sm:$0xff] %v494_v63 }
  0x32 PF: > { %p3443_p5 = scmp.ge.s32.totalorder %s4123_s23, 1  ;;  %p509_p6 = scmp.lt.s32.totalorder %s4123_s23, 3 }
  0x34   : > { %p510_p7 = pnand %p3443_p5, %p509_p6 }
  0x35   : > { %s516_s12 = sand.u32 (!%p510_p7), 1, %s4115_s21   ;;  %v4125_v0 = vmov (!%p510_p7), 0   ;;  %vm564_vm0 = vcmask (!%p510_p7), 195584   ;;  %v5655_v3 = vmov (!%p510_p7), 0.0   ;;  %v4050_v26 = vld [vmem:[%s5651_s3 + $0xc] sm:$0xff] (!%p510_p7)   ;;  %vm1805_vm1 = vcmask (!%p510_p7), 1043456  }
  0x36   : > { %513 = sbr.rel (%p510_p7) target bundleno = 1472 (0x5c0), region = 78  ;;  %4049 = vset.pattern.permute.xlu1 (!%p510_p7), %v4125_v0  ;;  %4048 = vset.pattern.permute.xlu0 (!%p510_p7), %v4125_v0  ;;  %s3444_s13 = sshll.u32 (!%p510_p7), %s516_s12, 9  ;;  %565 = vst.msk [vmem:[#allocation2] sm:$0xff] (!%p510_p7), %vm564_vm0, %v5655_v3  ;;  %566 = vst.msk [vmem:[#allocation2 + $0x8] sm:$0xff] (!%p510_p7), %vm564_vm0, %v5655_v3  ;;  %v4051_v31 = vld [vmem:[%s5651_s3 + $0x14] ss:$0 sps:$4 sm:$0xff] (!%p510_p7)  }
  0x37   : > { %s4332_s14 = scalar_lea.vmem (!%p510_p7), [#allocation4], %s3444_s13  ;;  %1015 = vst.msk [vmem:[#allocation2 + $0x210] sm:$0xff] (!%p510_p7), %vm564_vm0, %v5655_v3  ;;  %1016 = vst.msk [vmem:[#allocation2 + $0x218] sm:$0xff] (!%p510_p7), %vm564_vm0, %v5655_v3  ;;  %3703 = vmatprep.subr.bf16.mxu0 (!%p510_p7), %v4050_v26  ;;  %3917 = vmatprep.subr.bf16.mxu1 (!%p510_p7), %v4050_v26  ;;  %v1807_v34 = vsel (!%p510_p7), %vm1805_vm1, %v4051_v31, 0  ;;  %v4415_v57 = vld [vmem:[%s5651_s3] sm:$0xff] (!%p510_p7)   ;;  %vm4127_vm2 = vmmov (!%p510_p7), 0  }
  0x38   : > { %v569_v1 = vld [vmem:[%s4332_s14 + $0x10] sm:$0xff] (!%p510_p7)  ;;  %v567_v2 = vld [vmem:[%s4332_s14] sm:$0xff] (!%p510_p7)  ;;  %1622 = vst.msk [vmem:[#allocation3] sm:$0xff] (!%p510_p7), %vm564_vm0, %v5655_v3  ;;  %1623 = vst.msk [vmem:[#allocation3 + $0x8] sm:$0xff] (!%p510_p7), %vm564_vm0, %v5655_v3  ;;  %3704 = vmatpush3.bf16.msra.mxu0 (!%p510_p7), %v4050_v26  ;;  %3919 = vmatpush3.bf16.msra.mxu1 (!%p510_p7), %v4050_v26  ;;  %s3445_s19 = sshll.u32 (!%p510_p7), %s3436_s24, 1  ;;  %vm2652_vm3 = vcmask (!%p510_p7), 1041408  }
  0x39   : > { %643 = vperm.xlu1 (!%p510_p7), %4049, %v569_v1   ;;  %633 = vperm.xlu0 (!%p510_p7), %4048, %v567_v2   ;;  %1688 = vst.msk [vmem:[#allocation3 + $0x110] sm:$0xff] (!%p510_p7), %vm564_vm0, %v5655_v3  ;;  %1689 = vst.msk [vmem:[#allocation3 + $0x118] sm:$0xff] (!%p510_p7), %vm564_vm0, %v5655_v3  ;;  %v570_v4 = vld [vmem:[%s4332_s14 + $0x18] sm:$0xff] (!%p510_p7)  ;;  %v568_v5 = vld [vmem:[%s4332_s14 + $0x8] sm:$0xff] (!%p510_p7)  ;;  %p552_p8 = scmp.lt.s32.totalorder (!%p510_p7), %s3445_s19, 3  ;;  %vm2603_vm4 = vcmask (!%p510_p7), 392192  }
  0x3a   : > { %v572_v6 = vld [vmem:[%s4332_s14 + $0x28] sm:$0xff] (!%p510_p7)  ;;  %v571_v7 = vld [vmem:[%s4332_s14 + $0x20] sm:$0xff] (!%p510_p7)  ;;  %v574_v8 = vld [vmem:[%s4332_s14 + $0x38] sm:$0xff] (!%p510_p7)  ;;  %4017 = vmatprep.subr.msk.bf16.mxu0 (!%p510_p7), %vm1805_vm1, %v4051_v31  ;;  %4018 = vmatprep.subr.msk.bf16.mxu1 (!%p510_p7), %vm1805_vm1, %v4051_v31  ;;  %vm2648_vm5 = vcmask (!%p510_p7), 31744   ;;  %vm3337_vm6 = vcmask (!%p510_p7), 15360  }
  0x3b   : > { %v573_v9 = vld [vmem:[%s4332_s14 + $0x30] sm:$0xff] (!%p510_p7)  ;;  %v576_v10 = vld [vmem:[%s4332_s14 + $0x48] sm:$0xff] (!%p510_p7)  ;;  %v575_v11 = vld [vmem:[%s4332_s14 + $0x40] sm:$0xff] (!%p510_p7) }
  0x3c   : > { %v578_v12 = vld [vmem:[%s4332_s14 + $0x58] sm:$0xff] (!%p510_p7)  ;;  %v577_v13 = vld [vmem:[%s4332_s14 + $0x50] sm:$0xff] (!%p510_p7)  ;;  %v580_v14 = vld [vmem:[%s4332_s14 + $0x68] sm:$0xff] (!%p510_p7)  ;;  %3706 = vmatpush3.bf16.msra.mxu0 (!%p510_p7), %v1807_v34  ;;  %3920 = vmatpush3.bf16.msra.mxu1 (!%p510_p7), %v1807_v34 }
  0x3d   : > { %648 = vperm.xlu1 %4049, %v570_v4   ;;  %638 = vperm.xlu0 %4048, %v568_v5   ;;  %v579_v15 = vld [vmem:[%s4332_s14 + $0x60] sm:$0xff]  ;;  %v582_v16 = vld [vmem:[%s4332_s14 + $0x78] sm:$0xff]  ;;  %v581_v17 = vld [vmem:[%s4332_s14 + $0x70] sm:$0xff]  ;;  %s5666_s19 = smov (!%p552_p8, %s3445_s19), 3 }
  0x3e   : > { %v584_v18 = vld [vmem:[%s4332_s14 + $0x88] sm:$0xff]  ;;  %v583_v19 = vld [vmem:[%s4332_s14 + $0x80] sm:$0xff]  ;;  %v586_v20 = vld [vmem:[%s4332_s14 + $0x98] sm:$0xff]  ;;  %3811 = vmatprep.subr.bf16.mxu1 %v5655_v3  ;;  %3739 = vmatprep.subr.bf16.mxu0 %v4415_v57  ;;  %s3446_s23 = sshll.u32 %s5666_s19, 3 }
  0x3f   : > { %v585_v21 = vld [vmem:[%s4332_s14 + $0x90] sm:$0xff]  ;;  %v588_v22 = vld [vmem:[%s4332_s14 + $0xa8] sm:$0xff]  ;;  %v587_v23 = vld [vmem:[%s4332_s14 + $0xa0] sm:$0xff]  ;;  %s555_s27 = scalar_lea.vmem %s5649_s1, %s3446_s23  ;;  %s561_s16 = scalar_lea.vmem %s5654_s6, %s3446_s23 }
  0x40   : > { %v590_v24 = vld [vmem:[%s4332_s14 + $0xb8] sm:$0xff]  ;;  %v589_v25 = vld [vmem:[%s4332_s14 + $0xb0] sm:$0xff]  ;;  %v592_v27 = vld [vmem:[%s4332_s14 + $0xc8] sm:$0xff] }
  0x41   : > { %658 = vperm.xlu1 %4049, %v572_v6   ;;  %653 = vperm.xlu0 %4048, %v571_v7   ;;  %v591_v28 = vld [vmem:[%s4332_s14 + $0xc0] sm:$0xff]  ;;  %v594_v29 = vld [vmem:[%s4332_s14 + $0xd8] sm:$0xff]  ;;  %v593_v30 = vld [vmem:[%s4332_s14 + $0xd0] sm:$0xff] }
  0x42   : > { %v596_v32 = vld [vmem:[%s4332_s14 + $0xe8] sm:$0xff]  ;;  %v595_v33 = vld [vmem:[%s4332_s14 + $0xe0] sm:$0xff]  ;;  %v598_v35 = vld [vmem:[%s4332_s14 + $0xf8] sm:$0xff] }
  0x43   : > { %v597_v36 = vld [vmem:[%s4332_s14 + $0xf0] sm:$0xff]  ;;  %v600_v37 = vld [vmem:[%s4332_s14 + $0x108] sm:$0xff]  ;;  %v599_v38 = vld [vmem:[%s4332_s14 + $0x100] sm:$0xff] }
  0x44   : > { %v602_v39 = vld [vmem:[%s4332_s14 + $0x118] sm:$0xff]  ;;  %v601_v40 = vld [vmem:[%s4332_s14 + $0x110] sm:$0xff]  ;;  %v604_v41 = vld [vmem:[%s4332_s14 + $0x128] sm:$0xff] }
  0x45   : > { %668 = vperm.xlu1 %4049, %v574_v8   ;;  %663 = vperm.xlu0 %4048, %v573_v9   ;;  %v603_v42 = vld [vmem:[%s4332_s14 + $0x120] sm:$0xff]  ;;  %v606_v43 = vld [vmem:[%s4332_s14 + $0x138] sm:$0xff]  ;;  %v605_v44 = vld [vmem:[%s4332_s14 + $0x130] sm:$0xff] }
  0x46   : > { %v608_v45 = vld [vmem:[%s4332_s14 + $0x148] sm:$0xff]  ;;  %v607_v46 = vld [vmem:[%s4332_s14 + $0x140] sm:$0xff]  ;;  %v610_v47 = vld [vmem:[%s4332_s14 + $0x158] sm:$0xff] }
  0x47   : > { %v609_v48 = vld [vmem:[%s4332_s14 + $0x150] sm:$0xff]  ;;  %v612_v49 = vld [vmem:[%s4332_s14 + $0x168] sm:$0xff]  ;;  %v611_v50 = vld [vmem:[%s4332_s14 + $0x160] sm:$0xff] }
  0x48   : > { %v614_v51 = vld [vmem:[%s4332_s14 + $0x178] sm:$0xff]  ;;  %v613_v52 = vld [vmem:[%s4332_s14 + $0x170] sm:$0xff]  ;;  %v616_v53 = vld [vmem:[%s4332_s14 + $0x188] sm:$0xff] }
  0x49   : > { %678 = vperm.xlu1 %4049, %v576_v10   ;;  %673 = vperm.xlu0 %4048, %v575_v11   ;;  %v615_v54 = vld [vmem:[%s4332_s14 + $0x180] sm:$0xff]  ;;  %v618_v55 = vld [vmem:[%s4332_s14 + $0x198] sm:$0xff]  ;;  %v617_v56 = vld [vmem:[%s4332_s14 + $0x190] sm:$0xff] }
  0x4a   : > { %v620_v58 = vld [vmem:[%s4332_s14 + $0x1a8] sm:$0xff]  ;;  %v619_v59 = vld [vmem:[%s4332_s14 + $0x1a0] sm:$0xff]  ;;  %v622_v60 = vld [vmem:[%s4332_s14 + $0x1b8] sm:$0xff] }
  0x4b   : > { %v621_v61 = vld [vmem:[%s4332_s14 + $0x1b0] sm:$0xff]  ;;  %v624_v62 = vld [vmem:[%s4332_s14 + $0x1c8] sm:$0xff]  ;;  %v623_v63 = vld [vmem:[%s4332_s14 + $0x1c0] sm:$0xff] }
  0x4c   : > { %v626_v0 = vld [vmem:[%s4332_s14 + $0x1d8] sm:$0xff]  ;;  %v625_v1 = vld [vmem:[%s4332_s14 + $0x1d0] sm:$0xff]  ;;  %v628_v2 = vld [vmem:[%s4332_s14 + $0x1e8] sm:$0xff] }
  0x4d   : > { %688 = vperm.xlu1 %4049, %v578_v12   ;;  %683 = vperm.xlu0 %4048, %v577_v13   ;;  %v627_v4 = vld [vmem:[%s4332_s14 + $0x1e0] sm:$0xff]  ;;  %v630_v5 = vld [vmem:[%s4332_s14 + $0x1f8] sm:$0xff]  ;;  %v629_v6 = vld [vmem:[%s4332_s14 + $0x1f0] sm:$0xff] }
  0x4e   : > { %v4435_v11 = vld [vmem:[%s5650_s2] ss:$0 sm:$0xff]  ;;  %v4442_v13 = vld [vmem:[%s5650_s2 + $0x1] ss:$0 sm:$0xff] }
  0x4f   : > { %v1017_v12 = vld [vmem:[#allocation2] sm:$0xff] }
  0x51   : > { %698 = vperm.xlu1 %4049, %v580_v14   ;;  %693 = vperm.xlu0 %4048, %v579_v15   ;;  %v1086_v14 = vmul.f32 %v4435_v11, %v1017_v12 }
  0x55   : > { %708 = vperm.xlu1 %4049, %v582_v16   ;;  %703 = vperm.xlu0 %4048, %v581_v17   ;;  %v1018_v16 = vld [vmem:[#allocation2 + $0x8] sm:$0xff] }
  0x59   : > { %718 = vperm.xlu1 %4049, %v584_v18   ;;  %713 = vperm.xlu0 %4048, %v583_v19   ;;  %v4448_v19 = vld [vmem:[%s5650_s2 + $0x2] ss:$0 sm:$0xff] }
  0x5d   : > { %728 = vperm.xlu1 %4049, %v586_v20   ;;  %723 = vperm.xlu0 %4048, %v585_v21  }
  0x61   : > { %738 = vperm.xlu1 %4049, %v588_v22   ;;  %733 = vperm.xlu0 %4048, %v587_v23   ;;  %v1087_v22 = vmul.f32 %v4435_v11, %v1018_v16  ;;  %v4457_v23 = vld [vmem:[%s5651_s3 + $0x8] ss:$0 sps:$4 sm:$0xff]  }
  0x65   : > { %748 = vperm.xlu1 %4049, %v590_v24   ;;  %743 = vperm.xlu0 %4048, %v589_v25  }
  0x69   : > { %758 = vperm.xlu1 %4049, %v592_v27   ;;  %753 = vperm.xlu0 %4048, %v591_v28  }
  0x6d   : > { %768 = vperm.xlu1 %4049, %v594_v29   ;;  %763 = vperm.xlu0 %4048, %v593_v30  }
  0x71   : > { %778 = vperm.xlu1 %4049, %v596_v32   ;;  %773 = vperm.xlu0 %4048, %v595_v33   ;;  %v4465_v32 = vld [vmem:[%s5650_s2 + $0x3] ss:$0 sm:$0xff] }
  0x75   : > { %788 = vperm.xlu1 %4049, %v598_v35   ;;  %783 = vperm.xlu0 %4048, %v597_v36  }
  0x79   : > { %798 = vperm.xlu1 %4049, %v600_v37   ;;  %793 = vperm.xlu0 %4048, %v599_v38   ;;  %v4476_v38 = vld [vmem:[%s5650_s2 + $0x4] ss:$0 sm:$0xff] }
  0x7d   : > { %808 = vperm.xlu1 %4049, %v602_v39   ;;  %803 = vperm.xlu0 %4048, %v601_v40   ;;  %v4480_v39 = vsel %vm1805_vm1, %v4457_v23, 0  ;;  %v4482_v40 = vld [vmem:[#allocation3] sm:$0xff] }
  0x81   : > { %818 = vperm.xlu1 %4049, %v604_v41   ;;  %813 = vperm.xlu0 %4048, %v603_v42  }
  0x85   : > { %828 = vperm.xlu1 %4049, %v606_v43   ;;  %823 = vperm.xlu0 %4048, %v605_v44  }
  0x89   : > { %838 = vperm.xlu1 %4049, %v608_v45   ;;  %833 = vperm.xlu0 %4048, %v607_v46  }
  0x8d   : > { %848 = vperm.xlu1 %4049, %v610_v47   ;;  %843 = vperm.xlu0 %4048, %v609_v48  }
  0x91   : > { %858 = vperm.xlu1 %4049, %v612_v49   ;;  %853 = vperm.xlu0 %4048, %v611_v50   ;;  %v4486_v49 = vld [vmem:[#allocation3 + $0x8] sm:$0xff] }
  0x95   : > { %868 = vperm.xlu1 %4049, %v614_v51   ;;  %863 = vperm.xlu0 %4048, %v613_v52  }
  0x99   : > { %878 = vperm.xlu1 %4049, %v616_v53   ;;  %873 = vperm.xlu0 %4048, %v615_v54  }
  0x9d   : > { %888 = vperm.xlu1 %4049, %v618_v55   ;;  %883 = vperm.xlu0 %4048, %v617_v56  }
  0xa1   : > { %898 = vperm.xlu1 %4049, %v620_v58   ;;  %893 = vperm.xlu0 %4048, %v619_v59  }
  0xa5   : > { %908 = vperm.xlu1 %4049, %v622_v60   ;;  %903 = vperm.xlu0 %4048, %v621_v61  }
  0xa9   : > { %918 = vperm.xlu1 %4049, %v624_v62   ;;  %913 = vperm.xlu0 %4048, %v623_v63  }
  0xad   : > { %928 = vperm.xlu1 %4049, %v626_v0   ;;  %923 = vperm.xlu0 %4048, %v625_v1  }
  0xb1   : > { %938 = vperm.xlu1 %4049, %v628_v2   ;;  %933 = vperm.xlu0 %4048, %v627_v4  }
  0xb5   : > { %948 = vperm.xlu1 %4049, %v630_v5   ;;  %943 = vperm.xlu0 %4048, %v629_v6  }
  0xb8   : > { %v644_v7 = vpop.permute.xlu1 %643  ;;  %v634_v8 = vpop.permute.xlu0 %633 }
  0xb9   : > { %953 = vst.msk [vmem:[#allocation2 + $0x20] sm:$0xff] %vm564_vm0, %v644_v7  ;;  %951 = vst.msk [vmem:[#allocation2 + $0x10] sm:$0xff] %vm564_vm0, %v634_v8 }
  0xbc   : > { %v649_v9 = vpop.permute.xlu1 %648  ;;  %v639_v10 = vpop.permute.xlu0 %638 }
  0xbd   : > { %954 = vst.msk [vmem:[#allocation2 + $0x28] sm:$0xff] %vm564_vm0, %v649_v9  ;;  %952 = vst.msk [vmem:[#allocation2 + $0x18] sm:$0xff] %vm564_vm0, %v639_v10 }
  0xc0   : > { %v1019_v15 = vld [vmem:[#allocation2 + $0x10] sm:$0xff]  ;;  %v659_v17 = vpop.permute.xlu1 %658  ;;  %v654_v18 = vpop.permute.xlu0 %653  ;;  %v1021_v20 = vld [vmem:[#allocation2 + $0x20] sm:$0xff] }
  0xc1   : > { %956 = vst.msk [vmem:[#allocation2 + $0x38] sm:$0xff] %vm564_vm0, %v659_v17  ;;  %955 = vst.msk [vmem:[#allocation2 + $0x30] sm:$0xff] %vm564_vm0, %v654_v18  ;;  %v1157_v21 = vmul.f32 %v4442_v13, %v1019_v15  ;;  %v1159_v24 = vmul.f32 %v4442_v13, %v1021_v20  ;;  %v1292_v25 = vmul.f32 %v4448_v19, %v1021_v20 }
  0xc2   : > { %v1088_v26 = vmul.f32 %v4435_v11, %v1019_v15  ;;  %v1090_v37 = vmul.f32 %v4435_v11, %v1021_v20 }
  0xc3   : > { %v1221_v27 = vadd.f32 %v1157_v21, %v1086_v14 }
  0xc4   : > { %v1022_v28 = vld [vmem:[#allocation2 + $0x28] sm:$0xff]  ;;  %v1020_v29 = vld [vmem:[#allocation2 + $0x18] sm:$0xff]  ;;  %v669_v30 = vpop.permute.xlu1 %668  ;;  %v664_v31 = vpop.permute.xlu0 %663  ;;  %v1223_v41 = vadd.f32 %v1159_v24, %v1088_v26 }
  0xc5   : > { %v1160_v33 = vmul.f32 %v4442_v13, %v1022_v28  ;;  %v1089_v34 = vmul.f32 %v4435_v11, %v1020_v29  ;;  %958 = vst.msk [vmem:[#allocation2 + $0x48] sm:$0xff] %vm564_vm0, %v669_v30  ;;  %957 = vst.msk [vmem:[#allocation2 + $0x40] sm:$0xff] %vm564_vm0, %v664_v31  ;;  %v1356_v35 = vadd.f32 %v1292_v25, %v1221_v27 }
  0xc6   : > { %v1158_v36 = vmul.f32 %v4442_v13, %v1020_v29  ;;  %v1293_v43 = vmul.f32 %v4448_v19, %v1022_v28  ;;  %v1091_v50 = vmul.f32 %v4435_v11, %v1022_v28 }
  0xc7   : > { %v1425_v42 = vmul.f32 %v4465_v32, %v1356_v35  ;;  %v1224_v51 = vadd.f32 %v1160_v33, %v1089_v34 }
  0xc8   : > { %v1222_v44 = vadd.f32 %v1158_v36, %v1087_v22  ;;  %v1024_v45 = vld [vmem:[#allocation2 + $0x38] sm:$0xff]  ;;  %v1023_v46 = vld [vmem:[#allocation2 + $0x30] sm:$0xff]  ;;  %v679_v47 = vpop.permute.xlu1 %678  ;;  %v674_v48 = vpop.permute.xlu0 %673 }
  0xc9   : > { %v1162_v52 = vmul.f32 %v4442_v13, %v1024_v45  ;;  %v1295_v53 = vmul.f32 %v4448_v19, %v1024_v45  ;;  %960 = vst.msk [vmem:[#allocation2 + $0x58] sm:$0xff] %vm564_vm0, %v679_v47  ;;  %959 = vst.msk [vmem:[#allocation2 + $0x50] sm:$0xff] %vm564_vm0, %v674_v48  ;;  %v1161_v55 = vmul.f32 %v4442_v13, %v1023_v46 }
  0xca   : > { %v1357_v54 = vadd.f32 %v1293_v43, %v1222_v44  ;;  %v1294_v56 = vmul.f32 %v4448_v19, %v1023_v46  ;;  %v4496_v58 = vadd.f32 %v4476_v38, %v1425_v42  ;;  %v1093_v59 = vmul.f32 %v4435_v11, %v1024_v45 }
  0xcb   : > { %v1359_v60 = vadd.f32 %v1295_v53, %v1224_v51  ;;  %v1092_v61 = vmul.f32 %v4435_v11, %v1023_v46  ;;  %v1226_v0 = vadd.f32 %v1162_v52, %v1091_v50  ;;  %v1225_v1 = vadd.f32 %v1161_v55, %v1090_v37 }
  0xcc   : > { %v1426_v63 = vmul.f32 %v4465_v32, %v1357_v54  ;;  %v1358_v2 = vadd.f32 %v1294_v56, %v1223_v41  ;;  %v1026_v4 = vld [vmem:[#allocation2 + $0x48] sm:$0xff]  ;;  %v1025_v5 = vld [vmem:[#allocation2 + $0x40] sm:$0xff]  ;;  %v689_v6 = vpop.permute.xlu1 %688  ;;  %v684_v7 = vpop.permute.xlu0 %683  ;;  %v1558_v12 = vmax.f32 %v4496_v58, 0.0 }
  0xcd   : > { %v1428_v8 = vmul.f32 %v4465_v32, %v1359_v60  ;;  %v1164_v9 = vmul.f32 %v4442_v13, %v1026_v4  ;;  %v1297_v10 = vmul.f32 %v4448_v19, %v1026_v4  ;;  %962 = vst.msk [vmem:[#allocation2 + $0x68] sm:$0xff] %vm564_vm0, %v689_v6  ;;  %961 = vst.msk [vmem:[#allocation2 + $0x60] sm:$0xff] %vm564_vm0, %v684_v7 }
  0xce   : > { %v1427_v14 = vmul.f32 %v4465_v32, %v1358_v2  ;;  %v1095_v15 = vmul.f32 %v4435_v11, %v1026_v4  ;;  %v1163_v16 = vmul.f32 %v4442_v13, %v1025_v5  ;;  %v1296_v17 = vmul.f32 %v4448_v19, %v1025_v5 }
  0xcf   : > { %v1228_v18 = vadd.f32 %v1164_v9, %v1093_v59  ;;  %v1361_v20 = vadd.f32 %v1297_v10, %v1226_v0  ;;  %v1094_v21 = vmul.f32 %v4435_v11, %v1025_v5  ;;  %v4515_v22 = vadd.f32 %v4476_v38, %v1426_v63 }
  0xd0   : > { %v1227_v24 = vadd.f32 %v1163_v16, %v1092_v61  ;;  %v1360_v25 = vadd.f32 %v1296_v17, %v1225_v1  ;;  %v1028_v26 = vld [vmem:[#allocation2 + $0x58] sm:$0xff]  ;;  %v1027_v27 = vld [vmem:[#allocation2 + $0x50] sm:$0xff]  ;;  %v699_v28 = vpop.permute.xlu1 %698  ;;  %v694_v29 = vpop.permute.xlu0 %693  ;;  %v1496_v30 = vadd.f32 %v4476_v38, %v1427_v14  ;;  %v4519_v31 = vadd.f32 %v4476_v38, %v1428_v8 }
  0xd1   : > { %v1430_v33 = vmul.f32 %v4465_v32, %v1361_v20  ;;  %v1097_v34 = vmul.f32 %v4435_v11, %v1028_v26  ;;  %v1166_v35 = vmul.f32 %v4442_v13, %v1028_v26  ;;  %v1299_v36 = vmul.f32 %v4448_v19, %v1028_v26  ;;  %964 = vst.msk [vmem:[#allocation2 + $0x78] sm:$0xff] %vm564_vm0, %v699_v28 }
  0xd2   : > { %963 = vst.msk [vmem:[#allocation2 + $0x70] sm:$0xff] %vm564_vm0, %v694_v29  ;;  %v1429_v37 = vmul.f32 %v4465_v32, %v1360_v25  ;;  %v1096_v41 = vmul.f32 %v4435_v11, %v1027_v27  ;;  %v1165_v42 = vmul.f32 %v4442_v13, %v1027_v27  ;;  %v1298_v43 = vmul.f32 %v4448_v19, %v1027_v27 }
  0xd3   : > { %v4532_v44 = vadd.f32 %v4476_v38, %v1430_v33  ;;  %v1230_v45 = vadd.f32 %v1166_v35, %v1095_v15  ;;  %v1363_v46 = vadd.f32 %v1299_v36, %v1228_v18  ;;  %v1559_v47 = vmax.f32 %v4515_v22, 0.0 }
  0xd4   : > { %v4536_v48 = vadd.f32 %v4476_v38, %v1429_v37  ;;  %v1229_v50 = vadd.f32 %v1165_v42, %v1094_v21  ;;  %v1362_v51 = vadd.f32 %v1298_v43, %v1227_v24  ;;  %v1030_v52 = vld [vmem:[#allocation2 + $0x68] sm:$0xff]  ;;  %v1029_v53 = vld [vmem:[#allocation2 + $0x60] sm:$0xff]  ;;  %v709_v54 = vpop.permute.xlu1 %708  ;;  %v704_v55 = vpop.permute.xlu0 %703  ;;  %v1560_v56 = vmax.f32 %v1496_v30, 0.0 }
  0xd5   : > { %v1563_v58 = vmax.f32 %v4532_v44, 0.0  ;;  %v1432_v59 = vmul.f32 %v4465_v32, %v1363_v46  ;;  %v1099_v60 = vmul.f32 %v4435_v11, %v1030_v52  ;;  %v1168_v61 = vmul.f32 %v4442_v13, %v1030_v52  ;;  %966 = vst.msk [vmem:[#allocation2 + $0x88] sm:$0xff] %vm564_vm0, %v709_v54  ;;  %965 = vst.msk [vmem:[#allocation2 + $0x80] sm:$0xff] %vm564_vm0, %v704_v55 }
  0xd6   : > { %v1562_v63 = vmax.f32 %v4536_v48, 0.0  ;;  %v1431_v0 = vmul.f32 %v4465_v32, %v1362_v51  ;;  %v1301_v1 = vmul.f32 %v4448_v19, %v1030_v52  ;;  %v1098_v2 = vmul.f32 %v4435_v11, %v1029_v53 }
  0xd7   : > { %v4549_v4 = vadd.f32 %v4476_v38, %v1432_v59  ;;  %v1232_v5 = vadd.f32 %v1168_v61, %v1097_v34  ;;  %v1167_v6 = vmul.f32 %v4442_v13, %v1029_v53  ;;  %v1300_v7 = vmul.f32 %v4448_v19, %v1029_v53 }
  0xd8   : > { %v4554_v8 = vadd.f32 %v4476_v38, %v1431_v0  ;;  %v1365_v9 = vadd.f32 %v1301_v1, %v1230_v45  ;;  %v1032_v10 = vld [vmem:[#allocation2 + $0x78] sm:$0xff]  ;;  %v719_v15 = vpop.permute.xlu1 %718  ;;  %v714_v16 = vpop.permute.xlu0 %713  ;;  %v1561_v17 = vmax.f32 %v4519_v31, 0.0  ;;  %v1624_v18 = vmax.f32 %v1558_v12, %v1560_v56 }
  0xd9   : > { %v1031_v14 = vld [vmem:[#allocation2 + $0x70] sm:$0xff]  ;;  %v1565_v20 = vmax.f32 %v4549_v4, 0.0  ;;  %v1231_v21 = vadd.f32 %v1167_v6, %v1096_v41  ;;  %v1364_v22 = vadd.f32 %v1300_v7, %v1229_v50  ;;  %v1101_v24 = vmul.f32 %v4435_v11, %v1032_v10  ;;  %968 = vst.msk [vmem:[#allocation2 + $0x98] sm:$0xff] %vm564_vm0, %v719_v15  ;;  %967 = vst.msk [vmem:[#allocation2 + $0x90] sm:$0xff] %vm564_vm0, %v714_v16 }
  0xda   : > { %v1564_v25 = vmax.f32 %v4554_v8, 0.0  ;;  %v1434_v26 = vmul.f32 %v4465_v32, %v1365_v9  ;;  %v1170_v27 = vmul.f32 %v4442_v13, %v1032_v10  ;;  %v1303_v28 = vmul.f32 %v4448_v19, %v1032_v10  ;;  %1656 = vst.msk [vmem:[#allocation3 + $0x10] sm:$0xff] %vm564_vm0, %v1624_v18 }
  0xdb   : > { %v1433_v12 = vmul.f32 %v4465_v32, %v1364_v22  ;;  %v1100_v29 = vmul.f32 %v4435_v11, %v1031_v14  ;;  %v1169_v30 = vmul.f32 %v4442_v13, %v1031_v14  ;;  %v1302_v31 = vmul.f32 %v4448_v19, %v1031_v14 }
  0xdc   : > { %v4571_v33 = vadd.f32 %v4476_v38, %v1434_v26  ;;  %v1234_v34 = vadd.f32 %v1170_v27, %v1099_v60  ;;  %v1367_v35 = vadd.f32 %v1303_v28, %v1232_v5  ;;  %v1034_v36 = vld [vmem:[#allocation2 + $0x88] sm:$0xff]  ;;  %v1033_v37 = vld [vmem:[#allocation2 + $0x80] sm:$0xff]  ;;  %v729_v41 = vpop.permute.xlu1 %728  ;;  %v724_v42 = vpop.permute.xlu0 %723  ;;  %v1625_v43 = vmax.f32 %v1559_v47, %v1561_v17 }
  0xdd   : > { %v4574_v45 = vadd.f32 %v4476_v38, %v1433_v12  ;;  %v1233_v46 = vadd.f32 %v1169_v30, %v1098_v2  ;;  %v1366_v50 = vadd.f32 %v1302_v31, %v1231_v21  ;;  %v1103_v51 = vmul.f32 %v4435_v11, %v1034_v36  ;;  %970 = vst.msk [vmem:[#allocation2 + $0xa8] sm:$0xff] %vm564_vm0, %v729_v41 }
  0xde   : > { %969 = vst.msk [vmem:[#allocation2 + $0xa0] sm:$0xff] %vm564_vm0, %v724_v42  ;;  %v1567_v52 = vmax.f32 %v4571_v33, 0.0  ;;  %v1436_v53 = vmul.f32 %v4465_v32, %v1367_v35  ;;  %v1172_v54 = vmul.f32 %v4442_v13, %v1034_v36  ;;  %v1305_v55 = vmul.f32 %v4448_v19, %v1034_v36  ;;  %1657 = vst.msk [vmem:[#allocation3 + $0x18] sm:$0xff] %vm564_vm0, %v1625_v43 }
  0xdf   : > { %v1566_v47 = vmax.f32 %v4574_v45, 0.0  ;;  %v1435_v56 = vmul.f32 %v4465_v32, %v1366_v50  ;;  %v1102_v59 = vmul.f32 %v4435_v11, %v1033_v37  ;;  %v1171_v60 = vmul.f32 %v4442_v13, %v1033_v37 }
  0xe0   : > { %v4589_v61 = vadd.f32 %v4476_v38, %v1436_v53  ;;  %v1236_v0 = vadd.f32 %v1172_v54, %v1101_v24  ;;  %v1369_v1 = vadd.f32 %v1305_v55, %v1234_v34  ;;  %v1304_v2 = vmul.f32 %v4448_v19, %v1033_v37  ;;  %v1036_v5 = vld [vmem:[#allocation2 + $0x98] sm:$0xff]  ;;  %v1035_v6 = vld [vmem:[#allocation2 + $0x90] sm:$0xff]  ;;  %v739_v7 = vpop.permute.xlu1 %738  ;;  %v734_v9 = vpop.permute.xlu0 %733 }
  0xe1   : > { %v4593_v10 = vadd.f32 %v4476_v38, %v1435_v56  ;;  %v1235_v14 = vadd.f32 %v1171_v60, %v1100_v29  ;;  %v1105_v15 = vmul.f32 %v4435_v11, %v1036_v5  ;;  %v1174_v16 = vmul.f32 %v4442_v13, %v1036_v5  ;;  %972 = vst.msk [vmem:[#allocation2 + $0xb8] sm:$0xff] %vm564_vm0, %v739_v7  ;;  %v1692_v55 = vld [vmem:[#allocation3 + $0x10] sm:$0xff] }
  0xe2   : > { %971 = vst.msk [vmem:[#allocation2 + $0xb0] sm:$0xff] %vm564_vm0, %v734_v9  ;;  %v1569_v17 = vmax.f32 %v4589_v61, 0.0  ;;  %v1438_v18 = vmul.f32 %v4465_v32, %v1369_v1  ;;  %v1368_v21 = vadd.f32 %v1304_v2, %v1233_v46  ;;  %v1307_v22 = vmul.f32 %v4448_v19, %v1036_v5 }
  0xe3   : > { %v1568_v24 = vmax.f32 %v4593_v10, 0.0  ;;  %v1238_v26 = vadd.f32 %v1174_v16, %v1103_v51  ;;  %v1104_v27 = vmul.f32 %v4435_v11, %v1035_v6  ;;  %v1173_v28 = vmul.f32 %v4442_v13, %v1035_v6 }
  0xe4   : > { %v4606_v12 = vadd.f32 %v4476_v38, %v1438_v18  ;;  %v1437_v29 = vmul.f32 %v4465_v32, %v1368_v21  ;;  %v1371_v30 = vadd.f32 %v1307_v22, %v1236_v0  ;;  %v1306_v31 = vmul.f32 %v4448_v19, %v1035_v6  ;;  %v1038_v34 = vld [vmem:[#allocation2 + $0xa8] sm:$0xff]  ;;  %v749_v36 = vpop.permute.xlu1 %748  ;;  %v744_v37 = vpop.permute.xlu0 %743 }
  0xe5   : > { %v1037_v35 = vld [vmem:[#allocation2 + $0xa0] sm:$0xff]  ;;  %v1237_v41 = vadd.f32 %v1173_v28, %v1102_v59  ;;  %v1107_v42 = vmul.f32 %v4435_v11, %v1038_v34  ;;  %v1176_v43 = vmul.f32 %v4442_v13, %v1038_v34  ;;  %v1309_v46 = vmul.f32 %v4448_v19, %v1038_v34  ;;  %974 = vst.msk [vmem:[#allocation2 + $0xc8] sm:$0xff] %vm564_vm0, %v749_v36  ;;  %v1693_v56 = vld [vmem:[#allocation3 + $0x18] sm:$0xff] }
  0xe6   : > { %973 = vst.msk [vmem:[#allocation2 + $0xc0] sm:$0xff] %vm564_vm0, %v744_v37  ;;  %v1571_v50 = vmax.f32 %v4606_v12, 0.0  ;;  %v4617_v51 = vadd.f32 %v4476_v38, %v1437_v29  ;;  %v1440_v53 = vmul.f32 %v4465_v32, %v1371_v30  ;;  %v1370_v54 = vadd.f32 %v1306_v31, %v1235_v14 }
  0xe7   : > { %v1240_v59 = vadd.f32 %v1176_v43, %v1105_v15  ;;  %v1373_v60 = vadd.f32 %v1309_v46, %v1238_v26  ;;  %v1106_v0 = vmul.f32 %v4435_v11, %v1037_v35  ;;  %v1175_v1 = vmul.f32 %v4442_v13, %v1037_v35 }
  0xe8   : > { %v1570_v2 = vmax.f32 %v4617_v51, 0.0  ;;  %v4624_v5 = vadd.f32 %v4476_v38, %v1440_v53  ;;  %v1439_v6 = vmul.f32 %v4465_v32, %v1370_v54  ;;  %v1308_v7 = vmul.f32 %v4448_v19, %v1037_v35  ;;  %v1040_v9 = vld [vmem:[#allocation2 + $0xb8] sm:$0xff]  ;;  %v759_v14 = vpop.permute.xlu1 %758  ;;  %v754_v18 = vpop.permute.xlu0 %753 }
  0xe9   : > { %v1039_v16 = vld [vmem:[#allocation2 + $0xb0] sm:$0xff]  ;;  %v1442_v15 = vmul.f32 %v4465_v32, %v1373_v60  ;;  %v1239_v21 = vadd.f32 %v1175_v1, %v1104_v27  ;;  %v4629_v22 = vpack.c.bf16 %v1693_v56, %v1692_v55  ;;  %v1109_v26 = vmul.f32 %v4435_v11, %v1040_v9  ;;  %976 = vst.msk [vmem:[#allocation2 + $0xd8] sm:$0xff] %vm564_vm0, %v759_v14 }
  0xea   : > { %975 = vst.msk [vmem:[#allocation2 + $0xd0] sm:$0xff] %vm564_vm0, %v754_v18  ;;  %v1573_v28 = vmax.f32 %v4624_v5, 0.0  ;;  %v4636_v29 = vadd.f32 %v4476_v38, %v1439_v6  ;;  %v1372_v30 = vadd.f32 %v1308_v7, %v1237_v41  ;;  %v1178_v31 = vmul.f32 %v4442_v13, %v1040_v9 }
  0xeb   : > { %v4640_v34 = vadd.f32 %v4476_v38, %v1442_v15  ;;  %3707 = vmatprep.mubr.msk.bf16.mxu0 %vm564_vm0, %v4629_v22  ;;  %v1311_v27 = vmul.f32 %v4448_v19, %v1040_v9  ;;  %v1108_v35 = vmul.f32 %v4435_v11, %v1039_v16  ;;  %v1177_v36 = vmul.f32 %v4442_v13, %v1039_v16 }
  0xec   : > { %v1572_v37 = vmax.f32 %v4636_v29, 0.0  ;;  %v1441_v43 = vmul.f32 %v4465_v32, %v1372_v30  ;;  %v1242_v46 = vadd.f32 %v1178_v31, %v1107_v42  ;;  %v1310_v41 = vmul.f32 %v4448_v19, %v1039_v16  ;;  %v1042_v53 = vld [vmem:[#allocation2 + $0xc8] sm:$0xff]  ;;  %v769_v55 = vpop.permute.xlu1 %768  ;;  %v764_v56 = vpop.permute.xlu0 %763 }
  0xed   : > { %v1041_v54 = vld [vmem:[#allocation2 + $0xc0] sm:$0xff]  ;;  %v1575_v60 = vmax.f32 %v4640_v34, 0.0  ;;  %v1375_v1 = vadd.f32 %v1311_v27, %v1240_v59  ;;  %v1241_v6 = vadd.f32 %v1177_v36, %v1106_v0  ;;  %v1111_v7 = vmul.f32 %v4435_v11, %v1042_v53  ;;  %978 = vst.msk [vmem:[#allocation2 + $0xe8] sm:$0xff] %vm564_vm0, %v769_v55  ;;  %977 = vst.msk [vmem:[#allocation2 + $0xe0] sm:$0xff] %vm564_vm0, %v764_v56 }
  0xee   : > { %v4655_v9 = vadd.f32 %v4476_v38, %v1441_v43  ;;  %v1374_v42 = vadd.f32 %v1310_v41, %v1239_v21  ;;  %v1180_v16 = vmul.f32 %v4442_v13, %v1042_v53  ;;  %v1313_v14 = vmul.f32 %v4448_v19, %v1042_v53 }
  0xef   : > { %v1444_v18 = vmul.f32 %v4465_v32, %v1375_v1  ;;  %v1110_v15 = vmul.f32 %v4435_v11, %v1041_v54  ;;  %v1179_v59 = vmul.f32 %v4442_v13, %v1041_v54  ;;  %v1312_v0 = vmul.f32 %v4448_v19, %v1041_v54 }
  0xf0   : > { %v1574_v30 = vmax.f32 %v4655_v9, 0.0  ;;  %v1443_v31 = vmul.f32 %v4465_v32, %v1374_v42  ;;  %v1244_v27 = vadd.f32 %v1180_v16, %v1109_v26  ;;  %v1377_v36 = vadd.f32 %v1313_v14, %v1242_v46  ;;  %v1044_v43 = vld [vmem:[#allocation2 + $0xd8] sm:$0xff]  ;;  %v779_v21 = vpop.permute.xlu1 %778  ;;  %v774_v41 = vpop.permute.xlu0 %773 }
  0xf1   : > { %v4666_v55 = vadd.f32 %v4476_v38, %v1444_v18  ;;  %v1243_v53 = vadd.f32 %v1179_v59, %v1108_v35  ;;  %v1376_v56 = vadd.f32 %v1312_v0, %v1241_v6  ;;  %v1626_v1 = vmax.f32 %v1562_v63, %v1564_v25  ;;  %v1043_v54 = vld [vmem:[#allocation2 + $0xd0] sm:$0xff]  ;;  %980 = vst.msk [vmem:[#allocation2 + $0xf8] sm:$0xff] %vm564_vm0, %v779_v21 }
  0xf2   : > { %979 = vst.msk [vmem:[#allocation2 + $0xf0] sm:$0xff] %vm564_vm0, %v774_v41  ;;  %v4675_v26 = vadd.f32 %v4476_v38, %v1443_v31  ;;  %v1446_v46 = vmul.f32 %v4465_v32, %v1377_v36  ;;  %v1627_v35 = vmax.f32 %v1563_v58, %v1565_v20  ;;  %v1113_v8 = vmul.f32 %v4435_v11, %v1044_v43 }
  0xf3   : > { %v1577_v48 = vmax.f32 %v4666_v55, 0.0  ;;  %v1445_v63 = vmul.f32 %v4465_v32, %v1376_v56  ;;  %1658 = vst.msk [vmem:[#allocation3 + $0x20] sm:$0xff] %vm564_vm0, %v1626_v1  ;;  %v1182_v25 = vmul.f32 %v4442_v13, %v1044_v43  ;;  %v1315_v6 = vmul.f32 %v4448_v19, %v1044_v43 }
  0xf4   : > { %v1576_v42 = vmax.f32 %v4675_v26, 0.0  ;;  %v4690_v16 = vadd.f32 %v4476_v38, %v1446_v46  ;;  %1659 = vst.msk [vmem:[#allocation3 + $0x28] sm:$0xff] %vm564_vm0, %v1627_v35  ;;  %v1112_v44 = vmul.f32 %v4435_v11, %v1043_v54  ;;  %v1181_v58 = vmul.f32 %v4442_v13, %v1043_v54  ;;  %v1046_v4 = vld [vmem:[#allocation2 + $0xe8] sm:$0xff]  ;;  %v789_v20 = vpop.permute.xlu1 %788  ;;  %v784_v14 = vpop.permute.xlu0 %783  ;;  %v1045_v36 = vld [vmem:[#allocation2 + $0xe0] sm:$0xff] }
  0xf5   : > { %v4696_v18 = vadd.f32 %v4476_v38, %v1445_v63  ;;  %v1246_v59 = vadd.f32 %v1182_v25, %v1111_v7  ;;  %v1379_v0 = vadd.f32 %v1315_v6, %v1244_v27  ;;  %v1314_v31 = vmul.f32 %v4448_v19, %v1043_v54  ;;  %982 = vst.msk [vmem:[#allocation2 + $0x108] sm:$0xff] %vm564_vm0, %v789_v20 }
  0xf6   : > { %981 = vst.msk [vmem:[#allocation2 + $0x100] sm:$0xff] %vm564_vm0, %v784_v14  ;;  %v1579_v43 = vmax.f32 %v4690_v16, 0.0  ;;  %v1245_v21 = vadd.f32 %v1181_v58, %v1110_v15  ;;  %v1115_v41 = vmul.f32 %v4435_v11, %v1046_v4  ;;  %v1184_v56 = vmul.f32 %v4442_v13, %v1046_v4 }
  0xf7   : > { %v1578_v1 = vmax.f32 %v4696_v18, 0.0  ;;  %v1448_v46 = vmul.f32 %v4465_v32, %v1379_v0  ;;  %v1378_v7 = vadd.f32 %v1314_v31, %v1243_v53  ;;  %v1317_v27 = vmul.f32 %v4448_v19, %v1046_v4 }
  0xf8   : > { %v1248_v54 = vadd.f32 %v1184_v56, %v1113_v8  ;;  %v1114_v35 = vmul.f32 %v4435_v11, %v1045_v36  ;;  %v1183_v63 = vmul.f32 %v4442_v13, %v1045_v36  ;;  %v1316_v25 = vmul.f32 %v4448_v19, %v1045_v36  ;;  %v1048_v6 = vld [vmem:[#allocation2 + $0xf8] sm:$0xff]  ;;  %v799_v15 = vpop.permute.xlu1 %798  ;;  %v794_v58 = vpop.permute.xlu0 %793 }
  0xf9   : > { %v4711_v20 = vadd.f32 %v4476_v38, %v1448_v46  ;;  %v1447_v14 = vmul.f32 %v4465_v32, %v1378_v7  ;;  %v1381_v3 = vadd.f32 %v1317_v27, %v1246_v59  ;;  %v1628_v53 = vmax.f32 %v1566_v47, %v1568_v24  ;;  %v1047_v8 = vld [vmem:[#allocation2 + $0xf0] sm:$0xff]  ;;  %984 = vst.msk [vmem:[#allocation2 + $0x118] sm:$0xff] %vm564_vm0, %v799_v15 }
  0xfa   : > { %983 = vst.msk [vmem:[#allocation2 + $0x110] sm:$0xff] %vm564_vm0, %v794_v58  ;;  %v1694_v4 = vld [vmem:[#allocation3 + $0x20] sm:$0xff]  ;;  %v1247_v0 = vadd.f32 %v1183_v63, %v1112_v44  ;;  %v1380_v31 = vadd.f32 %v1316_v25, %v1245_v21  ;;  %v1629_v36 = vmax.f32 %v1567_v52, %v1569_v17  ;;  %v1117_v59 = vmul.f32 %v4435_v11, %v1048_v6 }
  0xfb   : > { %v1695_v56 = vld [vmem:[#allocation3 + $0x28] sm:$0xff]  ;;  %v1581_v10 = vmax.f32 %v4711_v20, 0.0  ;;  %v4727_v45 = vadd.f32 %v4476_v38, %v1447_v14  ;;  %v1450_v47 = vmul.f32 %v4465_v32, %v1381_v3  ;;  %1660 = vst.msk [vmem:[#allocation3 + $0x30] sm:$0xff] %vm564_vm0, %v1628_v53  ;;  %v1186_v24 = vmul.f32 %v4442_v13, %v1048_v6 }
  0xfc   : > { %v4732_v44 = vpack.c.bf16 %v1695_v56, %v1694_v4  ;;  %v1449_v61 = vmul.f32 %v4465_v32, %v1380_v31  ;;  %1661 = vst.msk [vmem:[#allocation3 + $0x38] sm:$0xff] %vm564_vm0, %v1629_v36  ;;  %v1319_v33 = vmul.f32 %v4448_v19, %v1048_v6  ;;  %v1116_v52 = vmul.f32 %v4435_v11, %v1047_v8  ;;  %v1050_v17 = vld [vmem:[#allocation2 + $0x108] sm:$0xff]  ;;  %v809_v21 = vpop.permute.xlu1 %808  ;;  %v804_v46 = vpop.permute.xlu0 %803 }
  0xfd   : > { %v1580_v7 = vmax.f32 %v4727_v45, 0.0  ;;  %v4740_v3 = vadd.f32 %v4476_v38, %v1450_v47  ;;  %v1250_v27 = vadd.f32 %v1186_v24, %v1115_v41  ;;  %v1185_v63 = vmul.f32 %v4442_v13, %v1047_v8  ;;  %v1049_v25 = vld [vmem:[#allocation2 + $0x100] sm:$0xff]  ;;  %986 = vst.msk [vmem:[#allocation2 + $0x128] sm:$0xff] %vm564_vm0, %v809_v21  ;;  %985 = vst.msk [vmem:[#allocation2 + $0x120] sm:$0xff] %vm564_vm0, %v804_v46 }
  0xfe   : > { %3708 = vmatmul.mubr.msk.bf16.vlgmr.msra.gmra.mrb[0].mxu0 %vm564_vm0, %v4732_v44  ;;  %v4748_v6 = vadd.f32 %v4476_v38, %v1449_v61  ;;  %v1383_v15 = vadd.f32 %v1319_v33, %v1248_v54  ;;  %v1318_v58 = vmul.f32 %v4448_v19, %v1047_v8  ;;  %v1119_v14 = vmul.f32 %v4435_v11, %v1050_v17 }
  0xff   : > { %v1583_v41 = vmax.f32 %v4740_v3, 0.0  ;;  %v1249_v53 = vadd.f32 %v1185_v63, %v1114_v35  ;;  %v1188_v4 = vmul.f32 %v4442_v13, %v1050_v17  ;;  %v1321_v31 = vmul.f32 %v4448_v19, %v1050_v17  ;;  %3740 = vmatpush3.bf16.msra.mxu0 %v4415_v57  ;;  %v4764_v35 = vld [vmem:[%s5651_s3 + $0x18] sm:$0xff]  }
 0x100   : > { %v1582_v36 = vmax.f32 %v4748_v6, 0.0  ;;  %v1452_v56 = vmul.f32 %v4465_v32, %v1383_v15  ;;  %v1382_v47 = vadd.f32 %v1318_v58, %v1247_v0  ;;  %v1118_v54 = vmul.f32 %v4435_v11, %v1049_v25  ;;  %v1052_v24 = vld [vmem:[#allocation2 + $0x118] sm:$0xff]  ;;  %v819_v8 = vpop.permute.xlu1 %818  ;;  %v814_v61 = vpop.permute.xlu0 %813  ;;  %4019 = vmatprep.subr.msk.bf16.mxu0 %vm1805_vm1, %v4457_v23 }
 0x101   : > { %v1252_v33 = vadd.f32 %v1188_v4, %v1117_v59  ;;  %v1385_v57 = vadd.f32 %v1321_v31, %v1250_v27  ;;  %v1187_v17 = vmul.f32 %v4442_v13, %v1049_v25  ;;  %v1320_v21 = vmul.f32 %v4448_v19, %v1049_v25  ;;  %988 = vst.msk [vmem:[#allocation2 + $0x138] sm:$0xff] %vm564_vm0, %v819_v8  ;;  %v1051_v63 = vld [vmem:[#allocation2 + $0x110] sm:$0xff] }
 0x102   : > { %987 = vst.msk [vmem:[#allocation2 + $0x130] sm:$0xff] %vm564_vm0, %v814_v61  ;;  %v1696_v0 = vld [vmem:[#allocation3 + $0x30] sm:$0xff]  ;;  %v4771_v46 = vadd.f32 %v4476_v38, %v1452_v56  ;;  %v1451_v23 = vmul.f32 %v4465_v32, %v1382_v47  ;;  %v1630_v59 = vmax.f32 %v1570_v2, %v1572_v37  ;;  %v1631_v27 = vmax.f32 %v1571_v50, %v1573_v28 }
 0x103   : > { %v1697_v25 = vld [vmem:[#allocation3 + $0x38] sm:$0xff]  ;;  %v1454_v15 = vmul.f32 %v4465_v32, %v1385_v57  ;;  %v1251_v58 = vadd.f32 %v1187_v17, %v1116_v52  ;;  %v1384_v4 = vadd.f32 %v1320_v21, %v1249_v53  ;;  %v1121_v31 = vmul.f32 %v4435_v11, %v1052_v24  ;;  %3742 = vmatpush3.bf16.msra.mxu0 %v4480_v39 }
 0x104   : > { %v4785_v56 = vpack.c.bf16 %v1697_v25, %v1696_v0  ;;  %v1585_v51 = vmax.f32 %v4771_v46, 0.0  ;;  %v4789_v2 = vadd.f32 %v4476_v38, %v1451_v23  ;;  %1662 = vst.msk [vmem:[#allocation3 + $0x40] sm:$0xff] %vm564_vm0, %v1630_v59  ;;  %1663 = vst.msk [vmem:[#allocation3 + $0x48] sm:$0xff] %vm564_vm0, %v1631_v27  ;;  %v1190_v12 = vmul.f32 %v4442_v13, %v1052_v24  ;;  %v1054_v50 = vld [vmem:[#allocation2 + $0x128] sm:$0xff]  ;;  %v829_v5 = vpop.permute.xlu1 %828  ;;  %v824_v28 = vpop.permute.xlu0 %823  ;;  %v1053_v57 = vld [vmem:[#allocation2 + $0x120] sm:$0xff] }
 0x105   : > { %3775 = vmatprep.subr.bf16.mxu0 %v4764_v35  ;;  %v4796_v39 = vadd.f32 %v4476_v38, %v1454_v15  ;;  %v1453_v29 = vmul.f32 %v4465_v32, %v1384_v4  ;;  %v1323_v37 = vmul.f32 %v4448_v19, %v1052_v24  ;;  %v1120_v52 = vmul.f32 %v4435_v11, %v1051_v63 }
 0x106   : > { %990 = vst.msk [vmem:[#allocation2 + $0x148] sm:$0xff] %vm564_vm0, %v829_v5  ;;  %989 = vst.msk [vmem:[#allocation2 + $0x140] sm:$0xff] %vm564_vm0, %v824_v28  ;;  %3711 = vmatprep.mubr.msk.bf16.mxu0 %vm564_vm0, %v4785_v56  ;;  %v1584_v53 = vmax.f32 %v4789_v2, 0.0  ;;  %v1254_v47 = vadd.f32 %v1190_v12, %v1119_v14  ;;  %v1189_v8 = vmul.f32 %v4442_v13, %v1051_v63 }
 0x107   : > { %v1322_v61 = vmul.f32 %v4448_v19, %v1051_v63  ;;  %v1587_v17 = vmax.f32 %v4796_v39, 0.0  ;;  %v4810_v24 = vadd.f32 %v4476_v38, %v1453_v29  ;;  %v1387_v21 = vadd.f32 %v1323_v37, %v1252_v33 }
 0x108   : > { %v1123_v0 = vmul.f32 %v4435_v11, %v1054_v50  ;;  %v1253_v23 = vadd.f32 %v1189_v8, %v1118_v54  ;;  %v1192_v27 = vmul.f32 %v4442_v13, %v1054_v50  ;;  %v1325_v25 = vmul.f32 %v4448_v19, %v1054_v50  ;;  %v839_v14 = vpop.permute.xlu1 %838  ;;  %v834_v15 = vpop.permute.xlu0 %833  ;;  %v1056_v28 = vld [vmem:[#allocation2 + $0x138] sm:$0xff] }
 0x109   : > { %v1386_v59 = vadd.f32 %v1322_v61, %v1251_v58  ;;  %v1586_v4 = vmax.f32 %v4810_v24, 0.0  ;;  %v1456_v63 = vmul.f32 %v4465_v32, %v1387_v21  ;;  %v1122_v12 = vmul.f32 %v4435_v11, %v1053_v57  ;;  %992 = vst.msk [vmem:[#allocation2 + $0x158] sm:$0xff] %vm564_vm0, %v839_v14  ;;  %991 = vst.msk [vmem:[#allocation2 + $0x150] sm:$0xff] %vm564_vm0, %v834_v15 }
 0x10a   : > { %v1191_v5 = vmul.f32 %v4442_v13, %v1053_v57  ;;  %v1256_v33 = vadd.f32 %v1192_v27, %v1121_v31  ;;  %v1389_v58 = vadd.f32 %v1325_v25, %v1254_v47  ;;  %v1324_v50 = vmul.f32 %v4448_v19, %v1053_v57  ;;  %v1055_v47 = vld [vmem:[#allocation2 + $0x130] sm:$0xff] }
 0x10b   : > { %v1455_v54 = vmul.f32 %v4465_v32, %v1386_v59  ;;  %v1698_v29 = vld [vmem:[#allocation3 + $0x40] sm:$0xff]  ;;  %v1699_v37 = vld [vmem:[#allocation3 + $0x48] sm:$0xff]  ;;  %v4824_v8 = vadd.f32 %v4476_v38, %v1456_v63  ;;  %v1632_v21 = vmax.f32 %v1574_v30, %v1576_v42  ;;  %v1633_v31 = vmax.f32 %v1575_v60, %v1577_v48 }
 0x10c   : > { %v1255_v61 = vadd.f32 %v1191_v5, %v1120_v52  ;;  %v4834_v59 = vpack.c.bf16 %v1699_v37, %v1698_v29  ;;  %v1458_v27 = vmul.f32 %v4465_v32, %v1389_v58  ;;  %v1388_v25 = vadd.f32 %v1324_v50, %v1253_v23  ;;  %v849_v52 = vpop.permute.xlu1 %848  ;;  %v844_v14 = vpop.permute.xlu0 %843 }
 0x10d   : > { %v4837_v57 = vadd.f32 %v4476_v38, %v1455_v54  ;;  %v1589_v26 = vmax.f32 %v4824_v8, 0.0  ;;  %1664 = vst.msk [vmem:[#allocation3 + $0x50] sm:$0xff] %vm564_vm0, %v1632_v21  ;;  %1665 = vst.msk [vmem:[#allocation3 + $0x58] sm:$0xff] %vm564_vm0, %v1633_v31  ;;  %v1125_v34 = vmul.f32 %v4435_v11, %v1056_v28  ;;  %v1194_v60 = vmul.f32 %v4442_v13, %v1056_v28  ;;  %v1058_v30 = vld [vmem:[#allocation2 + $0x148] sm:$0xff]  ;;  %v1057_v58 = vld [vmem:[#allocation2 + $0x140] sm:$0xff] }
 0x10e   : > { %v1327_v9 = vmul.f32 %v4448_v19, %v1056_v28  ;;  %994 = vst.msk [vmem:[#allocation2 + $0x168] sm:$0xff] %vm564_vm0, %v849_v52  ;;  %993 = vst.msk [vmem:[#allocation2 + $0x160] sm:$0xff] %vm564_vm0, %v844_v14  ;;  %3712 = vmatmul.mubr.msk.bf16.gmra.mrb[4].mxu0 %vm564_vm0, %v4834_v59  ;;  %v4852_v48 = vadd.f32 %v4476_v38, %v1458_v27  ;;  %v1457_v42 = vmul.f32 %v4465_v32, %v1388_v25 }
 0x10f   : > { %v1588_v55 = vmax.f32 %v4837_v57, 0.0  ;;  %v1124_v23 = vmul.f32 %v4435_v11, %v1055_v47  ;;  %v1258_v15 = vadd.f32 %v1194_v60, %v1123_v0  ;;  %v1193_v5 = vmul.f32 %v4442_v13, %v1055_v47 }
 0x110   : > { %v1391_v63 = vadd.f32 %v1327_v9, %v1256_v33  ;;  %v1326_v54 = vmul.f32 %v4448_v19, %v1055_v47  ;;  %v1591_v50 = vmax.f32 %v4852_v48, 0.0  ;;  %v4860_v28 = vadd.f32 %v4476_v38, %v1457_v42  ;;  %v859_v21 = vpop.permute.xlu1 %858  ;;  %v854_v31 = vpop.permute.xlu0 %853  ;;  %v1060_v52 = vld [vmem:[#allocation2 + $0x158] sm:$0xff] }
 0x111   : > { %v1127_v29 = vmul.f32 %v4435_v11, %v1058_v30  ;;  %v1196_v37 = vmul.f32 %v4442_v13, %v1058_v30  ;;  %v1257_v0 = vadd.f32 %v1193_v5, %v1122_v12  ;;  %v1329_v25 = vmul.f32 %v4448_v19, %v1058_v30  ;;  %996 = vst.msk [vmem:[#allocation2 + $0x178] sm:$0xff] %vm564_vm0, %v859_v21 }
 0x112   : > { %v1460_v27 = vmul.f32 %v4465_v32, %v1391_v63  ;;  %v1390_v33 = vadd.f32 %v1326_v54, %v1255_v61  ;;  %995 = vst.msk [vmem:[#allocation2 + $0x170] sm:$0xff] %vm564_vm0, %v854_v31  ;;  %v1590_v47 = vmax.f32 %v4860_v28, 0.0  ;;  %v1126_v60 = vmul.f32 %v4435_v11, %v1057_v58  ;;  %v1059_v63 = vld [vmem:[#allocation2 + $0x150] sm:$0xff] }
 0x113   : > { %v1260_v14 = vadd.f32 %v1196_v37, %v1125_v34  ;;  %v1195_v9 = vmul.f32 %v4442_v13, %v1057_v58  ;;  %v1393_v61 = vadd.f32 %v1329_v25, %v1258_v15  ;;  %v1328_v30 = vmul.f32 %v4448_v19, %v1057_v58 }
 0x114   : > { %v4872_v42 = vadd.f32 %v4476_v38, %v1460_v27  ;;  %v1459_v12 = vmul.f32 %v4465_v32, %v1390_v33  ;;  %v1700_v5 = vld [vmem:[#allocation3 + $0x50] sm:$0xff]  ;;  %v1701_v54 = vld [vmem:[#allocation3 + $0x58] sm:$0xff]  ;;  %v1634_v34 = vmax.f32 %v1578_v1, %v1580_v7  ;;  %v1635_v37 = vmax.f32 %v1579_v43, %v1581_v10  ;;  %v869_v27 = vpop.permute.xlu1 %868  ;;  %v864_v15 = vpop.permute.xlu0 %863 }
 0x115   : > { %v1259_v21 = vadd.f32 %v1195_v9, %v1124_v23  ;;  %v1129_v31 = vmul.f32 %v4435_v11, %v1060_v52  ;;  %v4885_v33 = vpack.c.bf16 %v1701_v54, %v1700_v5  ;;  %v1462_v45 = vmul.f32 %v4465_v32, %v1393_v61  ;;  %v1062_v18 = vld [vmem:[#allocation2 + $0x168] sm:$0xff]  ;;  %998 = vst.msk [vmem:[#allocation2 + $0x188] sm:$0xff] %vm564_vm0, %v869_v27  ;;  %v1061_v9 = vld [vmem:[#allocation2 + $0x160] sm:$0xff] }
 0x116   : > { %v1593_v58 = vmax.f32 %v4872_v42, 0.0  ;;  %v4889_v23 = vadd.f32 %v4476_v38, %v1459_v12  ;;  %997 = vst.msk [vmem:[#allocation2 + $0x180] sm:$0xff] %vm564_vm0, %v864_v15  ;;  %v1392_v16 = vadd.f32 %v1328_v30, %v1257_v0  ;;  %1666 = vst.msk [vmem:[#allocation3 + $0x60] sm:$0xff] %vm564_vm0, %v1634_v34  ;;  %v1198_v43 = vmul.f32 %v4442_v13, %v1060_v52 }
 0x117   : > { %1667 = vst.msk [vmem:[#allocation3 + $0x68] sm:$0xff] %vm564_vm0, %v1635_v37  ;;  %v1331_v1 = vmul.f32 %v4448_v19, %v1060_v52  ;;  %v1128_v20 = vmul.f32 %v4435_v11, %v1059_v63  ;;  %3715 = vmatprep.mubr.msk.bf16.mxu0 %vm564_vm0, %v4885_v33  ;;  %v4903_v7 = vadd.f32 %v4476_v38, %v1462_v45  ;;  %v4911_v11 = vld [vmem:[%s5650_s2] ss:$0 sm:$0xff] }
 0x118   : > { %v1592_v10 = vmax.f32 %v4889_v23, 0.0  ;;  %v1197_v0 = vmul.f32 %v4442_v13, %v1059_v63  ;;  %v1330_v25 = vmul.f32 %v4448_v19, %v1059_v63  ;;  %v1461_v12 = vmul.f32 %v4465_v32, %v1392_v16  ;;  %v879_v5 = vpop.permute.xlu1 %878  ;;  %v874_v54 = vpop.permute.xlu0 %873  ;;  %v4918_v19 = vld [vmem:[%s5650_s2 + $0x1] ss:$0 sm:$0xff] }
 0x119   : > { %v1262_v61 = vadd.f32 %v1198_v43, %v1127_v29  ;;  %v1395_v30 = vadd.f32 %v1331_v1, %v1260_v14  ;;  %v1131_v52 = vmul.f32 %v4911_v11, %v1062_v18  ;;  %v1595_v34 = vmax.f32 %v4903_v7, 0.0  ;;  %1000 = vst.msk [vmem:[#allocation2 + $0x198] sm:$0xff] %vm564_vm0, %v879_v5  ;;  %999 = vst.msk [vmem:[#allocation2 + $0x190] sm:$0xff] %vm564_vm0, %v874_v54  ;;  %v1064_v1 = vld [vmem:[#allocation2 + $0x178] sm:$0xff] }
 0x11a   : > { %v1261_v37 = vadd.f32 %v1197_v0, %v1126_v60  ;;  %v1394_v13 = vadd.f32 %v1330_v25, %v1259_v21  ;;  %v1200_v29 = vmul.f32 %v4918_v19, %v1062_v18  ;;  %v4924_v14 = vadd.f32 %v4476_v38, %v1461_v12  ;;  %v4930_v60 = vld [vmem:[%s5650_s2 + $0x2] ss:$0 sm:$0xff] }
 0x11b   : > { %v1464_v63 = vmul.f32 %v4465_v32, %v1395_v30  ;;  %v1333_v21 = vmul.f32 %v4930_v60, %v1062_v18  ;;  %v1130_v27 = vmul.f32 %v4911_v11, %v1061_v9  ;;  %v1199_v16 = vmul.f32 %v4918_v19, %v1061_v9  ;;  %v1063_v30 = vld [vmem:[#allocation2 + $0x170] sm:$0xff] }
 0x11c   : > { %v1463_v15 = vmul.f32 %v4465_v32, %v1394_v13  ;;  %v1264_v45 = vadd.f32 %v1200_v29, %v1129_v31  ;;  %v1332_v43 = vmul.f32 %v4930_v60, %v1061_v9  ;;  %v1594_v0 = vmax.f32 %v4924_v14, 0.0  ;;  %v889_v5 = vpop.permute.xlu1 %888  ;;  %v884_v32 = vpop.permute.xlu0 %883 }
 0x11d   : > { %v4939_v25 = vadd.f32 %v4476_v38, %v1464_v63  ;;  %v1397_v12 = vadd.f32 %v1333_v21, %v1262_v61  ;;  %v1636_v18 = vmax.f32 %v1582_v36, %v1584_v53  ;;  %v1702_v31 = vld [vmem:[#allocation3 + $0x60] sm:$0xff]  ;;  %v1263_v9 = vadd.f32 %v1199_v16, %v1128_v20  ;;  %v1066_v63 = vld [vmem:[#allocation2 + $0x188] sm:$0xff]  ;;  %1002 = vst.msk [vmem:[#allocation2 + $0x1a8] sm:$0xff] %vm564_vm0, %v889_v5 }
 0x11e   : > { %v1703_v54 = vld [vmem:[#allocation3 + $0x68] sm:$0xff]  ;;  %v4946_v13 = vadd.f32 %v4476_v38, %v1463_v15  ;;  %v1396_v29 = vadd.f32 %v1332_v43, %v1261_v37  ;;  %v1637_v61 = vmax.f32 %v1583_v41, %v1585_v51  ;;  %1001 = vst.msk [vmem:[#allocation2 + $0x1a0] sm:$0xff] %vm564_vm0, %v884_v32  ;;  %v4960_v38 = vld [vmem:[%s5650_s2 + $0x3] ss:$0 sm:$0xff]  ;;  %v1133_v3 = vmul.f32 %v4911_v11, %v1064_v1 }
 0x11f   : > { %v4954_v6 = vpack.c.bf16 %v1703_v54, %v1702_v31  ;;  %v1597_v36 = vmax.f32 %v4939_v25, 0.0  ;;  %v4963_v2 = vmul.f32 %v4960_v38, %v1397_v12  ;;  %1668 = vst.msk [vmem:[#allocation3 + $0x70] sm:$0xff] %vm564_vm0, %v1636_v18  ;;  %v1202_v51 = vmul.f32 %v4918_v19, %v1064_v1  ;;  %v1065_v20 = vld [vmem:[#allocation2 + $0x180] sm:$0xff] }
 0x120   : > { %v1596_v41 = vmax.f32 %v4946_v13, 0.0  ;;  %v4969_v46 = vmul.f32 %v4960_v38, %v1396_v29  ;;  %1669 = vst.msk [vmem:[#allocation3 + $0x78] sm:$0xff] %vm564_vm0, %v1637_v61  ;;  %v1335_v53 = vmul.f32 %v4930_v60, %v1064_v1  ;;  %v1132_v37 = vmul.f32 %v4911_v11, %v1063_v30  ;;  %v899_v43 = vpop.permute.xlu1 %898  ;;  %v894_v12 = vpop.permute.xlu0 %893  ;;  %v1068_v61 = vld [vmem:[#allocation2 + $0x198] sm:$0xff] }
 0x121   : > { %3716 = vmatmul.mubr.msk.bf16.gmra.mrb[8].mxu0 %vm564_vm0, %v4954_v6  ;;  %v1201_v21 = vmul.f32 %v4918_v19, %v1063_v30  ;;  %v1334_v15 = vmul.f32 %v4930_v60, %v1063_v30  ;;  %v1135_v16 = vmul.f32 %v4911_v11, %v1066_v63  ;;  %v1266_v18 = vadd.f32 %v1202_v51, %v1131_v52 }
 0x122   : > { %v1399_v5 = vadd.f32 %v1335_v53, %v1264_v45  ;;  %v1204_v32 = vmul.f32 %v4918_v19, %v1066_v63  ;;  %v1337_v1 = vmul.f32 %v4930_v60, %v1066_v63  ;;  %1004 = vst.msk [vmem:[#allocation2 + $0x1b8] sm:$0xff] %vm564_vm0, %v899_v43  ;;  %1003 = vst.msk [vmem:[#allocation2 + $0x1b0] sm:$0xff] %vm564_vm0, %v894_v12  ;;  %v1067_v53 = vld [vmem:[#allocation2 + $0x190] sm:$0xff] }
 0x123   : > { %v1265_v31 = vadd.f32 %v1201_v21, %v1130_v27  ;;  %v1398_v54 = vadd.f32 %v1334_v15, %v1263_v9  ;;  %v1134_v29 = vmul.f32 %v4911_v11, %v1065_v20  ;;  %v1203_v30 = vmul.f32 %v4918_v19, %v1065_v20 }
 0x124   : > { %v4987_v62 = vmul.f32 %v4960_v38, %v1399_v5  ;;  %v1268_v52 = vadd.f32 %v1204_v32, %v1133_v3  ;;  %v1401_v45 = vadd.f32 %v1337_v1, %v1266_v18  ;;  %v1336_v51 = vmul.f32 %v4930_v60, %v1065_v20  ;;  %v909_v21 = vpop.permute.xlu1 %908  ;;  %v904_v3 = vpop.permute.xlu0 %903  ;;  %v1070_v5 = vld [vmem:[#allocation2 + $0x1a8] sm:$0xff] }
 0x125   : > { %v4991_v63 = vmul.f32 %v4960_v38, %v1398_v54  ;;  %v1267_v43 = vadd.f32 %v1203_v30, %v1132_v37  ;;  %v1638_v27 = vmax.f32 %v1586_v4, %v1588_v55  ;;  %v1639_v9 = vmax.f32 %v1587_v17, %v1589_v26  ;;  %1006 = vst.msk [vmem:[#allocation2 + $0x1c8] sm:$0xff] %vm564_vm0, %v909_v21  ;;  %v5017_v26 = vld [vmem:[%s5650_s2 + $0x4] ss:$0 sm:$0xff] }
 0x126   : > { %v1704_v15 = vld [vmem:[#allocation3 + $0x70] sm:$0xff]  ;;  %v1470_v20 = vmul.f32 %v4960_v38, %v1401_v45  ;;  %v1400_v12 = vadd.f32 %v1336_v51, %v1265_v31  ;;  %v1137_v18 = vmul.f32 %v4911_v11, %v1068_v61  ;;  %v1206_v37 = vmul.f32 %v4918_v19, %v1068_v61  ;;  %1005 = vst.msk [vmem:[#allocation2 + $0x1c0] sm:$0xff] %vm564_vm0, %v904_v3  ;;  %v1069_v31 = vld [vmem:[#allocation2 + $0x1a0] sm:$0xff] }
 0x127   : > { %v1705_v24 = vld [vmem:[#allocation3 + $0x78] sm:$0xff]  ;;  %1670 = vst.msk [vmem:[#allocation3 + $0x80] sm:$0xff] %vm564_vm0, %v1638_v27  ;;  %1671 = vst.msk [vmem:[#allocation3 + $0x88] sm:$0xff] %vm564_vm0, %v1639_v9  ;;  %v1339_v39 = vmul.f32 %v4930_v60, %v1068_v61  ;;  %v1136_v17 = vmul.f32 %v4911_v11, %v1067_v53  ;;  %v1205_v4 = vmul.f32 %v4918_v19, %v1067_v53 }
 0x128   : > { %v1338_v8 = vmul.f32 %v4930_v60, %v1067_v53  ;;  %v5012_v57 = vpack.c.bf16 %v1705_v24, %v1704_v15  ;;  %v5020_v55 = vadd.f32 %v5017_v26, %v1470_v20  ;;  %v1469_v32 = vmul.f32 %v4960_v38, %v1400_v12  ;;  %v919_v51 = vpop.permute.xlu1 %918  ;;  %v914_v53 = vpop.permute.xlu0 %913 }
 0x129   : > { %v1270_v1 = vadd.f32 %v1206_v37, %v1135_v16  ;;  %v1403_v54 = vadd.f32 %v1339_v39, %v1268_v52  ;;  %v1269_v30 = vadd.f32 %v1205_v4, %v1134_v29  ;;  %v1139_v45 = vmul.f32 %v4911_v11, %v1070_v5  ;;  %1008 = vst.msk [vmem:[#allocation2 + $0x1d8] sm:$0xff] %vm564_vm0, %v919_v51  ;;  %v1072_v15 = vld [vmem:[#allocation2 + $0x1b8] sm:$0xff] }
 0x12a   : > { %v1402_v61 = vadd.f32 %v1338_v8, %v1267_v43  ;;  %3719 = vmatprep.mubr.msk.bf16.mxu0 %vm564_vm0, %v5012_v57  ;;  %v1603_v27 = vmax.f32 %v5020_v55, 0.0  ;;  %v5028_v9 = vadd.f32 %v5017_v26, %v1469_v32  ;;  %v1208_v21 = vmul.f32 %v4918_v19, %v1070_v5  ;;  %1007 = vst.msk [vmem:[#allocation2 + $0x1d0] sm:$0xff] %vm564_vm0, %v914_v53  ;;  %v1071_v32 = vld [vmem:[#allocation2 + $0x1b0] sm:$0xff] }
 0x12b   : > { %v1341_v16 = vmul.f32 %v4930_v60, %v1070_v5  ;;  %v1472_v29 = vmul.f32 %v4960_v38, %v1403_v54  ;;  %v1138_v43 = vmul.f32 %v4911_v11, %v1069_v31  ;;  %v1207_v3 = vmul.f32 %v4918_v19, %v1069_v31 }
 0x12c   : > { %v1471_v52 = vmul.f32 %v4960_v38, %v1402_v61  ;;  %v1602_v20 = vmax.f32 %v5028_v9, 0.0  ;;  %v1272_v12 = vadd.f32 %v1208_v21, %v1137_v18  ;;  %v1340_v24 = vmul.f32 %v4930_v60, %v1069_v31  ;;  %v929_v54 = vpop.permute.xlu1 %928  ;;  %v924_v61 = vpop.permute.xlu0 %923  ;;  %v1074_v21 = vld [vmem:[#allocation2 + $0x1c8] sm:$0xff] }
 0x12d   : > { %v1405_v37 = vadd.f32 %v1341_v16, %v1270_v1  ;;  %v5041_v5 = vadd.f32 %v5017_v26, %v1472_v29  ;;  %v1271_v4 = vadd.f32 %v1207_v3, %v1136_v17  ;;  %v1640_v8 = vmax.f32 %v1590_v47, %v1592_v10  ;;  %1010 = vst.msk [vmem:[#allocation2 + $0x1e8] sm:$0xff] %vm564_vm0, %v929_v54 }
 0x12e   : > { %v5044_v39 = vadd.f32 %v5017_v26, %v1471_v52  ;;  %v1706_v51 = vld [vmem:[#allocation3 + $0x80] sm:$0xff]  ;;  %v1707_v18 = vld [vmem:[#allocation3 + $0x88] sm:$0xff]  ;;  %v1404_v31 = vadd.f32 %v1340_v24, %v1269_v30  ;;  %v1641_v53 = vmax.f32 %v1591_v50, %v1593_v58  ;;  %v1141_v17 = vmul.f32 %v4911_v11, %v1072_v15  ;;  %1009 = vst.msk [vmem:[#allocation2 + $0x1e0] sm:$0xff] %vm564_vm0, %v924_v61 }
 0x12f   : > { %v1474_v1 = vmul.f32 %v4960_v38, %v1405_v37  ;;  %v5058_v28 = vpack.c.bf16 %v1707_v18, %v1706_v51  ;;  %v1605_v47 = vmax.f32 %v5041_v5, 0.0  ;;  %1672 = vst.msk [vmem:[#allocation3 + $0x90] sm:$0xff] %vm564_vm0, %v1640_v8  ;;  %v1210_v42 = vmul.f32 %v4918_v19, %v1072_v15  ;;  %v1073_v30 = vld [vmem:[#allocation2 + $0x1c0] sm:$0xff] }
 0x130   : > { %v1604_v23 = vmax.f32 %v5044_v39, 0.0  ;;  %v1473_v50 = vmul.f32 %v4960_v38, %v1404_v31  ;;  %1673 = vst.msk [vmem:[#allocation3 + $0x98] sm:$0xff] %vm564_vm0, %v1641_v53  ;;  %v1343_v58 = vmul.f32 %v4930_v60, %v1072_v15  ;;  %v1140_v10 = vmul.f32 %v4911_v11, %v1071_v32  ;;  %v939_v37 = vpop.permute.xlu1 %938  ;;  %v934_v24 = vpop.permute.xlu0 %933 }
 0x131   : > { %v5065_v48 = vadd.f32 %v5017_v26, %v1474_v1  ;;  %3720 = vmatmul.mubr.msk.bf16.gmra.mrb[12].mxu0 %vm564_vm0, %v5058_v28  ;;  %v1274_v16 = vadd.f32 %v1210_v42, %v1139_v45  ;;  %v1209_v29 = vmul.f32 %v4918_v19, %v1071_v32  ;;  %v1342_v52 = vmul.f32 %v4930_v60, %v1071_v32  ;;  %v1076_v1 = vld [vmem:[#allocation2 + $0x1d8] sm:$0xff] }
 0x132   : > { %v1143_v3 = vmul.f32 %v4911_v11, %v1074_v21  ;;  %v5078_v54 = vadd.f32 %v5017_v26, %v1473_v50  ;;  %v1407_v15 = vadd.f32 %v1343_v58, %v1272_v12  ;;  %v1212_v61 = vmul.f32 %v4918_v19, %v1074_v21  ;;  %1012 = vst.msk [vmem:[#allocation2 + $0x1f8] sm:$0xff] %vm564_vm0, %v939_v37 }
 0x133   : > { %v1607_v8 = vmax.f32 %v5065_v48, 0.0  ;;  %1011 = vst.msk [vmem:[#allocation2 + $0x1f0] sm:$0xff] %vm564_vm0, %v934_v24  ;;  %v1273_v45 = vadd.f32 %v1209_v29, %v1138_v43  ;;  %v1406_v51 = vadd.f32 %v1342_v52, %v1271_v4  ;;  %v1345_v32 = vmul.f32 %v4930_v60, %v1074_v21  ;;  %v1075_v4 = vld [vmem:[#allocation2 + $0x1d0] sm:$0xff] }
 0x134   : > { %v1142_v18 = vmul.f32 %v4911_v11, %v1073_v30  ;;  %v1606_v31 = vmax.f32 %v5078_v54, 0.0  ;;  %v1476_v53 = vmul.f32 %v4960_v38, %v1407_v15  ;;  %v1276_v42 = vadd.f32 %v1212_v61, %v1141_v17  ;;  %v949_v21 = vpop.permute.xlu1 %948  ;;  %v944_v29 = vpop.permute.xlu0 %943 }
 0x135   : > { %v1211_v12 = vmul.f32 %v4918_v19, %v1073_v30  ;;  %v1475_v50 = vmul.f32 %v4960_v38, %v1406_v51  ;;  %v1409_v58 = vadd.f32 %v1345_v32, %v1274_v16  ;;  %v1344_v37 = vmul.f32 %v4930_v60, %v1073_v30  ;;  %1014 = vst.msk [vmem:[#allocation2 + $0x208] sm:$0xff] %vm564_vm0, %v949_v21 }
 0x136   : > { %v1642_v43 = vmax.f32 %v1594_v0, %v1596_v41  ;;  %v1708_v52 = vld [vmem:[#allocation3 + $0x90] sm:$0xff]  ;;  %v5095_v24 = vadd.f32 %v5017_v26, %v1476_v53  ;;  %v1643_v16 = vmax.f32 %v1595_v34, %v1597_v36  ;;  %v1145_v30 = vmul.f32 %v4911_v11, %v1076_v1  ;;  %1013 = vst.msk [vmem:[#allocation2 + $0x200] sm:$0xff] %vm564_vm0, %v944_v29  ;;  %v1077_v53 = vld [vmem:[#allocation2 + $0x1e0] sm:$0xff] }
 0x137   : > { %v1275_v17 = vadd.f32 %v1211_v12, %v1140_v10  ;;  %v1709_v14 = vld [vmem:[#allocation3 + $0x98] sm:$0xff]  ;;  %v5105_v0 = vadd.f32 %v5017_v26, %v1475_v50  ;;  %v1478_v13 = vmul.f32 %v4960_v38, %v1409_v58  ;;  %v1408_v41 = vadd.f32 %v1344_v37, %v1273_v45  ;;  %v1078_v10 = vld [vmem:[#allocation2 + $0x1e8] sm:$0xff]  ;;  %v1285_v37 = vld [vmem:[#allocation2 + $0x210] sm:$0xff] }
 0x138   : > { %1674 = vst.msk [vmem:[#allocation3 + $0xa0] sm:$0xff] %vm564_vm0, %v1642_v43  ;;  %v1214_v25 = vmul.f32 %v4918_v19, %v1076_v1  ;;  %v5110_v7 = vpack.c.bf16 %v1709_v14, %v1708_v52  ;;  %v1609_v34 = vmax.f32 %v5095_v24, 0.0  ;;  %1675 = vst.msk [vmem:[#allocation3 + $0xa8] sm:$0xff] %vm564_vm0, %v1643_v16  ;;  %v1347_v36 = vmul.f32 %v4930_v60, %v1076_v1 }
 0x139   : > { %v1144_v15 = vmul.f32 %v4911_v11, %v1075_v4  ;;  %v1608_v61 = vmax.f32 %v5105_v0, 0.0  ;;  %v5118_v51 = vadd.f32 %v5017_v26, %v1478_v13  ;;  %v1477_v45 = vmul.f32 %v4960_v38, %v1408_v41 }
 0x13a   : > { %v1278_v32 = vadd.f32 %v1214_v25, %v1143_v3  ;;  %3723 = vmatprep.mubr.msk.bf16.mxu0 %vm564_vm0, %v5110_v7  ;;  %v1411_v12 = vadd.f32 %v1347_v36, %v1276_v42  ;;  %v1213_v50 = vmul.f32 %v4918_v19, %v1075_v4  ;;  %v1346_v58 = vmul.f32 %v4930_v60, %v1075_v4 }
 0x13b   : > { %v1147_v1 = vmul.f32 %v4911_v11, %v1078_v10  ;;  %v5128_v43 = vadd.f32 %v5017_v26, %v1477_v45  ;;  %v1216_v21 = vmul.f32 %v4918_v19, %v1078_v10  ;;  %v1349_v3 = vmul.f32 %v4930_v60, %v1078_v10 }
 0x13c   : > { %v1480_v29 = vmul.f32 %v4960_v38, %v1411_v12  ;;  %v1277_v52 = vadd.f32 %v1213_v50, %v1142_v18  ;;  %v1410_v16 = vadd.f32 %v1346_v58, %v1275_v17  ;;  %v1146_v42 = vmul.f32 %v4911_v11, %v1077_v53  ;;  %v1080_v58 = vld [vmem:[#allocation2 + $0x1f8] sm:$0xff] }
 0x13d   : > { %v1280_v4 = vadd.f32 %v1216_v21, %v1145_v30  ;;  %v1413_v13 = vadd.f32 %v1349_v3, %v1278_v32  ;;  %v1215_v41 = vmul.f32 %v4918_v19, %v1077_v53  ;;  %v1348_v10 = vmul.f32 %v4930_v60, %v1077_v53 }
 0x13e   : > { %v5137_v36 = vadd.f32 %v5017_v26, %v1480_v29  ;;  %v1479_v45 = vmul.f32 %v4960_v38, %v1410_v16  ;;  %v1534_v18 = vadd.f32 %v5017_v26, %v4969_v46  ;;  %v1535_v30 = vadd.f32 %v5017_v26, %v4963_v2 }
 0x13f   : > { %v1710_v25 = vld [vmem:[#allocation3 + $0xa0] sm:$0xff]  ;;  %v1711_v17 = vld [vmem:[#allocation3 + $0xa8] sm:$0xff]  ;;  %v1482_v12 = vmul.f32 %v4960_v38, %v1413_v13  ;;  %v1279_v50 = vadd.f32 %v1215_v41, %v1144_v15  ;;  %v1536_v32 = vadd.f32 %v5017_v26, %v4991_v63  ;;  %v1412_v29 = vadd.f32 %v1348_v10, %v1277_v52  ;;  %v1079_v13 = vld [vmem:[#allocation2 + $0x1f0] sm:$0xff] }
 0x140   : > { %v5148_v21 = vpack.c.bf16 %v1711_v17, %v1710_v25  ;;  %v5152_v53 = vadd.f32 %v5017_v26, %v1479_v45  ;;  %v1537_v15 = vadd.f32 %v5017_v26, %v4987_v62  ;;  %v1598_v16 = vmax.f32 %v1534_v18, 0.0 }
 0x141   : > { %v5155_v46 = vadd.f32 %v5017_v26, %v1482_v12  ;;  %v1599_v2 = vmax.f32 %v1535_v30, 0.0  ;;  %v1481_v41 = vmul.f32 %v4960_v38, %v1412_v29  ;;  %v1600_v25 = vmax.f32 %v1536_v32, 0.0  ;;  %v1286_v12 = vld [vmem:[#allocation2 + $0x218] sm:$0xff]  ;;  %v1151_v30 = vld [vmem:[#allocation2 + $0x208] sm:$0xff] }
 0x142   : > { %3724 = vmatmul.mubr.msk.bf16.gmra.mrb[16].mxu0 %vm564_vm0, %v5148_v21  ;;  %v1612_v63 = vmax.f32 %v5152_v53, 0.0  ;;  %v1149_v45 = vmul.f32 %v4911_v11, %v1080_v58  ;;  %v5657_v10 = vpack.c.bf16 %v4486_v49, %v4482_v40  ;;  %v1601_v62 = vmax.f32 %v1537_v15, 0.0 }
 0x143   : > { %v1615_v52 = vmax.f32 %v5155_v46, 0.0  ;;  %v1218_v18 = vmul.f32 %v4918_v19, %v1080_v58  ;;  %v1351_v17 = vmul.f32 %v4930_v60, %v1080_v58  ;;  %v5172_v53 = vadd.f32 %v5017_v26, %v1481_v41 }
 0x144   : > { %3743 = vmatprep.mubr.msk.bf16.mxu0 %vm564_vm0, %v5657_v10  ;;  %v1644_v32 = vmax.f32 %v1598_v16, %v1600_v25  ;;  %v1148_v29 = vmul.f32 %v4911_v11, %v1079_v13  ;;  %v1217_v46 = vmul.f32 %v4918_v19, %v1079_v13  ;;  %v1645_v3 = vmax.f32 %v1599_v2, %v1601_v62  ;;  %v1150_v10 = vld [vmem:[#allocation2 + $0x200] sm:$0xff] }
 0x145   : > { %v1282_v40 = vadd.f32 %v1218_v18, %v1147_v1  ;;  %v1415_v49 = vadd.f32 %v1351_v17, %v1280_v4  ;;  %v1350_v15 = vmul.f32 %v4930_v60, %v1079_v13  ;;  %v1614_v14 = vmax.f32 %v5172_v53, 0.0 }
 0x146   : > { %1676 = vst.msk [vmem:[#allocation3 + $0xb0] sm:$0xff] %vm564_vm0, %v1644_v32  ;;  %v1281_v58 = vadd.f32 %v1217_v46, %v1146_v42  ;;  %v1355_v41 = vmul.f32 %v4930_v60, %v1286_v12  ;;  %v1220_v16 = vmul.f32 %v4918_v19, %v1151_v30  ;;  %1677 = vst.msk [vmem:[#allocation3 + $0xb8] sm:$0xff] %vm564_vm0, %v1645_v3  ;;  %v4055_v3 = vld [vmem:[%s5651_s3 + $0x20] ss:$0 sps:$4 sm:$0xff]   ;;  %v5659_v48 = vmax.f32 %v5137_v36, 0.0 }
 0x147   : > { %v1484_v11 = vmul.f32 %v4960_v38, %v1415_v49  ;;  %v1414_v25 = vadd.f32 %v1350_v15, %v1279_v50  ;;  %v1353_v1 = vmul.f32 %v4930_v60, %v1151_v30  ;;  %v1354_v4 = vmul.f32 %v4930_v60, %v1285_v37 }
 0x148   : > { %v1284_v2 = vadd.f32 %v1220_v16, %v1149_v45  ;;  %v1219_v13 = vmul.f32 %v4918_v19, %v1150_v10  ;;  %v1352_v62 = vmul.f32 %v4930_v60, %v1150_v10  ;;  %v1646_v42 = vmax.f32 %v1602_v20, %v1604_v23 }
 0x149   : > { %v1553_v50 = vadd.f32 %v5017_v26, %v1484_v11  ;;  %v1483_v18 = vmul.f32 %v4960_v38, %v1414_v25  ;;  %v1417_v17 = vadd.f32 %v1353_v1, %v1282_v40  ;;  %v1647_v19 = vmax.f32 %v1603_v27, %v1605_v47 }
 0x14a   : > { %3744 = vmatmul.mubr.msk.bf16.vlgmr.msra.gmra.mrb[0].mxu0 %vm564_vm0, %v4629_v22  ;;  %v1419_v60 = vadd.f32 %v1355_v41, %v1284_v2  ;;  %v1283_v9 = vadd.f32 %v1219_v13, %v1148_v29  ;;  %v1416_v20 = vadd.f32 %v1352_v62, %v1281_v58  ;;  %1678 = vst.msk [vmem:[#allocation3 + $0xc0] sm:$0xff] %vm564_vm0, %v1646_v42  ;;  %v2256_v12 = vsel %vm1805_vm1, %v4055_v3, 0  ;;  %v2146_v2 = vld [vmem:[#allocation3 + $0x20] sm:$0xff]  ;;  %v2147_v13 = vld [vmem:[#allocation3 + $0x28] sm:$0xff]  ;;  %v2148_v42 = vld [vmem:[#allocation3 + $0x30] sm:$0xff] }
 0x14b   : > { %v1648_v39 = vmax.f32 %v1606_v31, %v1608_v61  ;;  %3776 = vmatpush3.bf16.msra.mxu0 %v4764_v35  ;;  %v1617_v23 = vmax.f32 %v1553_v50, 0.0  ;;  %3747 = vmatprep.mubr.msk.bf16.mxu0 %vm564_vm0, %v4732_v44  ;;  %v1552_v55 = vadd.f32 %v5017_v26, %v1483_v18  ;;  %v1486_v22 = vmul.f32 %v4960_v38, %v1417_v17  ;;  %v2150_v50 = vld [vmem:[#allocation3 + $0x40] sm:$0xff]  ;;  %v2151_v18 = vld [vmem:[#allocation3 + $0x48] sm:$0xff] }
 0x14c   : > { %1679 = vst.msk [vmem:[#allocation3 + $0xc8] sm:$0xff] %vm564_vm0, %v1647_v19  ;;  %v1649_v27 = vmax.f32 %v1607_v8, %v1609_v34  ;;  %v1488_v5 = vmul.f32 %v4960_v38, %v1419_v60  ;;  %v1418_v47 = vadd.f32 %v1354_v4, %v1283_v9  ;;  %v1485_v35 = vmul.f32 %v4960_v38, %v1416_v20  ;;  %v4058_v60 = vld [vmem:[%s5652_s4 + $0x10] sm:$0xff]  }
 0x14d   : > { %1680 = vst.msk [vmem:[#allocation3 + $0xd0] sm:$0xff] %vm564_vm0, %v1648_v39  ;;  %v5658_v44 = vmax.f32 %v5128_v43, 0.0  ;;  %4020 = vmatprep.subr.msk.bf16.mxu0 %vm1805_vm1, %v4055_v3  ;;  %v1712_v31 = vld [vmem:[#allocation3 + $0xb0] sm:$0xff]  ;;  %v1616_v0 = vmax.f32 %v1552_v55, 0.0  ;;  %v1555_v61 = vadd.f32 %v5017_v26, %v1486_v22  ;;  %v5660_v8 = vmax.f32 %v5118_v51, 0.0  ;;  %v1713_v37 = vld [vmem:[#allocation3 + $0xb8] sm:$0xff] }
 0x14e   : > { %1681 = vst.msk [vmem:[#allocation3 + $0xd8] sm:$0xff] %vm564_vm0, %v1649_v27  ;;  %v1653_v34 = vmax.f32 %v1615_v52, %v1617_v23  ;;  %v1557_v45 = vadd.f32 %v5017_v26, %v1488_v5  ;;  %v1487_v43 = vmul.f32 %v4960_v38, %v1418_v47  ;;  %v5234_v30 = vpack.c.bf16 %v1713_v37, %v1712_v31  ;;  %v2149_v3 = vld [vmem:[#allocation3 + $0x38] sm:$0xff]  ;;  %v5335_v31 = vld [vmem:[%s5650_s2 + $0x5] ss:$0 sm:$0xff] }
 0x14f   : > { %v1650_v54 = vmax.f32 %v5658_v44, %v1612_v63  ;;  %v1651_v24 = vmax.f32 %v5660_v8, %v5659_v48  ;;  %v1554_v63 = vadd.f32 %v5017_v26, %v1485_v35  ;;  %v1652_v36 = vmax.f32 %v1614_v14, %v1616_v0  ;;  %3778 = vmatpush3.bf16.msra.mxu0 %v2256_v12 }
 0x150   : > { %1685 = vst.msk [vmem:[#allocation3 + $0xf8] sm:$0xff] %vm564_vm0, %v1653_v34  ;;  %v1619_v51 = vmax.f32 %v1555_v61, 0.0  ;;  %v1621_v52 = vmax.f32 %v1557_v45, 0.0  ;;  %v1556_v53 = vadd.f32 %v5017_v26, %v1487_v43  ;;  %3727 = vmatprep.mubr.msk.bf16.mxu1 %vm564_vm0, %v5234_v30  ;;  %v2178_v62 = vpack.c.bf16 %v2147_v13, %v2146_v2  ;;  %v5340_v61 = vld [vmem:[%s5650_s2 + $0x6] ss:$0 sm:$0xff] }
 0x151   : > { %1682 = vst.msk [vmem:[#allocation3 + $0xe0] sm:$0xff] %vm564_vm0, %v1650_v54  ;;  %1683 = vst.msk [vmem:[#allocation3 + $0xe8] sm:$0xff] %vm564_vm0, %v1651_v24  ;;  %v1714_v38 = vld [vmem:[#allocation3 + $0xc0] sm:$0xff]  ;;  %v1618_v29 = vmax.f32 %v1554_v63, 0.0  ;;  %v2179_v17 = vpack.c.bf16 %v2149_v3, %v2148_v42  ;;  %v2180_v19 = vpack.c.bf16 %v2151_v18, %v2150_v50 }
 0x152   : > { %1684 = vst.msk [vmem:[#allocation3 + $0xf0] sm:$0xff] %vm564_vm0, %v1652_v36  ;;  %v1655_v32 = vmax.f32 %v1619_v51, %v1621_v52  ;;  %v1620_v46 = vmax.f32 %v1556_v53, 0.0  ;;  %3748 = vmatmul.mubr.msk.bf16.gmra.mrb[4].mxu0 %vm564_vm0, %v4785_v56  ;;  %v2573_v51 = vld [vmem:[%s5650_s2 + $0xb] sm:$0xf] }
 0x153   : > { %v1715_v40 = vld [vmem:[#allocation3 + $0xc8] sm:$0xff]  ;;  %3751 = vmatprep.mubr.msk.bf16.mxu0 %vm564_vm0, %v4834_v59 }
 0x154   : > { %v1734_v14 = vpack.c.bf16 %v1715_v40, %v1714_v38  ;;  %v1716_v49 = vld [vmem:[#allocation3 + $0xd0] sm:$0xff]  ;;  %1687 = vst.msk [vmem:[#allocation3 + $0x108] sm:$0xff] %vm564_vm0, %v1655_v32  ;;  %v1654_v26 = vmax.f32 %v1618_v29, %v1620_v46  ;;  %v2574_v40 = vpack.c.bf16 %v2573_v51, %v2573_v51 }
 0x155   : > { %v1717_v15 = vld [vmem:[#allocation3 + $0xd8] sm:$0xff] }
 0x156   : > { %3728 = vmatmul.mubr.msk.bf16.vlgmr.msra.gmra.mrb[0].mxu1 %vm564_vm0, %v1734_v14  ;;  %v1735_v10 = vpack.c.bf16 %v1717_v15, %v1716_v49  ;;  %1686 = vst.msk [vmem:[#allocation3 + $0x100] sm:$0xff] %vm564_vm0, %v1654_v26 }
 0x157   : > { %v1721_v16 = vld [vmem:[#allocation3 + $0xf8] sm:$0xff] }
 0x158   : > { %v1718_v58 = vld [vmem:[#allocation3 + $0xe0] sm:$0xff]  ;;  %v1719_v41 = vld [vmem:[#allocation3 + $0xe8] sm:$0xff]  ;;  %3731 = vmatprep.mubr.msk.bf16.mxu1 %vm564_vm0, %v1735_v10 }
 0x159   : > { %v1720_v56 = vld [vmem:[#allocation3 + $0xf0] sm:$0xff]  ;;  %v1736_v11 = vpack.c.bf16 %v1719_v41, %v1718_v58 }
 0x15a   : > { %3752 = vmatmul.mubr.msk.bf16.gmra.mrb[8].mxu0 %vm564_vm0, %v4885_v33  ;;  %v1737_v59 = vpack.c.bf16 %v1721_v16, %v1720_v56 }
 0x15b   : > { %3755 = vmatprep.mubr.msk.bf16.mxu0 %vm564_vm0, %v4954_v6  ;;  %v1742_v1 = vld [vmem:[#allocation3 + $0x108] sm:$0xff] }
 0x15d   : > { %v1741_v25 = vld [vmem:[#allocation3 + $0x100] sm:$0xff] }
 0x15e   : > { %3732 = vmatmul.mubr.msk.bf16.gmra.mrb[4].mxu1 %vm564_vm0, %v1736_v11  ;;  %v1743_v4 = vpack.c.bf16 %v1742_v1, %v1741_v25  ;;  %v2654_v25 = vsel %vm2652_vm3, %v2574_v40, 0 }
 0x15f   : > { %3735 = vmatprep.mubr.msk.bf16.mxu1 %vm564_vm0, %v1737_v59 }
 0x162   : > { %3756 = vmatmul.mubr.msk.bf16.gmra.mrb[12].mxu0 %vm564_vm0, %v5012_v57 }
 0x163   : > { %3759 = vmatprep.mubr.msk.bf16.mxu0 %vm564_vm0, %v5058_v28 }
 0x166   : > { %3736 = vmatmul.mubr.msk.bf16.gmra.mrb[8].mxu1 %vm564_vm0, %v1743_v4 }
 0x16a   : > { %3760 = vmatmul.mubr.msk.bf16.gmra.mrb[16].mxu0 %vm564_vm0, %v5110_v7 }
 0x16b   : > { %3763 = vmatprep.mubr.msk.bf16.mxu0 %vm564_vm0, %v5148_v21 }
 0x172   : > { %3764 = vmatmul.mubr.msk.bf16.gmra.mrb[20].mxu0 %vm564_vm0, %v5234_v30 }
 0x173   : > { %3767 = vmatprep.mubr.msk.bf16.mxu0 %vm564_vm0, %v1734_v14 }
 0x17a   : > { %3768 = vmatmul.mubr.msk.bf16.gmra.mrb[24].mxu0 %vm564_vm0, %v1735_v10 }
 0x17b   : > { %3771 = vmatprep.mubr.msk.bf16.mxu0 %vm564_vm0, %v1736_v11 }
 0x182   : > { %3772 = vmatmul.mubr.msk.bf16.gmra.mrb[28].mxu0 %vm564_vm0, %v1737_v59 }
 0x183   : > { %3779 = vmatprep.mubr.msk.bf16.mxu0 %vm564_vm0, %v2178_v62 }
 0x18a   : > { %3780 = vmatmul.mubr.msk.bf16.vlgmr.msra.gmra.mrb[0].mxu0 %vm564_vm0, %v2179_v17 }
 0x18b   : > { %3783 = vmatprep.mubr.msk.bf16.mxu0 %vm564_vm0, %v2180_v19 }
 0x192   : > { %3784 = vmatmul.mubr.msk.bf16.gmra.mrb[4].mxu0 %vm564_vm0, %v4885_v33  ;;  %v2176_v33 = vld [vmem:[#allocation3 + $0x110] sm:$0xff] }
 0x193   : > { %3787 = vmatprep.mubr.msk.bf16.mxu0 %vm564_vm0, %v4954_v6  ;;  %v2177_v6 = vld [vmem:[#allocation3 + $0x118] sm:$0xff] }
 0x19a   : > { %3788 = vmatmul.mubr.msk.bf16.gmra.mrb[8].mxu0 %vm564_vm0, %v5012_v57  ;;  %v4056_v57 = vld [vmem:[%s5652_s4] sm:$0xff]  }
 0x19b   : > { %3791 = vmatprep.mubr.msk.bf16.mxu0 %vm564_vm0, %v5058_v28  ;;  %3812 = vmatpush3.bf16.msra.mxu1 %v4056_v57  ;;  %v4057_v28 = vld [vmem:[%s5652_s4 + $0x8] sm:$0xff]  }
 0x1a2   : > { %3792 = vmatmul.mubr.msk.bf16.gmra.mrb[12].mxu0 %vm564_vm0, %v5110_v7  ;;  %v2193_v7 = vpack.c.bf16 %v2177_v6, %v2176_v33 }
 0x1a3   : > { %3795 = vmatprep.mubr.msk.bf16.mxu0 %vm564_vm0, %v5148_v21  ;;  %v5661_v21 = vmov 0.0  }
 0x1a4   : > { %3813 = vmatprep.subr.bf16.mxu1 %v5661_v21  ;;  %3817 = vmatprep.mubr.msk.bf16.mxu1 %vm4127_vm2, %v5661_v21 }
 0x1a5   : > { %3814 = vmatpush3.bf16.msra.mxu1 %v4057_v28 }
 0x1a6   : > { %3815 = vmatprep.subr.bf16.mxu1 %v5661_v21 }
 0x1a9   : > { %3816 = vmatpush3.bf16.msra.mxu1 %v4058_v60  ;;  %v2575_v60 = vld [vmem:[%s555_s27] sm:$0xff] }
 0x1aa   : > { %3796 = vmatmul.mubr.msk.bf16.gmra.mrb[16].mxu0 %vm564_vm0, %v5234_v30  ;;  %3821 = vmatprep.subr.bf16.mxu1 %v5661_v21 }
 0x1ab   : > { %3799 = vmatprep.mubr.msk.bf16.mxu0 %vm564_vm0, %v1734_v14 }
 0x1b2   : > { %3800 = vmatmul.mubr.msk.bf16.gmra.mrb[20].mxu0 %vm564_vm0, %v1735_v10 }
 0x1b3   : > { %3803 = vmatprep.mubr.msk.bf16.mxu0 %vm564_vm0, %v1736_v11 }
 0x1ba   : > { %3804 = vmatmul.mubr.msk.bf16.gmra.mrb[24].mxu0 %vm564_vm0, %v1737_v59 }
 0x1bb   : > { %3807 = vmatprep.mubr.msk.bf16.mxu0 %vm564_vm0, %v1743_v4 }
 0x1c2   : > { %3808 = vmatmul.mubr.msk.bf16.gmra.mrb[28].mxu0 %vm564_vm0, %v2193_v7 }
 0x229   : > { %v5308_v9 = vpop.f32.mrb[0].mxu1 }
 0x22a   : > { %v5310_v20 = vpop.f32.mrb[1].mxu1 }
 0x22b   : > { %v5312_v39 = vpop.f32.mrb[2].mxu1 }
 0x22c   : > { %v5314_v23 = vpop.f32.mrb[3].mxu1 }
 0x231   : > { %v5316_v55 = vpop.f32.mrb[4].mxu1 }
 0x232   : > { %v5318_v22 = vpop.f32.mrb[5].mxu1 }
 0x233   : > { %v5320_v27 = vpop.f32.mrb[6].mxu1 }
 0x234   : > { %v5322_v5 = vpop.f32.mrb[7].mxu1 }
 0x239   : > { %v5324_v47 = vpop.f32.mrb[8].mxu1 }
 0x23a   : > { %v5326_v35 = vpop.f32.mrb[9].mxu1 }
 0x23b   : > { %v5328_v44 = vpop.f32.mrb[10].mxu1 }
 0x23c   : > { %v5330_v54 = vpop.f32.mrb[11].mxu1 }
 0x25d   : > { %v3781_v0 = vpop.f32.mrb[0].mxu0 }
 0x25e   : > { %v2458_v48 = vmul.f32 %v3781_v0, %v5335_v31  ;;  %v2292_v8 = vpop.f32.mrb[1].mxu0  ;;  %v2576_v0 = vld [vmem:[%s555_s27 + $0x8] sm:$0xff] }
 0x25f   : > { %v2456_v24 = vmul.f32 %v5335_v31, %v2292_v8  ;;  %v3782_v34 = vpop.f32.mrb[2].mxu0 }
 0x260   : > { %v2495_v37 = vadd.f32 %v5340_v61, %v2458_v48  ;;  %v2459_v45 = vmul.f32 %v3782_v34, %v5335_v31  ;;  %v2295_v43 = vpop.f32.mrb[3].mxu0 }
 0x261   : > { %v2493_v63 = vadd.f32 %v5340_v61, %v2456_v24  ;;  %v2457_v12 = vmul.f32 %v5335_v31, %v2295_v43 }
 0x262   : > { %v2527_v30 = vmax.f32 %v2495_v37, 0.0  ;;  %v2496_v36 = vadd.f32 %v5340_v61, %v2459_v45 }
 0x263   : > { %v2525_v52 = vmax.f32 %v2493_v63, 0.0  ;;  %v2494_v53 = vadd.f32 %v5340_v61, %v2457_v12  ;;  %v2577_v63 = vpack.c.bf16 %v2576_v0, %v2575_v60 }
 0x264   : > { %v2528_v38 = vmax.f32 %v2496_v36, 0.0 }
 0x265   : > { %v2557_v32 = vmax.f32 %v2525_v52, %v2527_v30  ;;  %v2526_v29 = vmax.f32 %v2494_v53, 0.0  ;;  %v3785_v46 = vpop.f32.mrb[4].mxu0  ;;  %v4059_v30 = vld [vmem:[%s5652_s4 + $0x18] sm:$0xff]  }
 0x266   : > { %v2462_v14 = vmul.f32 %v3785_v46, %v5335_v31  ;;  %v2308_v49 = vpop.f32.mrb[5].mxu0 }
 0x267   : > { %v2558_v26 = vmax.f32 %v2526_v29, %v2528_v38  ;;  %v2460_v15 = vmul.f32 %v5335_v31, %v2308_v49  ;;  %v3786_v10 = vpop.f32.mrb[6].mxu0 }
 0x268   : > { %v2499_v58 = vadd.f32 %v5340_v61, %v2462_v14  ;;  %v2463_v41 = vmul.f32 %v3786_v10, %v5335_v31  ;;  %v2311_v16 = vpop.f32.mrb[7].mxu0 }
 0x269   : > { %v2578_v56 = vpack.c.bf16 %v2558_v26, %v2557_v32  ;;  %v2497_v11 = vadd.f32 %v5340_v61, %v2460_v15  ;;  %v2461_v59 = vmul.f32 %v5335_v31, %v2311_v16  ;;  %v4060_v26 = vld [vmem:[%s5652_s4 + $0x20] sm:$0xff]  }
 0x26a   : > { %v2531_v1 = vmax.f32 %v2499_v58, 0.0  ;;  %v2500_v4 = vadd.f32 %v5340_v61, %v2463_v41 }
 0x26b   : > { %v2529_v2 = vmax.f32 %v2497_v11, 0.0  ;;  %v2498_v13 = vadd.f32 %v5340_v61, %v2461_v59  ;;  %3818 = vmatmul.mubr.msk.bf16.vlgmr.msra.gmra.mrb[12].mxu1 %vm2603_vm4, %v2578_v56 }
 0x26c   : > { %v2532_v62 = vmax.f32 %v2500_v4, 0.0  ;;  %3822 = vmatpush3.bf16.msra.mxu1 %v2654_v25  ;;  %3823 = vmatprep.mubr.msk.bf16.mxu1 %vm4127_vm2, %v5661_v21  ;;  %v4061_v25 = vld [vmem:[%s5652_s4 + $0x28] sm:$0xff]  }
 0x26d   : > { %v5369_v42 = vmax.f32 %v2529_v2, %v2531_v1  ;;  %v2530_v3 = vmax.f32 %v2498_v13, 0.0  ;;  %v3789_v50 = vpop.f32.mrb[8].mxu0  ;;  %3827 = vmatprep.subr.bf16.mxu1 %v5661_v21 }
 0x26e   : > { %v2466_v18 = vmul.f32 %v3789_v50, %v5335_v31  ;;  %v2324_v17 = vpop.f32.mrb[9].mxu0 }
 0x26f   : > { %v5378_v19 = vmax.f32 %v2530_v3, %v2532_v62  ;;  %v2464_v33 = vmul.f32 %v5335_v31, %v2324_v17  ;;  %v3790_v6 = vpop.f32.mrb[10].mxu0 }
 0x270   : > { %v2503_v57 = vadd.f32 %v5340_v61, %v2466_v18  ;;  %v2467_v28 = vmul.f32 %v3790_v6, %v5335_v31  ;;  %v2327_v7 = vpop.f32.mrb[11].mxu0 }
 0x271   : > { %v2697_v48 = vpack.c.bf16 %v5378_v19, %v5369_v42  ;;  %v2501_v8 = vadd.f32 %v5340_v61, %v2464_v33  ;;  %v2465_v24 = vmul.f32 %v5335_v31, %v2327_v7  ;;  %v4062_v33 = vld [vmem:[%s5652_s4 + $0x30] sm:$0xff]  }
 0x272   : > { %v2535_v34 = vmax.f32 %v2503_v57, 0.0  ;;  %v2504_v37 = vadd.f32 %v5340_v61, %v2467_v28 }
 0x273   : > { %v2533_v45 = vmax.f32 %v2501_v8, 0.0  ;;  %v2502_v43 = vadd.f32 %v5340_v61, %v2465_v24 }
 0x274   : > { %v2536_v12 = vmax.f32 %v2504_v37, 0.0 }
 0x275   : > { %v5392_v36 = vmax.f32 %v2533_v45, %v2535_v34  ;;  %v2534_v51 = vmax.f32 %v2502_v43, 0.0  ;;  %v3793_v52 = vpop.f32.mrb[12].mxu0  ;;  %v4063_v34 = vld [vmem:[%s5652_s4 + $0x38] sm:$0xff]  }
 0x276   : > { %v2470_v53 = vmul.f32 %v3793_v52, %v5335_v31  ;;  %v2340_v38 = vpop.f32.mrb[13].mxu0 }
 0x277   : > { %v5395_v32 = vmax.f32 %v2534_v51, %v2536_v12  ;;  %v2468_v29 = vmul.f32 %v5335_v31, %v2340_v38  ;;  %v3794_v46 = vpop.f32.mrb[14].mxu0  ;;  %3824 = vmatmul.mubr.msk.bf16.vlgmr.msra.gmra.mrb[12].mxu1 %vm2648_vm5, %v2577_v63 }
 0x278   : > { %v2507_v40 = vadd.f32 %v5340_v61, %v2470_v53  ;;  %v2471_v14 = vmul.f32 %v3794_v46, %v5335_v31  ;;  %3828 = vmatpush3.bf16.msra.mxu1 %v4059_v30  ;;  %v2343_v49 = vpop.f32.mrb[15].mxu0  ;;  %3833 = vmatprep.mubr.msk.bf16.mxu1 %vm4127_vm2, %v5661_v21 }
 0x279   : > { %v2769_v15 = vpack.c.bf16 %v5395_v32, %v5392_v36  ;;  %v2505_v10 = vadd.f32 %v5340_v61, %v2468_v29  ;;  %v2469_v58 = vmul.f32 %v5335_v31, %v2343_v49  ;;  %3829 = vmatprep.subr.bf16.mxu1 %v5661_v21  ;;  %v4064_v29 = vld [vmem:[%s5652_s4 + $0x40] sm:$0xff]  }
 0x27a   : > { %v2539_v41 = vmax.f32 %v2507_v40, 0.0  ;;  %v2508_v16 = vadd.f32 %v5340_v61, %v2471_v14 }
 0x27b   : > { %v2537_v56 = vmax.f32 %v2505_v10, 0.0  ;;  %v2506_v11 = vadd.f32 %v5340_v61, %v2469_v58  ;;  %v4065_v58 = vld [vmem:[%s5652_s4 + $0x48] sm:$0xff]  }
 0x27c   : > { %v2540_v59 = vmax.f32 %v2508_v16, 0.0  ;;  %3830 = vmatpush3.bf16.msra.mxu1 %v4060_v26 }
 0x27d   : > { %v5415_v1 = vmax.f32 %v2537_v56, %v2539_v41  ;;  %v2538_v4 = vmax.f32 %v2506_v11, 0.0  ;;  %v3797_v2 = vpop.f32.mrb[16].mxu0  ;;  %3831 = vmatprep.subr.bf16.mxu1 %v5661_v21 }
 0x27e   : > { %v2474_v13 = vmul.f32 %v3797_v2, %v5335_v31  ;;  %v2356_v62 = vpop.f32.mrb[17].mxu0 }
 0x27f   : > { %v5419_v42 = vmax.f32 %v2538_v4, %v2540_v59  ;;  %v2472_v3 = vmul.f32 %v5335_v31, %v2356_v62  ;;  %v3798_v50 = vpop.f32.mrb[18].mxu0 }
 0x280   : > { %v2511_v18 = vadd.f32 %v5340_v61, %v2474_v13  ;;  %v2475_v17 = vmul.f32 %v3798_v50, %v5335_v31  ;;  %3832 = vmatpush3.bf16.msra.mxu1 %v4061_v25  ;;  %v2359_v19 = vpop.f32.mrb[19].mxu0 }
 0x281   : > { %v2841_v6 = vpack.c.bf16 %v5419_v42, %v5415_v1  ;;  %v2509_v57 = vadd.f32 %v5340_v61, %v2472_v3  ;;  %v2473_v28 = vmul.f32 %v5335_v31, %v2359_v19  ;;  %3837 = vmatprep.subr.bf16.mxu1 %v5661_v21 }
 0x282   : > { %v2543_v7 = vmax.f32 %v2511_v18, 0.0  ;;  %v2512_v60 = vadd.f32 %v5340_v61, %v2475_v17 }
 0x283   : > { %v2541_v0 = vmax.f32 %v2509_v57, 0.0  ;;  %v2510_v8 = vadd.f32 %v5340_v61, %v2473_v28  ;;  %3834 = vmatmul.mubr.msk.bf16.vlgmr.msra.gmra.mrb[12].mxu1 %vm2603_vm4, %v2697_v48 }
 0x284   : > { %v2544_v24 = vmax.f32 %v2512_v60, 0.0  ;;  %3838 = vmatpush3.bf16.msra.mxu1 %v4062_v33  ;;  %3843 = vmatprep.mubr.msk.bf16.mxu1 %vm4127_vm2, %v5661_v21 }
 0x285   : > { %v5440_v37 = vmax.f32 %v2541_v0, %v2543_v7  ;;  %v2542_v45 = vmax.f32 %v2510_v8, 0.0  ;;  %v3801_v43 = vpop.f32.mrb[20].mxu0  ;;  %3839 = vmatprep.subr.bf16.mxu1 %v5661_v21 }
 0x286   : > { %v3921_v63 = vadd.f32 %v3801_v43, %v5308_v9  ;;  %v2372_v12 = vpop.f32.mrb[21].mxu0 }
 0x287   : > { %v5444_v30 = vmax.f32 %v2542_v45, %v2544_v24  ;;  %v3922_v48 = vadd.f32 %v2372_v12, %v5310_v20  ;;  %v3802_v51 = vpop.f32.mrb[22].mxu0 }
 0x288   : > { %v2478_v52 = vmul.f32 %v3921_v63, %v5335_v31  ;;  %v3923_v53 = vadd.f32 %v3802_v51, %v5312_v39  ;;  %3840 = vmatpush3.bf16.msra.mxu1 %v4063_v34  ;;  %v2375_v38 = vpop.f32.mrb[23].mxu0 }
 0x289   : > { %v2913_v46 = vpack.c.bf16 %v5444_v30, %v5440_v37  ;;  %v2476_v9 = vmul.f32 %v3922_v48, %v5335_v31  ;;  %v3924_v40 = vadd.f32 %v2375_v38, %v5314_v23  ;;  %3841 = vmatprep.subr.bf16.mxu1 %v5661_v21  ;;  %v4074_v37 = vld [vmem:[%s5652_s4 + $0x90] sm:$0xff]   ;;  %v4075_v30 = vld [vmem:[%s5652_s4 + $0x98] sm:$0xff]  }
 0x28a   : > { %v2515_v20 = vadd.f32 %v5340_v61, %v2478_v52  ;;  %v2479_v14 = vmul.f32 %v3923_v53, %v5335_v31  ;;  %v4068_v52 = vld [vmem:[%s5652_s4 + $0x60] sm:$0xff]  }
 0x28b   : > { %v2513_v39 = vadd.f32 %v5340_v61, %v2476_v9  ;;  %v2477_v49 = vmul.f32 %v3924_v40, %v5335_v31 }
 0x28c   : > { %v2547_v26 = vmax.f32 %v2515_v20, 0.0  ;;  %v2516_v10 = vadd.f32 %v5340_v61, %v2479_v14  ;;  %3842 = vmatpush3.bf16.msra.mxu1 %v4064_v29 }
 0x28d   : > { %v2545_v41 = vmax.f32 %v2513_v39, 0.0  ;;  %v2514_v23 = vadd.f32 %v5340_v61, %v2477_v49  ;;  %v3805_v16 = vpop.f32.mrb[24].mxu0  ;;  %3847 = vmatprep.subr.bf16.mxu1 %v5661_v21 }
 0x28e   : > { %v2548_v56 = vmax.f32 %v2516_v10, 0.0  ;;  %v3925_v11 = vadd.f32 %v3805_v16, %v5316_v55  ;;  %v2388_v59 = vpop.f32.mrb[25].mxu0  ;;  %v4066_v55 = vld [vmem:[%s5652_s4 + $0x50] sm:$0xff]  }
 0x28f   : > { %v5468_v25 = vmax.f32 %v2545_v41, %v2547_v26  ;;  %v2546_v4 = vmax.f32 %v2514_v23, 0.0  ;;  %v3926_v2 = vadd.f32 %v2388_v59, %v5318_v22  ;;  %v3806_v13 = vpop.f32.mrb[26].mxu0  ;;  %3844 = vmatmul.mubr.msk.bf16.vlgmr.msra.gmra.mrb[12].mxu1 %vm2603_vm4, %v2769_v15  ;;  %v4073_v41 = vld [vmem:[%s5652_s4 + $0x88] sm:$0xff]   ;;  %v4078_v16 = vld [vmem:[%s5652_s4 + $0xb0] sm:$0xff]  }
 0x290   : > { %v2482_v62 = vmul.f32 %v3925_v11, %v5335_v31  ;;  %v3927_v3 = vadd.f32 %v3806_v13, %v5320_v27  ;;  %3848 = vmatpush3.bf16.msra.mxu1 %v4065_v58  ;;  %v2391_v50 = vpop.f32.mrb[27].mxu0  ;;  %3853 = vmatprep.mubr.msk.bf16.mxu1 %vm4127_vm2, %v5661_v21  ;;  %v4071_v58 = vld [vmem:[%s5652_s4 + $0x78] sm:$0xff]   ;;  %v4077_v23 = vld [vmem:[%s5652_s4 + $0xa8] sm:$0xff]   ;;  %v4080_v11 = vld [vmem:[%s5653_s5] sm:$0xff]  }
 0x291   : > { %v5482_v22 = vmax.f32 %v2546_v4, %v2548_v56  ;;  %v2480_v18 = vmul.f32 %v3926_v2, %v5335_v31  ;;  %v3928_v36 = vadd.f32 %v2391_v50, %v5322_v5  ;;  %3849 = vmatprep.subr.bf16.mxu1 %v5661_v21  ;;  %v4067_v5 = vld [vmem:[%s5652_s4 + $0x58] sm:$0xff]   ;;  %v4081_v59 = vld [vmem:[%s5653_s5 + $0x8] sm:$0xff]   ;;  %v4084_v2 = vld [vmem:[%s5653_s5 + $0x20] sm:$0xff]  }
 0x292   : > { %v2519_v32 = vadd.f32 %v5340_v61, %v2482_v62  ;;  %v2483_v27 = vmul.f32 %v3927_v3, %v5335_v31  ;;  %v4079_v56 = vld [vmem:[%s5652_s4 + $0xb8] sm:$0xff]   ;;  %v4085_v13 = vld [vmem:[%s5653_s5 + $0x28] sm:$0xff]   ;;  %v4086_v62 = vld [vmem:[%s5653_s5 + $0x30] sm:$0xff]  }
 0x293   : > { %v2985_v15 = vpack.c.bf16 %v5482_v22, %v5468_v25  ;;  %v2517_v17 = vadd.f32 %v5340_v61, %v2480_v18  ;;  %v2481_v19 = vmul.f32 %v3928_v36, %v5335_v31  ;;  %v4082_v25 = vld [vmem:[%s5653_s5 + $0x10] sm:$0xff]   ;;  %v4083_v4 = vld [vmem:[%s5653_s5 + $0x18] sm:$0xff]   ;;  %v3591_v50 = vld [vmem:[%s5650_s2 + $0x7] ss:$0 sm:$0xff] }
 0x294   : > { %v2551_v33 = vmax.f32 %v2519_v32, 0.0  ;;  %v2520_v57 = vadd.f32 %v5340_v61, %v2483_v27  ;;  %3850 = vmatpush3.bf16.msra.mxu1 %v4066_v55  ;;  %v4087_v3 = vld [vmem:[%s5653_s5 + $0x38] sm:$0xff]   ;;  %v3592_v22 = vld [vmem:[%s5650_s2 + $0x8] ss:$0 sm:$0xff] }
 0x295   : > { %v2549_v28 = vmax.f32 %v2517_v17, 0.0  ;;  %v2518_v7 = vadd.f32 %v5340_v61, %v2481_v19  ;;  %v3809_v60 = vpop.f32.mrb[28].mxu0  ;;  %3851 = vmatprep.subr.bf16.mxu1 %v5661_v21 }
 0x296   : > { %v2552_v0 = vmax.f32 %v2520_v57, 0.0  ;;  %v3929_v8 = vadd.f32 %v3809_v60, %v5324_v47  ;;  %v2404_v24 = vpop.f32.mrb[29].mxu0 }
 0x297   : > { %v2569_v34 = vmax.f32 %v2549_v28, %v2551_v33  ;;  %v2550_v45 = vmax.f32 %v2518_v7, 0.0  ;;  %v3930_v43 = vadd.f32 %v2404_v24, %v5326_v35  ;;  %v3810_v63 = vpop.f32.mrb[30].mxu0  ;;  %v3602_v7 = vld [vmem:[%s5650_s2 + $0xa] ss:$0 sm:$0xff] }
 0x298   : > { %v2486_v12 = vmul.f32 %v3929_v8, %v5335_v31  ;;  %v3931_v48 = vadd.f32 %v3810_v63, %v5328_v44  ;;  %3852 = vmatpush3.bf16.msra.mxu1 %v4067_v5  ;;  %v2407_v51 = vpop.f32.mrb[31].mxu0  ;;  %v3601_v5 = vld [vmem:[%s5650_s2 + $0x9] ss:$0 sm:$0xff] }
 0x299   : > { %v2570_v53 = vmax.f32 %v2550_v45, %v2552_v0  ;;  %v2484_v38 = vmul.f32 %v3930_v43, %v5335_v31  ;;  %v3932_v47 = vadd.f32 %v2407_v51, %v5330_v54  ;;  %3857 = vmatprep.subr.bf16.mxu1 %v5661_v21  ;;  %v4069_v54 = vld [vmem:[%s5652_s4 + $0x68] sm:$0xff]  }
 0x29a   : > { %v2523_v35 = vadd.f32 %v5340_v61, %v2486_v12  ;;  %v2487_v29 = vmul.f32 %v3931_v48, %v5335_v31 }
 0x29b   : > { %v3057_v9 = vpack.c.bf16 %v2570_v53, %v2569_v34  ;;  %v2521_v44 = vadd.f32 %v5340_v61, %v2484_v38  ;;  %v2485_v40 = vmul.f32 %v3932_v47, %v5335_v31  ;;  %3854 = vmatmul.mubr.msk.bf16.vlgmr.msra.gmra.mrb[12].mxu1 %vm2603_vm4, %v2841_v6  ;;  %v4070_v6 = vld [vmem:[%s5652_s4 + $0x70] sm:$0xff]  }
 0x29c   : > { %v2555_v20 = vmax.f32 %v2523_v35, 0.0  ;;  %v2524_v14 = vadd.f32 %v5340_v61, %v2487_v29  ;;  %3858 = vmatpush3.bf16.msra.mxu1 %v4068_v52  ;;  %3863 = vmatprep.mubr.msk.bf16.mxu1 %vm4127_vm2, %v5661_v21 }
 0x29d   : > { %v2553_v39 = vmax.f32 %v2521_v44, 0.0  ;;  %v2522_v49 = vadd.f32 %v5340_v61, %v2485_v40  ;;  %3859 = vmatprep.subr.bf16.mxu1 %v5661_v21  ;;  %v4072_v61 = vld [vmem:[%s5652_s4 + $0x80] sm:$0xff]  }
 0x29e   : > { %v2556_v31 = vmax.f32 %v2524_v14, 0.0 }
 0x29f   : > { %v2571_v1 = vmax.f32 %v2553_v39, %v2555_v20  ;;  %v2554_v42 = vmax.f32 %v2522_v49, 0.0 }
 0x2a0   : > { %3860 = vmatpush3.bf16.msra.mxu1 %v4069_v54 }
 0x2a1   : > { %v2572_v26 = vmax.f32 %v2554_v42, %v2556_v31  ;;  %3861 = vmatprep.subr.bf16.mxu1 %v5661_v21 }
 0x2a3   : > { %v3129_v10 = vpack.c.bf16 %v2572_v26, %v2571_v1 }
 0x2a4   : > { %3862 = vmatpush3.bf16.msra.mxu1 %v4070_v6 }
 0x2a5   : > { %3867 = vmatprep.subr.bf16.mxu1 %v5661_v21 }
 0x2a7   : > { %3864 = vmatmul.mubr.msk.bf16.vlgmr.msra.gmra.mrb[12].mxu1 %vm2603_vm4, %v2913_v46  ;;  %v4076_v46 = vld [vmem:[%s5652_s4 + $0xa0] sm:$0xff]  }
 0x2a8   : > { %3868 = vmatpush3.bf16.msra.mxu1 %v4071_v58  ;;  %3873 = vmatprep.mubr.msk.bf16.mxu1 %vm4127_vm2, %v5661_v21 }
 0x2a9   : > { %3869 = vmatprep.subr.bf16.mxu1 %v5661_v21 }
 0x2ac   : > { %3870 = vmatpush3.bf16.msra.mxu1 %v4072_v61 }
 0x2ad   : > { %3871 = vmatprep.subr.bf16.mxu1 %v5661_v21 }
 0x2b0   : > { %3872 = vmatpush3.bf16.msra.mxu1 %v4073_v41 }
 0x2b1   : > { %3877 = vmatprep.subr.bf16.mxu1 %v5661_v21 }
 0x2b3   : > { %3874 = vmatmul.mubr.msk.bf16.vlgmr.msra.gmra.mrb[12].mxu1 %vm2603_vm4, %v2985_v15 }
 0x2b4   : > { %3878 = vmatpush3.bf16.msra.mxu1 %v4074_v37  ;;  %3883 = vmatprep.mubr.msk.bf16.mxu1 %vm4127_vm2, %v5661_v21 }
 0x2b5   : > { %3879 = vmatprep.subr.bf16.mxu1 %v5661_v21 }
 0x2b8   : > { %3880 = vmatpush3.bf16.msra.mxu1 %v4075_v30 }
 0x2b9   : > { %3881 = vmatprep.subr.bf16.mxu1 %v5661_v21 }
 0x2bc   : > { %3882 = vmatpush3.bf16.msra.mxu1 %v4076_v46 }
 0x2bd   : > { %3887 = vmatprep.subr.bf16.mxu1 %v5661_v21 }
 0x2bf   : > { %3884 = vmatmul.mubr.msk.bf16.vlgmr.msra.gmra.mrb[12].mxu1 %vm2603_vm4, %v3057_v9 }
 0x2c0   : > { %3888 = vmatpush3.bf16.msra.mxu1 %v4077_v23  ;;  %3893 = vmatprep.mubr.msk.bf16.mxu1 %vm4127_vm2, %v5661_v21 }
 0x2c1   : > { %3889 = vmatprep.subr.bf16.mxu1 %v5661_v21 }
 0x2c4   : > { %3890 = vmatpush3.bf16.msra.mxu1 %v4078_v16 }
 0x2c5   : > { %3891 = vmatprep.subr.bf16.mxu1 %v5661_v21 }
 0x2c8   : > { %3892 = vmatpush3.bf16.msra.mxu1 %v4079_v56 }
 0x2c9   : > { %3897 = vmatprep.subr.bf16.mxu1 %v5661_v21 }
 0x2cb   : > { %3894 = vmatmul.mubr.msk.bf16.vlgmr.msra.gmra.mrb[12].mxu1 %vm2603_vm4, %v3129_v10 }
 0x2cc   : > { %3898 = vmatpush3.bf16.msra.mxu1 %v4080_v11  ;;  %3913 = vmatprep.mubr.msk.bf16.mxu1 %vm4127_vm2, %v5661_v21 }
 0x2cd   : > { %3899 = vmatprep.subr.bf16.mxu1 %v5661_v21 }
 0x2d0   : > { %3900 = vmatpush3.bf16.msra.mxu1 %v4081_v59 }
 0x2d1   : > { %3901 = vmatprep.subr.bf16.mxu1 %v5661_v21 }
 0x2d4   : > { %3902 = vmatpush3.bf16.msra.mxu1 %v4082_v25 }
 0x2d5   : > { %3903 = vmatprep.subr.bf16.mxu1 %v5661_v21 }
 0x2d8   : > { %3904 = vmatpush3.bf16.msra.mxu1 %v4083_v4 }
 0x2d9   : > { %3905 = vmatprep.subr.bf16.mxu1 %v5661_v21 }
 0x2dc   : > { %3906 = vmatpush3.bf16.msra.mxu1 %v4084_v2 }
 0x2dd   : > { %3907 = vmatprep.subr.bf16.mxu1 %v5661_v21 }
 0x2e0   : > { %3908 = vmatpush3.bf16.msra.mxu1 %v4085_v13 }
 0x2e1   : > { %3909 = vmatprep.subr.bf16.mxu1 %v5661_v21 }
 0x2e4   : > { %3910 = vmatpush3.bf16.msra.mxu1 %v4086_v62 }
 0x2e5   : > { %3911 = vmatprep.subr.bf16.mxu1 %v5661_v21 }
 0x2e8   : > { %3912 = vmatpush3.bf16.msra.mxu1 %v4087_v3 }
 0x39e   : > { %v3192_v55 = vpop.f32.mrb[12].mxu1 }
 0x39f   : > { %v3206_v18 = vmul.f32 %v3591_v50, %v3192_v55  ;;  %v3895_v36 = vpop.f32.mrb[13].mxu1 }
 0x3a0   : > { %v3195_v32 = vpop.f32.mrb[14].mxu1 }
 0x3a1   : > { %v3213_v27 = vadd.f32 %v3592_v22, %v3206_v18  ;;  %v3207_v15 = vmul.f32 %v3591_v50, %v3195_v32  ;;  %v3896_v17 = vpop.f32.mrb[15].mxu1 }
 0x3a3   : > { %v3214_v19 = vadd.f32 %v3592_v22, %v3207_v15  ;;  %v3215_v33 = vmax.f32 %v3213_v27, 0.0 }
 0x3a5   : > { %v3216_v57 = vmax.f32 %v3214_v19, 0.0 }
 0x3a7   : > { %v3217_v21 = vpack.c.bf16 %v3216_v57, %v3215_v33 }
 0x3a9   : > { %3914 = vmatmul.mubr.bf16.vlgmr.msra.gmra.mrb[16].mxu1 %v3217_v21 }
 0x47c   : > { %v3316_v28 = vpop.f32.mrb[16].mxu1 }
 0x47d   : > { %v3328_v60 = vmul.f32 %v3601_v5, %v3316_v28  ;;  %v3915_v0 = vpop.f32.mrb[17].mxu1 }
 0x47e   : > { %v3319_v8 = vpop.f32.mrb[18].mxu1 }
 0x47f   : > { %v3329_v24 = vmul.f32 %v3601_v5, %v3319_v8  ;;  %v3916_v34 = vpop.f32.mrb[19].mxu1  ;;  %v3335_v45 = vadd.f32 %v3602_v7, %v3328_v60 }
 0x481   : > { %v3338_v43 = vsel %vm3337_vm6, %v3335_v45, -inf  ;;  %v3336_v63 = vadd.f32 %v3602_v7, %v3329_v24 }
 0x482   : > { %3339 = vmax.xlane.f32.xlu0 %v3338_v43 }
 0x483   : > { %v3341_v12 = vsel %vm3337_vm6, %v3336_v63, -inf }
 0x484   : > { %3342 = vmax.xlane.f32.xlu1 %v3341_v12 }
 0x50f   : > { %v3340_v48 = vpop.xlane.xlu0 %3339 }
 0x510   : > { %v3344_v51 = vsub.f32 %v3335_v45, %v3340_v48 }
 0x511   : > { %v3343_v52 = vpop.xlane.xlu1 %3342 }
 0x512   : > { %v3346_v53 = vmul.f32 1.442695, %v3344_v51  ;;  %v3345_v38 = vsub.f32 %v3336_v63, %v3343_v52 }
 0x514   : > { %4088 = vpow2.f32 %v3346_v53  ;;  %v3348_v47 = vmul.f32 1.442695, %v3345_v38 }
 0x516   : > { %4090 = vpow2.f32 %v3348_v47 }
 0x51e   : > { %v4089_v35 = vpop.eup %4088 }
 0x51f   : > { %v3350_v29 = vsel %vm3337_vm6, %v4089_v35, 0.0 }
 0x520   : > { %v4091_v9 = vpop.eup %4090  ;;  %3351 = vadd.xlane.f32.xlu0 %v3350_v29 }
 0x521   : > { %v3353_v44 = vsel %vm3337_vm6, %v4091_v9, 0.0 }
 0x524   : > { %3354 = vadd.xlane.f32.xlu0 %v3353_v44 }
 0x5ad   : > { %v3352_v40 = vpop.xlane.xlu0 %3351 }
 0x5ae   : > { %4092 = vrcp.f32 %v3352_v40 }
 0x5b1   : > { %v3355_v20 = vpop.xlane.xlu0 %3354 }
 0x5b2   : > { %4094 = vrcp.f32 %v3355_v20 }
 0x5b8   : > { %v4093_v14 = vpop.eup %4092 }
 0x5b9   : > { %v3357_v54 = vmul.f32 %v4093_v14, %v4089_v35 }
 0x5bb   : > { %3360 = vst.msk [vmem:[%s561_s16] sm:$0xff] %vm3337_vm6, %v3357_v54 }
 0x5bc   : > { %v4095_v39 = vpop.eup %4094 }
 0x5bd   : > { %v3359_v49 = vmul.f32 %v4095_v39, %v4091_v9 }
 0x5bf   : > { %3361 = vst.msk [vmem:[%s561_s16 + $0x8] sm:$0xff] %vm3337_vm6, %v3359_v49 }
 0x5c0 PF: > { %p13_p9 = scmp.ge.s32.totalorder %s4180_s25, 4   ;;  %s5662_s21 = smov %s4119_s22 }
 0x5c1   : > { %s5663_s22 = smov %s4189_s28  ;;  %s5664_s23 = smov %s4180_s25 }
 0x5c2   :  { %15 = sbr.rel (!%p13_p9) target bundleno = 2 (0x2), region = 129 }

</bundles_post_ra>
